<compile_context>
chip_gen: v7x
topology: tpu7x:2x2x1
jax: 0.10.0
libtpu: 0.0.40
codegen_flags: <defaults>
</compile_context>

<pallas_src>
import functools

import jax
import jax.numpy as jnp
from jax.experimental import pallas as pl
from jax.experimental.pallas import tpu as pltpu

EPS = 1e-5                 # BatchNorm2d default eps
_MISH_APPROX_RECIP = True  # set False for exact division in Mish


# ----------------------------- fused Pallas kernel -----------------------------

def _bottleneck_kernel(
    # inputs
    xh_ref, xl_ref, pool_ref, up_ref, mask_h_ref, mask_l_ref,
    w1hh_ref, w1hl_ref, w1l_ref, g1h_ref, b1h_ref, g1l_ref, b1l_ref,
    w2hh_ref, w2hl_ref, w2l_ref, g2h_ref, b2h_ref, g2l_ref, b2l_ref,
    w3hh_ref, w3hl_ref, w3l_ref, g3h_ref, b3h_ref, g3l_ref, b3l_ref,
    # outputs
    oh_ref, ol_ref,
    *, n_img, hw_hi, hw_lo, w_hi, w_lo, c_h_out):

  f32 = jnp.float32
  bf16 = jnp.bfloat16

  def mm(w_ref, x):
    # W (Cout, Cin) @ X (Cin, M): bf16 operands, f32 accumulation.
    return jnp.dot(w_ref[...], x.astype(bf16), preferred_element_type=f32)

  def mish(x):
    # x * tanh(softplus(x)) (softplus threshold 20) via a single exp:
    # tanh(log(1+e^x)) = ((1+e^x)^2 - 1) / ((1+e^x)^2 + 1)
    t = jnp.exp(jnp.minimum(x, 20.0))
    sp2 = (1.0 + t) * (1.0 + t)
    num = x * (sp2 - 1.0)
    if _MISH_APPROX_RECIP:
      return num * pl.reciprocal(sp2 + 1.0, approx=True)
    return num / (sp2 + 1.0)

  def bn(y, g_ref, b_ref, act):
    # training-mode BatchNorm: per-channel (per-row) biased stats over M lanes,
    # computed in one pass (sum + sum of squares).
    inv_m = 1.0 / y.shape[1]
    mean = jnp.sum(y, axis=1, keepdims=True) * inv_m
    ex2 = jnp.sum(y * y, axis=1, keepdims=True) * inv_m
    var = ex2 - mean * mean
    scale = g_ref[...] * jax.lax.rsqrt(var + EPS)
    out = (y - mean) * scale + b_ref[...]
    return mish(out) if act else out

  def pool(x):
    # AvgPool2x2 as a per-image (HW, HlWl) right-operator (block-diagonal).
    xb = x.astype(bf16)
    parts = [jnp.dot(xb[:, i * hw_hi:(i + 1) * hw_hi], pool_ref[...],
                     preferred_element_type=f32) for i in range(n_img)]
    return parts[0] if n_img == 1 else jnp.concatenate(parts, axis=1)

  def upsample(x):
    # nearest-Upsample2x as a per-image (HlWl, HW) right-operator.
    xb = x.astype(bf16)
    parts = [jnp.dot(xb[:, i * hw_lo:(i + 1) * hw_lo], up_ref[...],
                     preferred_element_type=f32) for i in range(n_img)]
    return parts[0] if n_img == 1 else jnp.concatenate(parts, axis=1)

  def conv3x3(x, w_ref, mask_ref, row_w):
    # x: (Cin, M) f32.  Build a (9*Cin, M) im2col slab from lane shifts
    # (pltpu.roll, semantics = jnp.roll) + per-tap validity masks, then run one
    # K=9*Cin GEMM with the host-flattened weight (Cout, 9*Cin).
    m = x.shape[1]
    taps = []
    tap = 0
    for dy in (-1, 0, 1):
      for dx in (-1, 0, 1):
        off = dy * row_w + dx
        shifted = x if off == 0 else pltpu.roll(x, shift=(-off) % m, axis=1)
        if not (dy == 0 and dx == 0):
          shifted = shifted * mask_ref[tap:tap + 1, :]
        taps.append(shifted)
        tap += 1
    slab = jnp.concatenate(taps, axis=0).astype(bf16)   # (9*Cin, M)
    return jnp.dot(w_ref[...], slab, preferred_element_type=f32)

  def octave_1x1(h, l, whh_ref, whl_ref, wl_ref):
    # l2h / l2l merged along Cout rows (host-side concat); split in-kernel.
    l_both = mm(wl_ref, l)
    x_l2h, x_l2l = l_both[:c_h_out], l_both[c_h_out:]
    y_h = mm(whh_ref, h) + upsample(x_l2h)
    y_l = mm(whl_ref, pool(h)) + x_l2l
    return y_h, y_l

  def octave_3x3(h, l, whh_ref, whl_ref, wl_ref):
    l_both = conv3x3(l, wl_ref, mask_l_ref, w_lo)
    x_l2h, x_l2l = l_both[:c_h_out], l_both[c_h_out:]
    y_h = conv3x3(h, whh_ref, mask_h_ref, w_hi) + upsample(x_l2h)
    y_l = conv3x3(pool(h), whl_ref, mask_l_ref, w_lo) + x_l2l
    return y_h, y_l

  # ----- ocb1: OctaveCBR 1x1 -----
  h, l = octave_1x1(xh_ref[...], xl_ref[...], w1hh_ref, w1hl_ref, w1l_ref)
  h = bn(h, g1h_ref, b1h_ref, True)
  l = bn(l, g1l_ref, b1l_ref, True)

  # ----- ocb2: OctaveCBR 3x3 -----
  h, l = octave_3x3(h, l, w2hh_ref, w2hl_ref, w2l_ref)
  h = bn(h, g2h_ref, b2h_ref, True)
  l = bn(l, g2l_ref, b2l_ref, True)

  # ----- ocb3: OctaveCB 1x1 (no activation) -----
  h, l = octave_1x1(h, l, w3hh_ref, w3hl_ref, w3l_ref)
  h = bn(h, g3h_ref, b3h_ref, False)
  l = bn(l, g3l_ref, b3l_ref, False)

  # ----- residual + Mish (lane-dense stores) -----
  oh_ref[...] = mish(h + xh_ref[...])
  ol_ref[...] = mish(l + xl_ref[...])


# ------------------------------ host-side helpers ------------------------------

def _build_pool_up(H, W):
  """Per-image AvgPool2x2 / nearest-Upsample2x as (HW,HlWl)/(HlWl,HW) operators."""
  Hl, Wl = H // 2, W // 2
  HW, HlWl = H * W, Hl * Wl
  idx = jnp.arange(HW)
  h = idx // W
  w = idx % W
  low = (h // 2) * Wl + (w // 2)
  pool = jnp.zeros((HW, HlWl), jnp.float32).at[idx, low].set(0.25)
  up = jnp.zeros((HlWl, HW), jnp.float32).at[low, idx].set(1.0)
  return pool.astype(jnp.bfloat16), up.astype(jnp.bfloat16)


def _build_masks(n, H, W):
  """(9, n*H*W) per-tap validity masks (same-padding) in (b, h, w) lane order."""
  M = n * H * W
  idx = jnp.arange(M)
  h = (idx // W) % H
  w = idx % W
  rows = []
  for dy in (-1, 0, 1):
    for dx in (-1, 0, 1):
      valid = ((h + dy >= 0) & (h + dy < H) & (w + dx >= 0) & (w + dx < W))
      rows.append(valid)
  return jnp.stack(rows, axis=0).astype(jnp.float32)


def _prep_1x1(wp):
  f = lambda w: w[:, :, 0, 0]                                  # (Cout, Cin)
  w_hh = f(wp["h2h"])
  w_hl = f(wp["h2l"])
  w_l = jnp.concatenate([f(wp["l2h"]), f(wp["l2l"])], axis=0)  # merged Cout rows
  return tuple(x.astype(jnp.bfloat16) for x in (w_hh, w_hl, w_l))


def _prep_3x3(wp):
  # (Cout, Cin, 3, 3) -> (Cout, 9*Cin), column order = (dy, dx, cin)
  f = lambda w: jnp.transpose(w, (0, 2, 3, 1)).reshape(w.shape[0], -1)
  w_hh = f(wp["h2h"])
  w_hl = f(wp["h2l"])
  w_l = jnp.concatenate([f(wp["l2h"]), f(wp["l2l"])], axis=0)  # merged Cout rows
  return tuple(x.astype(jnp.bfloat16) for x in (w_hh, w_hl, w_l))


def _vmem_limit_bytes():
  # Derive from hardware (v7x: 64 MiB physical VMEM vs 128 MiB on v5e/v6e).
  default_cap = 128 * 1024 * 1024
  try:
    cap = int(getattr(pltpu.get_tpu_info(), "vmem_capacity_bytes", default_cap))
  except Exception:  # pragma: no cover - defensive fallback
    cap = default_cap
  return min(64 * 1024 * 1024, max(cap // 2, 16 * 1024 * 1024))


def bottleneck_forward(x_h_nchw, x_l_nchw, params):
  n, c_h, H, W = x_h_nchw.shape
  _, c_l, Hl, Wl = x_l_nchw.shape
  Mh, Ml = n * H * W, n * Hl * Wl

  # NCHW -> lane-dense (C, N*H*W)
  xh = jnp.transpose(x_h_nchw, (1, 0, 2, 3)).reshape(c_h, Mh).astype(jnp.float32)
  xl = jnp.transpose(x_l_nchw, (1, 0, 2, 3)).reshape(c_l, Ml).astype(jnp.float32)

  pool_img, up_img = _build_pool_up(H, W)
  mask_h = _build_masks(n, H, W)
  mask_l = _build_masks(n, Hl, Wl)

  w1hh, w1hl, w1l = _prep_1x1(params["ocb1"]["conv"])
  w2hh, w2hl, w2l = _prep_3x3(params["ocb2"]["conv"])
  w3hh, w3hl, w3l = _prep_1x1(params["ocb3"]["conv"])
  c_h_out = w1hh.shape[0]
  c_l_out = w1hl.shape[0]

  def bn_p(p):
    return (p["gamma"].reshape(-1, 1).astype(jnp.float32),
            p["beta"].reshape(-1, 1).astype(jnp.float32))

  g1h, b1h = bn_p(params["ocb1"]["bn_h"]); g1l, b1l = bn_p(params["ocb1"]["bn_l"])
  g2h, b2h = bn_p(params["ocb2"]["bn_h"]); g2l, b2l = bn_p(params["ocb2"]["bn_l"])
  g3h, b3h = bn_p(params["ocb3"]["bn_h"]); g3l, b3l = bn_p(params["ocb3"]["bn_l"])

  kernel = functools.partial(
      _bottleneck_kernel,
      n_img=n, hw_hi=H * W, hw_lo=Hl * Wl,
      w_hi=W, w_lo=Wl, c_h_out=c_h_out)

  # Alias residual inputs onto outputs only when the shapes truly match
  # (downsample=None implies c_out == c_in in the reproduced config).
  io_alias = {}
  if c_h_out == c_h:
    io_alias[0] = 0
  if c_l_out == c_l:
    io_alias[1] = 1

  out_h, out_l = pl.pallas_call(
      kernel,
      out_shape=(jax.ShapeDtypeStruct((c_h_out, Mh), jnp.float32),
                 jax.ShapeDtypeStruct((c_l_out, Ml), jnp.float32)),
      input_output_aliases=io_alias,
      compiler_params=pltpu.CompilerParams(vmem_limit_bytes=_vmem_limit_bytes()),
  )(xh, xl, pool_img, up_img, mask_h, mask_l,
    w1hh, w1hl, w1l, g1h, b1h, g1l, b1l,
    w2hh, w2hl, w2l, g2h, b2h, g2l, b2l,
    w3hh, w3hl, w3l, g3h, b3h, g3l, b3l)

  out_h = out_h.reshape(c_h_out, n, H, W).transpose(1, 0, 2, 3)
  out_l = out_l.reshape(c_l_out, n, Hl, Wl).transpose(1, 0, 2, 3)
  return out_h, out_l


# ------------------------------ parameter creation ------------------------------

def init_params(key, inplanes, planes, alpha=0.5):
  c_h_in = inplanes - int(alpha * inplanes)
  c_l_in = int(alpha * inplanes)
  c_h_out = planes - int(alpha * planes)
  c_l_out = int(alpha * planes)

  def conv_w(k, cout, cin, ks):
    return jax.random.normal(k, (cout, cin, ks, ks), jnp.float32) * 0.2

  def bn_p(k, c):
    kg, kb = jax.random.split(k)
    return {"gamma": 1.0 + 0.1 * jax.random.normal(kg, (c,), jnp.float32),
            "beta": 0.1 * jax.random.normal(kb, (c,), jnp.float32)}

  def block(k, cin_h, cin_l, cout_h, cout_l, ks):
    k0, k1, k2, k3, k4, k5 = jax.random.split(k, 6)
    return {
        "conv": {"h2h": conv_w(k0, cout_h, cin_h, ks),
                 "l2h": conv_w(k1, cout_h, cin_l, ks),
                 "l2l": conv_w(k2, cout_l, cin_l, ks),
                 "h2l": conv_w(k3, cout_l, cin_h, ks)},
        "bn_h": bn_p(k4, cout_h),
        "bn_l": bn_p(k5, cout_l),
    }

  k1, k2, k3 = jax.random.split(key, 3)
  return {
      "ocb1": block(k1, c_h_in, c_l_in, c_h_out, c_l_out, 1),
      "ocb2": block(k2, c_h_out, c_l_out, c_h_out, c_l_out, 3),
      "ocb3": block(k3, c_h_out, c_l_out, c_h_out, c_l_out, 1),
  }


# -------------------------- pure-JAX reference (NCHW) ---------------------------

def _ref_conv(x, w, pad):
  return jax.lax.conv_general_dilated(
      x, w, window_strides=(1, 1), padding=((pad, pad), (pad, pad)),
      dimension_numbers=("NCHW", "OIHW", "NCHW"),
      precision=jax.lax.Precision.HIGHEST)


def _ref_pool(x):
  n, c, h, w = x.shape
  return x.reshape(n, c, h // 2, 2, w // 2, 2).mean(axis=(3, 5))


def _ref_up(x):
  return jnp.repeat(jnp.repeat(x, 2, axis=2), 2, axis=3)


def _ref_bn(x, gamma, beta):
  mean = x.mean(axis=(0, 2, 3), keepdims=True)
  var = ((x - mean) ** 2).mean(axis=(0, 2, 3), keepdims=True)
  return ((x - mean) / jnp.sqrt(var + EPS) * gamma.reshape(1, -1, 1, 1)
          + beta.reshape(1, -1, 1, 1))


def _ref_mish(x):
  return x * jnp.tanh(jax.nn.softplus(x))


def _ref_octave(x_h, x_l, wp, pad):
  x_h2l = _ref_pool(x_h)
  x_h2h = _ref_conv(x_h, wp["h2h"], pad)
  x_l2h = _ref_conv(x_l, wp["l2h"], pad)
  x_l2l = _ref_conv(x_l, wp["l2l"], pad)
  x_h2l = _ref_conv(x_h2l, wp["h2l"], pad)
  x_l2h = _ref_up(x_l2h)
  return x_l2h + x_h2h, x_h2l + x_l2l


def _ref_cb(x_h, x_l, p, pad, act):
  h, l = _ref_octave(x_h, x_l, p["conv"], pad)
  h = _ref_bn(h, p["bn_h"]["gamma"], p["bn_h"]["beta"])
  l = _ref_bn(l, p["bn_l"]["gamma"], p["bn_l"]["beta"])
  if act:
    h, l = _ref_mish(h), _ref_mish(l)
  return h, l


def bottleneck_reference(x_h, x_l, params):
  x_h_res, x_l_res = x_h, x_l
  h, l = _ref_cb(x_h, x_l, params["ocb1"], 0, True)
  h, l = _ref_cb(h, l, params["ocb2"], 1, True)
  h, l = _ref_cb(h, l, params["ocb3"], 0, False)
  return _ref_mish(h + x_h_res), _ref_mish(l + x_l_res)


# ------------------------------------- main --------------------------------------

if __name__ == "__main__":
  key = jax.random.PRNGKey(0)
  kx, kp = jax.random.split(key)

  N, inplanes, planes, H, W = 2, 8, 8, 16, 16
  alpha = 0.5
  c_h = inplanes - int(alpha * inplanes)   # 4 high-frequency channels
  c_l = int(alpha * inplanes)              # 4 low-frequency channels

  kh, kl = jax.random.split(kx)
  x_h = jax.random.normal(kh, (N, c_h, H, W), jnp.float32)
  x_l = jax.random.normal(kl, (N, c_l, H // 2, W // 2), jnp.float32)

  params = init_params(kp, inplanes, planes, alpha)

  fwd = jax.jit(bottleneck_forward)
  out_h, out_l = fwd(x_h, x_l, params)
  jax.block_until_ready((out_h, out_l))

  ref_h, ref_l = bottleneck_reference(x_h, x_l, params)
  assert out_h.shape == ref_h.shape and out_l.shape == ref_l.shape
  assert bool(jnp.allclose(out_h, ref_h, atol=5e-2, rtol=5e-2))
  assert bool(jnp.allclose(out_l, ref_l, atol=5e-2, rtol=5e-2))

  print("KERNEL_OK")
</pallas_src>

<mosaic_0001>
module attributes {stable_mosaic.version = 11 : i64} {
  func.func @_bottleneck_kernel(%arg0: memref<4x512xf32, #tpu.memory_space<vmem>>, %arg1: memref<4x128xf32, #tpu.memory_space<vmem>>, %arg2: memref<256x64xbf16, #tpu.memory_space<vmem>>, %arg3: memref<64x256xbf16, #tpu.memory_space<vmem>>, %arg4: memref<9x512xf32, #tpu.memory_space<vmem>>, %arg5: memref<9x128xf32, #tpu.memory_space<vmem>>, %arg6: memref<4x4xbf16, #tpu.memory_space<vmem>>, %arg7: memref<4x4xbf16, #tpu.memory_space<vmem>>, %arg8: memref<8x4xbf16, #tpu.memory_space<vmem>>, %arg9: memref<4x1xf32, #tpu.memory_space<vmem>>, %arg10: memref<4x1xf32, #tpu.memory_space<vmem>>, %arg11: memref<4x1xf32, #tpu.memory_space<vmem>>, %arg12: memref<4x1xf32, #tpu.memory_space<vmem>>, %arg13: memref<4x36xbf16, #tpu.memory_space<vmem>>, %arg14: memref<4x36xbf16, #tpu.memory_space<vmem>>, %arg15: memref<8x36xbf16, #tpu.memory_space<vmem>>, %arg16: memref<4x1xf32, #tpu.memory_space<vmem>>, %arg17: memref<4x1xf32, #tpu.memory_space<vmem>>, %arg18: memref<4x1xf32, #tpu.memory_space<vmem>>, %arg19: memref<4x1xf32, #tpu.memory_space<vmem>>, %arg20: memref<4x4xbf16, #tpu.memory_space<vmem>>, %arg21: memref<4x4xbf16, #tpu.memory_space<vmem>>, %arg22: memref<8x4xbf16, #tpu.memory_space<vmem>>, %arg23: memref<4x1xf32, #tpu.memory_space<vmem>>, %arg24: memref<4x1xf32, #tpu.memory_space<vmem>>, %arg25: memref<4x1xf32, #tpu.memory_space<vmem>>, %arg26: memref<4x1xf32, #tpu.memory_space<vmem>>, %arg27: memref<4x512xf32, #tpu.memory_space<vmem>>, %arg28: memref<4x128xf32, #tpu.memory_space<vmem>>) attributes {dimension_semantics = [], scalar_prefetch = 0 : i64, scratch_operands = 0 : i64, tpu.core_type = #tpu.core_type<tc>} {
    %c0 = arith.constant 0 : index
    %c0_0 = arith.constant 0 : index
    %0 = vector.load %arg0[%c0, %c0_0] : memref<4x512xf32, #tpu.memory_space<vmem>>, vector<4x512xf32>
    %c0_1 = arith.constant 0 : index
    %c0_2 = arith.constant 0 : index
    %1 = vector.load %arg1[%c0_1, %c0_2] : memref<4x128xf32, #tpu.memory_space<vmem>>, vector<4x128xf32>
    %c0_3 = arith.constant 0 : index
    %c0_4 = arith.constant 0 : index
    %2 = vector.load %arg8[%c0_3, %c0_4] : memref<8x4xbf16, #tpu.memory_space<vmem>>, vector<8x4xbf16>
    %3 = arith.truncf %1 : vector<4x128xf32> to vector<4x128xbf16>
    %cst = arith.constant dense<0.000000e+00> : vector<8x128xf32>
    %4 = tpu.matmul %2, %3, %cst {dimension_numbers = #tpu.dot_dimension_numbers<[1], [0], [0], [1], [0, 0, 1, 1], [], []>} : vector<8x4xbf16>, vector<4x128xbf16>, vector<8x128xf32> -> vector<8x128xf32>
    %5 = vector.extract_strided_slice %4 {offsets = [0, 0], sizes = [4, 128], strides = [1, 1]} : vector<8x128xf32> to vector<4x128xf32>
    %6 = vector.extract_strided_slice %4 {offsets = [4, 0], sizes = [4, 128], strides = [1, 1]} : vector<8x128xf32> to vector<4x128xf32>
    %c0_5 = arith.constant 0 : index
    %c0_6 = arith.constant 0 : index
    %7 = vector.load %arg6[%c0_5, %c0_6] : memref<4x4xbf16, #tpu.memory_space<vmem>>, vector<4x4xbf16>
    %8 = arith.truncf %0 : vector<4x512xf32> to vector<4x512xbf16>
    %cst_7 = arith.constant dense<0.000000e+00> : vector<4x512xf32>
    %9 = tpu.matmul %7, %8, %cst_7 {dimension_numbers = #tpu.dot_dimension_numbers<[1], [0], [0], [1], [0, 0, 1, 1], [], []>} : vector<4x4xbf16>, vector<4x512xbf16>, vector<4x512xf32> -> vector<4x512xf32>
    %10 = arith.truncf %5 : vector<4x128xf32> to vector<4x128xbf16>
    %11 = vector.extract_strided_slice %10 {offsets = [0, 0], sizes = [4, 64], strides = [1, 1]} : vector<4x128xbf16> to vector<4x64xbf16>
    %c0_8 = arith.constant 0 : index
    %c0_9 = arith.constant 0 : index
    %12 = vector.load %arg3[%c0_8, %c0_9] : memref<64x256xbf16, #tpu.memory_space<vmem>>, vector<64x256xbf16>
    %cst_10 = arith.constant dense<0.000000e+00> : vector<4x256xf32>
    %13 = tpu.matmul %11, %12, %cst_10 {dimension_numbers = #tpu.dot_dimension_numbers<[1], [0], [0], [1], [0, 0, 1, 1], [], []>} : vector<4x64xbf16>, vector<64x256xbf16>, vector<4x256xf32> -> vector<4x256xf32>
    %14 = vector.extract_strided_slice %10 {offsets = [0, 64], sizes = [4, 64], strides = [1, 1]} : vector<4x128xbf16> to vector<4x64xbf16>
    %c0_11 = arith.constant 0 : index
    %c0_12 = arith.constant 0 : index
    %15 = vector.load %arg3[%c0_11, %c0_12] : memref<64x256xbf16, #tpu.memory_space<vmem>>, vector<64x256xbf16>
    %cst_13 = arith.constant dense<0.000000e+00> : vector<4x256xf32>
    %16 = tpu.matmul %14, %15, %cst_13 {dimension_numbers = #tpu.dot_dimension_numbers<[1], [0], [0], [1], [0, 0, 1, 1], [], []>} : vector<4x64xbf16>, vector<64x256xbf16>, vector<4x256xf32> -> vector<4x256xf32>
    %17 = tpu.concatenate %13, %16 in 1 : vector<4x256xf32>, vector<4x256xf32> -> vector<4x512xf32>
    %18 = arith.addf %9, %17 : vector<4x512xf32>
    %19 = arith.truncf %0 : vector<4x512xf32> to vector<4x512xbf16>
    %20 = vector.extract_strided_slice %19 {offsets = [0, 0], sizes = [4, 256], strides = [1, 1]} : vector<4x512xbf16> to vector<4x256xbf16>
    %c0_14 = arith.constant 0 : index
    %c0_15 = arith.constant 0 : index
    %21 = vector.load %arg2[%c0_14, %c0_15] : memref<256x64xbf16, #tpu.memory_space<vmem>>, vector<256x64xbf16>
    %cst_16 = arith.constant dense<0.000000e+00> : vector<4x64xf32>
    %22 = tpu.matmul %20, %21, %cst_16 {dimension_numbers = #tpu.dot_dimension_numbers<[1], [0], [0], [1], [0, 0, 1, 1], [], []>} : vector<4x256xbf16>, vector<256x64xbf16>, vector<4x64xf32> -> vector<4x64xf32>
    %23 = vector.extract_strided_slice %19 {offsets = [0, 256], sizes = [4, 256], strides = [1, 1]} : vector<4x512xbf16> to vector<4x256xbf16>
    %c0_17 = arith.constant 0 : index
    %c0_18 = arith.constant 0 : index
    %24 = vector.load %arg2[%c0_17, %c0_18] : memref<256x64xbf16, #tpu.memory_space<vmem>>, vector<256x64xbf16>
    %cst_19 = arith.constant dense<0.000000e+00> : vector<4x64xf32>
    %25 = tpu.matmul %23, %24, %cst_19 {dimension_numbers = #tpu.dot_dimension_numbers<[1], [0], [0], [1], [0, 0, 1, 1], [], []>} : vector<4x256xbf16>, vector<256x64xbf16>, vector<4x64xf32> -> vector<4x64xf32>
    %26 = tpu.concatenate %22, %25 in 1 : vector<4x64xf32>, vector<4x64xf32> -> vector<4x128xf32>
    %c0_20 = arith.constant 0 : index
    %c0_21 = arith.constant 0 : index
    %27 = vector.load %arg7[%c0_20, %c0_21] : memref<4x4xbf16, #tpu.memory_space<vmem>>, vector<4x4xbf16>
    %28 = arith.truncf %26 : vector<4x128xf32> to vector<4x128xbf16>
    %cst_22 = arith.constant dense<0.000000e+00> : vector<4x128xf32>
    %29 = tpu.matmul %27, %28, %cst_22 {dimension_numbers = #tpu.dot_dimension_numbers<[1], [0], [0], [1], [0, 0, 1, 1], [], []>} : vector<4x4xbf16>, vector<4x128xbf16>, vector<4x128xf32> -> vector<4x128xf32>
    %30 = arith.addf %29, %6 : vector<4x128xf32>
    %cst_23 = arith.constant dense<0.000000e+00> : vector<4xf32>
    %31 = vector.multi_reduction <add>, %18, %cst_23 [1] : vector<4x512xf32> to vector<4xf32>
    %32 = vector.shape_cast %31 : vector<4xf32> to vector<4x1xf32>
    %cst_24 = arith.constant 0.001953125 : f32
    %33 = vector.broadcast %cst_24 : f32 to vector<4x1xf32>
    %34 = arith.mulf %32, %33 : vector<4x1xf32>
    %35 = arith.mulf %18, %18 : vector<4x512xf32>
    %cst_25 = arith.constant dense<0.000000e+00> : vector<4xf32>
    %36 = vector.multi_reduction <add>, %35, %cst_25 [1] : vector<4x512xf32> to vector<4xf32>
    %37 = vector.shape_cast %36 : vector<4xf32> to vector<4x1xf32>
    %cst_26 = arith.constant 0.001953125 : f32
    %38 = vector.broadcast %cst_26 : f32 to vector<4x1xf32>
    %39 = arith.mulf %37, %38 : vector<4x1xf32>
    %40 = arith.mulf %34, %34 : vector<4x1xf32>
    %41 = arith.subf %39, %40 : vector<4x1xf32>
    %c0_27 = arith.constant 0 : index
    %c0_28 = arith.constant 0 : index
    %42 = vector.load %arg9[%c0_27, %c0_28] : memref<4x1xf32, #tpu.memory_space<vmem>>, vector<4x1xf32>
    %cst_29 = arith.constant 9.99999974E-6 : f32
    %43 = vector.broadcast %cst_29 : f32 to vector<4x1xf32>
    %44 = arith.addf %41, %43 : vector<4x1xf32>
    %45 = math.rsqrt %44 : vector<4x1xf32>
    %46 = arith.mulf %42, %45 : vector<4x1xf32>
    %47 = vector.broadcast %34 : vector<4x1xf32> to vector<4x512xf32>
    %48 = arith.subf %18, %47 : vector<4x512xf32>
    %49 = vector.broadcast %46 : vector<4x1xf32> to vector<4x512xf32>
    %50 = arith.mulf %48, %49 : vector<4x512xf32>
    %c0_30 = arith.constant 0 : index
    %c0_31 = arith.constant 0 : index
    %51 = vector.load %arg10[%c0_30, %c0_31] : memref<4x1xf32, #tpu.memory_space<vmem>>, vector<4x1xf32>
    %52 = vector.broadcast %51 : vector<4x1xf32> to vector<4x512xf32>
    %53 = arith.addf %50, %52 : vector<4x512xf32>
    %cst_32 = arith.constant 2.000000e+01 : f32
    %54 = vector.broadcast %cst_32 : f32 to vector<4x512xf32>
    %55 = arith.minimumf %53, %54 : vector<4x512xf32>
    %56 = math.exp %55 : vector<4x512xf32>
    %cst_33 = arith.constant 1.000000e+00 : f32
    %57 = vector.broadcast %cst_33 : f32 to vector<4x512xf32>
    %58 = arith.addf %57, %56 : vector<4x512xf32>
    %cst_34 = arith.constant 1.000000e+00 : f32
    %59 = vector.broadcast %cst_34 : f32 to vector<4x512xf32>
    %60 = arith.addf %59, %56 : vector<4x512xf32>
    %61 = arith.mulf %58, %60 : vector<4x512xf32>
    %cst_35 = arith.constant 1.000000e+00 : f32
    %62 = vector.broadcast %cst_35 : f32 to vector<4x512xf32>
    %63 = arith.subf %61, %62 : vector<4x512xf32>
    %64 = arith.mulf %53, %63 : vector<4x512xf32>
    %cst_36 = arith.constant 1.000000e+00 : f32
    %65 = vector.broadcast %cst_36 : f32 to vector<4x512xf32>
    %66 = arith.addf %61, %65 : vector<4x512xf32>
    %67 = tpu.reciprocal %66 {approx = true} : vector<4x512xf32> -> vector<4x512xf32>
    %68 = arith.mulf %64, %67 : vector<4x512xf32>
    %cst_37 = arith.constant dense<0.000000e+00> : vector<4xf32>
    %69 = vector.multi_reduction <add>, %30, %cst_37 [1] : vector<4x128xf32> to vector<4xf32>
    %70 = vector.shape_cast %69 : vector<4xf32> to vector<4x1xf32>
    %cst_38 = arith.constant 7.812500e-03 : f32
    %71 = vector.broadcast %cst_38 : f32 to vector<4x1xf32>
    %72 = arith.mulf %70, %71 : vector<4x1xf32>
    %73 = arith.mulf %30, %30 : vector<4x128xf32>
    %cst_39 = arith.constant dense<0.000000e+00> : vector<4xf32>
    %74 = vector.multi_reduction <add>, %73, %cst_39 [1] : vector<4x128xf32> to vector<4xf32>
    %75 = vector.shape_cast %74 : vector<4xf32> to vector<4x1xf32>
    %cst_40 = arith.constant 7.812500e-03 : f32
    %76 = vector.broadcast %cst_40 : f32 to vector<4x1xf32>
    %77 = arith.mulf %75, %76 : vector<4x1xf32>
    %78 = arith.mulf %72, %72 : vector<4x1xf32>
    %79 = arith.subf %77, %78 : vector<4x1xf32>
    %c0_41 = arith.constant 0 : index
    %c0_42 = arith.constant 0 : index
    %80 = vector.load %arg11[%c0_41, %c0_42] : memref<4x1xf32, #tpu.memory_space<vmem>>, vector<4x1xf32>
    %cst_43 = arith.constant 9.99999974E-6 : f32
    %81 = vector.broadcast %cst_43 : f32 to vector<4x1xf32>
    %82 = arith.addf %79, %81 : vector<4x1xf32>
    %83 = math.rsqrt %82 : vector<4x1xf32>
    %84 = arith.mulf %80, %83 : vector<4x1xf32>
    %85 = vector.broadcast %72 : vector<4x1xf32> to vector<4x128xf32>
    %86 = arith.subf %30, %85 : vector<4x128xf32>
    %87 = vector.broadcast %84 : vector<4x1xf32> to vector<4x128xf32>
    %88 = arith.mulf %86, %87 : vector<4x128xf32>
    %c0_44 = arith.constant 0 : index
    %c0_45 = arith.constant 0 : index
    %89 = vector.load %arg12[%c0_44, %c0_45] : memref<4x1xf32, #tpu.memory_space<vmem>>, vector<4x1xf32>
    %90 = vector.broadcast %89 : vector<4x1xf32> to vector<4x128xf32>
    %91 = arith.addf %88, %90 : vector<4x128xf32>
    %cst_46 = arith.constant 2.000000e+01 : f32
    %92 = vector.broadcast %cst_46 : f32 to vector<4x128xf32>
    %93 = arith.minimumf %91, %92 : vector<4x128xf32>
    %94 = math.exp %93 : vector<4x128xf32>
    %cst_47 = arith.constant 1.000000e+00 : f32
    %95 = vector.broadcast %cst_47 : f32 to vector<4x128xf32>
    %96 = arith.addf %95, %94 : vector<4x128xf32>
    %cst_48 = arith.constant 1.000000e+00 : f32
    %97 = vector.broadcast %cst_48 : f32 to vector<4x128xf32>
    %98 = arith.addf %97, %94 : vector<4x128xf32>
    %99 = arith.mulf %96, %98 : vector<4x128xf32>
    %cst_49 = arith.constant 1.000000e+00 : f32
    %100 = vector.broadcast %cst_49 : f32 to vector<4x128xf32>
    %101 = arith.subf %99, %100 : vector<4x128xf32>
    %102 = arith.mulf %91, %101 : vector<4x128xf32>
    %cst_50 = arith.constant 1.000000e+00 : f32
    %103 = vector.broadcast %cst_50 : f32 to vector<4x128xf32>
    %104 = arith.addf %99, %103 : vector<4x128xf32>
    %105 = tpu.reciprocal %104 {approx = true} : vector<4x128xf32> -> vector<4x128xf32>
    %106 = arith.mulf %102, %105 : vector<4x128xf32>
    %c9_i32 = arith.constant 9 : i32
    %107 = tpu.dynamic_rotate %106 by %c9_i32 dim 1 : vector<4x128xf32>, i32 -> vector<4x128xf32>
    %c0_51 = arith.constant 0 : index
    %c0_52 = arith.constant 0 : index
    %108 = vector.load %arg5[%c0_51, %c0_52] : memref<9x128xf32, #tpu.memory_space<vmem>>, vector<1x128xf32>
    %109 = vector.broadcast %108 : vector<1x128xf32> to vector<4x128xf32>
    %110 = arith.mulf %107, %109 : vector<4x128xf32>
    %c8_i32 = arith.constant 8 : i32
    %111 = tpu.dynamic_rotate %106 by %c8_i32 dim 1 : vector<4x128xf32>, i32 -> vector<4x128xf32>
    %c1 = arith.constant 1 : index
    %c0_53 = arith.constant 0 : index
    %112 = vector.load %arg5[%c1, %c0_53] : memref<9x128xf32, #tpu.memory_space<vmem>>, vector<1x128xf32>
    %113 = vector.broadcast %112 : vector<1x128xf32> to vector<4x128xf32>
    %114 = arith.mulf %111, %113 : vector<4x128xf32>
    %c7_i32 = arith.constant 7 : i32
    %115 = tpu.dynamic_rotate %106 by %c7_i32 dim 1 : vector<4x128xf32>, i32 -> vector<4x128xf32>
    %c2 = arith.constant 2 : index
    %c0_54 = arith.constant 0 : index
    %116 = vector.load %arg5[%c2, %c0_54] : memref<9x128xf32, #tpu.memory_space<vmem>>, vector<1x128xf32>
    %117 = vector.broadcast %116 : vector<1x128xf32> to vector<4x128xf32>
    %118 = arith.mulf %115, %117 : vector<4x128xf32>
    %c1_i32 = arith.constant 1 : i32
    %119 = tpu.dynamic_rotate %106 by %c1_i32 dim 1 : vector<4x128xf32>, i32 -> vector<4x128xf32>
    %c3 = arith.constant 3 : index
    %c0_55 = arith.constant 0 : index
    %120 = vector.load %arg5[%c3, %c0_55] : memref<9x128xf32, #tpu.memory_space<vmem>>, vector<1x128xf32>
    %121 = vector.broadcast %120 : vector<1x128xf32> to vector<4x128xf32>
    %122 = arith.mulf %119, %121 : vector<4x128xf32>
    %c127_i32 = arith.constant 127 : i32
    %123 = tpu.dynamic_rotate %106 by %c127_i32 dim 1 : vector<4x128xf32>, i32 -> vector<4x128xf32>
    %c5 = arith.constant 5 : index
    %c0_56 = arith.constant 0 : index
    %124 = vector.load %arg5[%c5, %c0_56] : memref<9x128xf32, #tpu.memory_space<vmem>>, vector<1x128xf32>
    %125 = vector.broadcast %124 : vector<1x128xf32> to vector<4x128xf32>
    %126 = arith.mulf %123, %125 : vector<4x128xf32>
    %c121_i32 = arith.constant 121 : i32
    %127 = tpu.dynamic_rotate %106 by %c121_i32 dim 1 : vector<4x128xf32>, i32 -> vector<4x128xf32>
    %c6 = arith.constant 6 : index
    %c0_57 = arith.constant 0 : index
    %128 = vector.load %arg5[%c6, %c0_57] : memref<9x128xf32, #tpu.memory_space<vmem>>, vector<1x128xf32>
    %129 = vector.broadcast %128 : vector<1x128xf32> to vector<4x128xf32>
    %130 = arith.mulf %127, %129 : vector<4x128xf32>
    %c120_i32 = arith.constant 120 : i32
    %131 = tpu.dynamic_rotate %106 by %c120_i32 dim 1 : vector<4x128xf32>, i32 -> vector<4x128xf32>
    %c7 = arith.constant 7 : index
    %c0_58 = arith.constant 0 : index
    %132 = vector.load %arg5[%c7, %c0_58] : memref<9x128xf32, #tpu.memory_space<vmem>>, vector<1x128xf32>
    %133 = vector.broadcast %132 : vector<1x128xf32> to vector<4x128xf32>
    %134 = arith.mulf %131, %133 : vector<4x128xf32>
    %c119_i32 = arith.constant 119 : i32
    %135 = tpu.dynamic_rotate %106 by %c119_i32 dim 1 : vector<4x128xf32>, i32 -> vector<4x128xf32>
    %c8 = arith.constant 8 : index
    %c0_59 = arith.constant 0 : index
    %136 = vector.load %arg5[%c8, %c0_59] : memref<9x128xf32, #tpu.memory_space<vmem>>, vector<1x128xf32>
    %137 = vector.broadcast %136 : vector<1x128xf32> to vector<4x128xf32>
    %138 = arith.mulf %135, %137 : vector<4x128xf32>
    %139 = tpu.concatenate %110, %114, %118, %122, %106, %126, %130, %134, %138 in 0 : vector<4x128xf32>, vector<4x128xf32>, vector<4x128xf32>, vector<4x128xf32>, vector<4x128xf32>, vector<4x128xf32>, vector<4x128xf32>, vector<4x128xf32>, vector<4x128xf32> -> vector<36x128xf32>
    %140 = arith.truncf %139 : vector<36x128xf32> to vector<36x128xbf16>
    %c0_60 = arith.constant 0 : index
    %c0_61 = arith.constant 0 : index
    %141 = vector.load %arg15[%c0_60, %c0_61] : memref<8x36xbf16, #tpu.memory_space<vmem>>, vector<8x36xbf16>
    %cst_62 = arith.constant dense<0.000000e+00> : vector<8x128xf32>
    %142 = tpu.matmul %141, %140, %cst_62 {dimension_numbers = #tpu.dot_dimension_numbers<[1], [0], [0], [1], [0, 0, 1, 1], [], []>} : vector<8x36xbf16>, vector<36x128xbf16>, vector<8x128xf32> -> vector<8x128xf32>
    %143 = vector.extract_strided_slice %142 {offsets = [0, 0], sizes = [4, 128], strides = [1, 1]} : vector<8x128xf32> to vector<4x128xf32>
    %144 = vector.extract_strided_slice %142 {offsets = [4, 0], sizes = [4, 128], strides = [1, 1]} : vector<8x128xf32> to vector<4x128xf32>
    %c17_i32 = arith.constant 17 : i32
    %145 = tpu.dynamic_rotate %68 by %c17_i32 dim 1 : vector<4x512xf32>, i32 -> vector<4x512xf32>
    %c0_63 = arith.constant 0 : index
    %c0_64 = arith.constant 0 : index
    %146 = vector.load %arg4[%c0_63, %c0_64] : memref<9x512xf32, #tpu.memory_space<vmem>>, vector<1x512xf32>
    %147 = vector.broadcast %146 : vector<1x512xf32> to vector<4x512xf32>
    %148 = arith.mulf %145, %147 : vector<4x512xf32>
    %c16_i32 = arith.constant 16 : i32
    %149 = tpu.dynamic_rotate %68 by %c16_i32 dim 1 : vector<4x512xf32>, i32 -> vector<4x512xf32>
    %c1_65 = arith.constant 1 : index
    %c0_66 = arith.constant 0 : index
    %150 = vector.load %arg4[%c1_65, %c0_66] : memref<9x512xf32, #tpu.memory_space<vmem>>, vector<1x512xf32>
    %151 = vector.broadcast %150 : vector<1x512xf32> to vector<4x512xf32>
    %152 = arith.mulf %149, %151 : vector<4x512xf32>
    %c15_i32 = arith.constant 15 : i32
    %153 = tpu.dynamic_rotate %68 by %c15_i32 dim 1 : vector<4x512xf32>, i32 -> vector<4x512xf32>
    %c2_67 = arith.constant 2 : index
    %c0_68 = arith.constant 0 : index
    %154 = vector.load %arg4[%c2_67, %c0_68] : memref<9x512xf32, #tpu.memory_space<vmem>>, vector<1x512xf32>
    %155 = vector.broadcast %154 : vector<1x512xf32> to vector<4x512xf32>
    %156 = arith.mulf %153, %155 : vector<4x512xf32>
    %c1_i32_69 = arith.constant 1 : i32
    %157 = tpu.dynamic_rotate %68 by %c1_i32_69 dim 1 : vector<4x512xf32>, i32 -> vector<4x512xf32>
    %c3_70 = arith.constant 3 : index
    %c0_71 = arith.constant 0 : index
    %158 = vector.load %arg4[%c3_70, %c0_71] : memref<9x512xf32, #tpu.memory_space<vmem>>, vector<1x512xf32>
    %159 = vector.broadcast %158 : vector<1x512xf32> to vector<4x512xf32>
    %160 = arith.mulf %157, %159 : vector<4x512xf32>
    %c511_i32 = arith.constant 511 : i32
    %161 = tpu.dynamic_rotate %68 by %c511_i32 dim 1 : vector<4x512xf32>, i32 -> vector<4x512xf32>
    %c5_72 = arith.constant 5 : index
    %c0_73 = arith.constant 0 : index
    %162 = vector.load %arg4[%c5_72, %c0_73] : memref<9x512xf32, #tpu.memory_space<vmem>>, vector<1x512xf32>
    %163 = vector.broadcast %162 : vector<1x512xf32> to vector<4x512xf32>
    %164 = arith.mulf %161, %163 : vector<4x512xf32>
    %c497_i32 = arith.constant 497 : i32
    %165 = tpu.dynamic_rotate %68 by %c497_i32 dim 1 : vector<4x512xf32>, i32 -> vector<4x512xf32>
    %c6_74 = arith.constant 6 : index
    %c0_75 = arith.constant 0 : index
    %166 = vector.load %arg4[%c6_74, %c0_75] : memref<9x512xf32, #tpu.memory_space<vmem>>, vector<1x512xf32>
    %167 = vector.broadcast %166 : vector<1x512xf32> to vector<4x512xf32>
    %168 = arith.mulf %165, %167 : vector<4x512xf32>
    %c496_i32 = arith.constant 496 : i32
    %169 = tpu.dynamic_rotate %68 by %c496_i32 dim 1 : vector<4x512xf32>, i32 -> vector<4x512xf32>
    %c7_76 = arith.constant 7 : index
    %c0_77 = arith.constant 0 : index
    %170 = vector.load %arg4[%c7_76, %c0_77] : memref<9x512xf32, #tpu.memory_space<vmem>>, vector<1x512xf32>
    %171 = vector.broadcast %170 : vector<1x512xf32> to vector<4x512xf32>
    %172 = arith.mulf %169, %171 : vector<4x512xf32>
    %c495_i32 = arith.constant 495 : i32
    %173 = tpu.dynamic_rotate %68 by %c495_i32 dim 1 : vector<4x512xf32>, i32 -> vector<4x512xf32>
    %c8_78 = arith.constant 8 : index
    %c0_79 = arith.constant 0 : index
    %174 = vector.load %arg4[%c8_78, %c0_79] : memref<9x512xf32, #tpu.memory_space<vmem>>, vector<1x512xf32>
    %175 = vector.broadcast %174 : vector<1x512xf32> to vector<4x512xf32>
    %176 = arith.mulf %173, %175 : vector<4x512xf32>
    %177 = tpu.concatenate %148, %152, %156, %160, %68, %164, %168, %172, %176 in 0 : vector<4x512xf32>, vector<4x512xf32>, vector<4x512xf32>, vector<4x512xf32>, vector<4x512xf32>, vector<4x512xf32>, vector<4x512xf32>, vector<4x512xf32>, vector<4x512xf32> -> vector<36x512xf32>
    %178 = arith.truncf %177 : vector<36x512xf32> to vector<36x512xbf16>
    %c0_80 = arith.constant 0 : index
    %c0_81 = arith.constant 0 : index
    %179 = vector.load %arg13[%c0_80, %c0_81] : memref<4x36xbf16, #tpu.memory_space<vmem>>, vector<4x36xbf16>
    %cst_82 = arith.constant dense<0.000000e+00> : vector<4x512xf32>
    %180 = tpu.matmul %179, %178, %cst_82 {dimension_numbers = #tpu.dot_dimension_numbers<[1], [0], [0], [1], [0, 0, 1, 1], [], []>} : vector<4x36xbf16>, vector<36x512xbf16>, vector<4x512xf32> -> vector<4x512xf32>
    %181 = arith.truncf %143 : vector<4x128xf32> to vector<4x128xbf16>
    %182 = vector.extract_strided_slice %181 {offsets = [0, 0], sizes = [4, 64], strides = [1, 1]} : vector<4x128xbf16> to vector<4x64xbf16>
    %c0_83 = arith.constant 0 : index
    %c0_84 = arith.constant 0 : index
    %183 = vector.load %arg3[%c0_83, %c0_84] : memref<64x256xbf16, #tpu.memory_space<vmem>>, vector<64x256xbf16>
    %cst_85 = arith.constant dense<0.000000e+00> : vector<4x256xf32>
    %184 = tpu.matmul %182, %183, %cst_85 {dimension_numbers = #tpu.dot_dimension_numbers<[1], [0], [0], [1], [0, 0, 1, 1], [], []>} : vector<4x64xbf16>, vector<64x256xbf16>, vector<4x256xf32> -> vector<4x256xf32>
    %185 = vector.extract_strided_slice %181 {offsets = [0, 64], sizes = [4, 64], strides = [1, 1]} : vector<4x128xbf16> to vector<4x64xbf16>
    %c0_86 = arith.constant 0 : index
    %c0_87 = arith.constant 0 : index
    %186 = vector.load %arg3[%c0_86, %c0_87] : memref<64x256xbf16, #tpu.memory_space<vmem>>, vector<64x256xbf16>
    %cst_88 = arith.constant dense<0.000000e+00> : vector<4x256xf32>
    %187 = tpu.matmul %185, %186, %cst_88 {dimension_numbers = #tpu.dot_dimension_numbers<[1], [0], [0], [1], [0, 0, 1, 1], [], []>} : vector<4x64xbf16>, vector<64x256xbf16>, vector<4x256xf32> -> vector<4x256xf32>
    %188 = tpu.concatenate %184, %187 in 1 : vector<4x256xf32>, vector<4x256xf32> -> vector<4x512xf32>
    %189 = arith.addf %180, %188 : vector<4x512xf32>
    %190 = arith.truncf %68 : vector<4x512xf32> to vector<4x512xbf16>
    %191 = vector.extract_strided_slice %190 {offsets = [0, 0], sizes = [4, 256], strides = [1, 1]} : vector<4x512xbf16> to vector<4x256xbf16>
    %c0_89 = arith.constant 0 : index
    %c0_90 = arith.constant 0 : index
    %192 = vector.load %arg2[%c0_89, %c0_90] : memref<256x64xbf16, #tpu.memory_space<vmem>>, vector<256x64xbf16>
    %cst_91 = arith.constant dense<0.000000e+00> : vector<4x64xf32>
    %193 = tpu.matmul %191, %192, %cst_91 {dimension_numbers = #tpu.dot_dimension_numbers<[1], [0], [0], [1], [0, 0, 1, 1], [], []>} : vector<4x256xbf16>, vector<256x64xbf16>, vector<4x64xf32> -> vector<4x64xf32>
    %194 = vector.extract_strided_slice %190 {offsets = [0, 256], sizes = [4, 256], strides = [1, 1]} : vector<4x512xbf16> to vector<4x256xbf16>
    %c0_92 = arith.constant 0 : index
    %c0_93 = arith.constant 0 : index
    %195 = vector.load %arg2[%c0_92, %c0_93] : memref<256x64xbf16, #tpu.memory_space<vmem>>, vector<256x64xbf16>
    %cst_94 = arith.constant dense<0.000000e+00> : vector<4x64xf32>
    %196 = tpu.matmul %194, %195, %cst_94 {dimension_numbers = #tpu.dot_dimension_numbers<[1], [0], [0], [1], [0, 0, 1, 1], [], []>} : vector<4x256xbf16>, vector<256x64xbf16>, vector<4x64xf32> -> vector<4x64xf32>
    %197 = tpu.concatenate %193, %196 in 1 : vector<4x64xf32>, vector<4x64xf32> -> vector<4x128xf32>
    %c9_i32_95 = arith.constant 9 : i32
    %198 = tpu.dynamic_rotate %197 by %c9_i32_95 dim 1 : vector<4x128xf32>, i32 -> vector<4x128xf32>
    %c0_96 = arith.constant 0 : index
    %c0_97 = arith.constant 0 : index
    %199 = vector.load %arg5[%c0_96, %c0_97] : memref<9x128xf32, #tpu.memory_space<vmem>>, vector<1x128xf32>
    %200 = vector.broadcast %199 : vector<1x128xf32> to vector<4x128xf32>
    %201 = arith.mulf %198, %200 : vector<4x128xf32>
    %c8_i32_98 = arith.constant 8 : i32
    %202 = tpu.dynamic_rotate %197 by %c8_i32_98 dim 1 : vector<4x128xf32>, i32 -> vector<4x128xf32>
    %c1_99 = arith.constant 1 : index
    %c0_100 = arith.constant 0 : index
    %203 = vector.load %arg5[%c1_99, %c0_100] : memref<9x128xf32, #tpu.memory_space<vmem>>, vector<1x128xf32>
    %204 = vector.broadcast %203 : vector<1x128xf32> to vector<4x128xf32>
    %205 = arith.mulf %202, %204 : vector<4x128xf32>
    %c7_i32_101 = arith.constant 7 : i32
    %206 = tpu.dynamic_rotate %197 by %c7_i32_101 dim 1 : vector<4x128xf32>, i32 -> vector<4x128xf32>
    %c2_102 = arith.constant 2 : index
    %c0_103 = arith.constant 0 : index
    %207 = vector.load %arg5[%c2_102, %c0_103] : memref<9x128xf32, #tpu.memory_space<vmem>>, vector<1x128xf32>
    %208 = vector.broadcast %207 : vector<1x128xf32> to vector<4x128xf32>
    %209 = arith.mulf %206, %208 : vector<4x128xf32>
    %c1_i32_104 = arith.constant 1 : i32
    %210 = tpu.dynamic_rotate %197 by %c1_i32_104 dim 1 : vector<4x128xf32>, i32 -> vector<4x128xf32>
    %c3_105 = arith.constant 3 : index
    %c0_106 = arith.constant 0 : index
    %211 = vector.load %arg5[%c3_105, %c0_106] : memref<9x128xf32, #tpu.memory_space<vmem>>, vector<1x128xf32>
    %212 = vector.broadcast %211 : vector<1x128xf32> to vector<4x128xf32>
    %213 = arith.mulf %210, %212 : vector<4x128xf32>
    %c127_i32_107 = arith.constant 127 : i32
    %214 = tpu.dynamic_rotate %197 by %c127_i32_107 dim 1 : vector<4x128xf32>, i32 -> vector<4x128xf32>
    %c5_108 = arith.constant 5 : index
    %c0_109 = arith.constant 0 : index
    %215 = vector.load %arg5[%c5_108, %c0_109] : memref<9x128xf32, #tpu.memory_space<vmem>>, vector<1x128xf32>
    %216 = vector.broadcast %215 : vector<1x128xf32> to vector<4x128xf32>
    %217 = arith.mulf %214, %216 : vector<4x128xf32>
    %c121_i32_110 = arith.constant 121 : i32
    %218 = tpu.dynamic_rotate %197 by %c121_i32_110 dim 1 : vector<4x128xf32>, i32 -> vector<4x128xf32>
    %c6_111 = arith.constant 6 : index
    %c0_112 = arith.constant 0 : index
    %219 = vector.load %arg5[%c6_111, %c0_112] : memref<9x128xf32, #tpu.memory_space<vmem>>, vector<1x128xf32>
    %220 = vector.broadcast %219 : vector<1x128xf32> to vector<4x128xf32>
    %221 = arith.mulf %218, %220 : vector<4x128xf32>
    %c120_i32_113 = arith.constant 120 : i32
    %222 = tpu.dynamic_rotate %197 by %c120_i32_113 dim 1 : vector<4x128xf32>, i32 -> vector<4x128xf32>
    %c7_114 = arith.constant 7 : index
    %c0_115 = arith.constant 0 : index
    %223 = vector.load %arg5[%c7_114, %c0_115] : memref<9x128xf32, #tpu.memory_space<vmem>>, vector<1x128xf32>
    %224 = vector.broadcast %223 : vector<1x128xf32> to vector<4x128xf32>
    %225 = arith.mulf %222, %224 : vector<4x128xf32>
    %c119_i32_116 = arith.constant 119 : i32
    %226 = tpu.dynamic_rotate %197 by %c119_i32_116 dim 1 : vector<4x128xf32>, i32 -> vector<4x128xf32>
    %c8_117 = arith.constant 8 : index
    %c0_118 = arith.constant 0 : index
    %227 = vector.load %arg5[%c8_117, %c0_118] : memref<9x128xf32, #tpu.memory_space<vmem>>, vector<1x128xf32>
    %228 = vector.broadcast %227 : vector<1x128xf32> to vector<4x128xf32>
    %229 = arith.mulf %226, %228 : vector<4x128xf32>
    %230 = tpu.concatenate %201, %205, %209, %213, %197, %217, %221, %225, %229 in 0 : vector<4x128xf32>, vector<4x128xf32>, vector<4x128xf32>, vector<4x128xf32>, vector<4x128xf32>, vector<4x128xf32>, vector<4x128xf32>, vector<4x128xf32>, vector<4x128xf32> -> vector<36x128xf32>
    %231 = arith.truncf %230 : vector<36x128xf32> to vector<36x128xbf16>
    %c0_119 = arith.constant 0 : index
    %c0_120 = arith.constant 0 : index
    %232 = vector.load %arg14[%c0_119, %c0_120] : memref<4x36xbf16, #tpu.memory_space<vmem>>, vector<4x36xbf16>
    %cst_121 = arith.constant dense<0.000000e+00> : vector<4x128xf32>
    %233 = tpu.matmul %232, %231, %cst_121 {dimension_numbers = #tpu.dot_dimension_numbers<[1], [0], [0], [1], [0, 0, 1, 1], [], []>} : vector<4x36xbf16>, vector<36x128xbf16>, vector<4x128xf32> -> vector<4x128xf32>
    %234 = arith.addf %233, %144 : vector<4x128xf32>
    %cst_122 = arith.constant dense<0.000000e+00> : vector<4xf32>
    %235 = vector.multi_reduction <add>, %189, %cst_122 [1] : vector<4x512xf32> to vector<4xf32>
    %236 = vector.shape_cast %235 : vector<4xf32> to vector<4x1xf32>
    %cst_123 = arith.constant 0.001953125 : f32
    %237 = vector.broadcast %cst_123 : f32 to vector<4x1xf32>
    %238 = arith.mulf %236, %237 : vector<4x1xf32>
    %239 = arith.mulf %189, %189 : vector<4x512xf32>
    %cst_124 = arith.constant dense<0.000000e+00> : vector<4xf32>
    %240 = vector.multi_reduction <add>, %239, %cst_124 [1] : vector<4x512xf32> to vector<4xf32>
    %241 = vector.shape_cast %240 : vector<4xf32> to vector<4x1xf32>
    %cst_125 = arith.constant 0.001953125 : f32
    %242 = vector.broadcast %cst_125 : f32 to vector<4x1xf32>
    %243 = arith.mulf %241, %242 : vector<4x1xf32>
    %244 = arith.mulf %238, %238 : vector<4x1xf32>
    %245 = arith.subf %243, %244 : vector<4x1xf32>
    %c0_126 = arith.constant 0 : index
    %c0_127 = arith.constant 0 : index
    %246 = vector.load %arg16[%c0_126, %c0_127] : memref<4x1xf32, #tpu.memory_space<vmem>>, vector<4x1xf32>
    %cst_128 = arith.constant 9.99999974E-6 : f32
    %247 = vector.broadcast %cst_128 : f32 to vector<4x1xf32>
    %248 = arith.addf %245, %247 : vector<4x1xf32>
    %249 = math.rsqrt %248 : vector<4x1xf32>
    %250 = arith.mulf %246, %249 : vector<4x1xf32>
    %251 = vector.broadcast %238 : vector<4x1xf32> to vector<4x512xf32>
    %252 = arith.subf %189, %251 : vector<4x512xf32>
    %253 = vector.broadcast %250 : vector<4x1xf32> to vector<4x512xf32>
    %254 = arith.mulf %252, %253 : vector<4x512xf32>
    %c0_129 = arith.constant 0 : index
    %c0_130 = arith.constant 0 : index
    %255 = vector.load %arg17[%c0_129, %c0_130] : memref<4x1xf32, #tpu.memory_space<vmem>>, vector<4x1xf32>
    %256 = vector.broadcast %255 : vector<4x1xf32> to vector<4x512xf32>
    %257 = arith.addf %254, %256 : vector<4x512xf32>
    %cst_131 = arith.constant 2.000000e+01 : f32
    %258 = vector.broadcast %cst_131 : f32 to vector<4x512xf32>
    %259 = arith.minimumf %257, %258 : vector<4x512xf32>
    %260 = math.exp %259 : vector<4x512xf32>
    %cst_132 = arith.constant 1.000000e+00 : f32
    %261 = vector.broadcast %cst_132 : f32 to vector<4x512xf32>
    %262 = arith.addf %261, %260 : vector<4x512xf32>
    %cst_133 = arith.constant 1.000000e+00 : f32
    %263 = vector.broadcast %cst_133 : f32 to vector<4x512xf32>
    %264 = arith.addf %263, %260 : vector<4x512xf32>
    %265 = arith.mulf %262, %264 : vector<4x512xf32>
    %cst_134 = arith.constant 1.000000e+00 : f32
    %266 = vector.broadcast %cst_134 : f32 to vector<4x512xf32>
    %267 = arith.subf %265, %266 : vector<4x512xf32>
    %268 = arith.mulf %257, %267 : vector<4x512xf32>
    %cst_135 = arith.constant 1.000000e+00 : f32
    %269 = vector.broadcast %cst_135 : f32 to vector<4x512xf32>
    %270 = arith.addf %265, %269 : vector<4x512xf32>
    %271 = tpu.reciprocal %270 {approx = true} : vector<4x512xf32> -> vector<4x512xf32>
    %272 = arith.mulf %268, %271 : vector<4x512xf32>
    %cst_136 = arith.constant dense<0.000000e+00> : vector<4xf32>
    %273 = vector.multi_reduction <add>, %234, %cst_136 [1] : vector<4x128xf32> to vector<4xf32>
    %274 = vector.shape_cast %273 : vector<4xf32> to vector<4x1xf32>
    %cst_137 = arith.constant 7.812500e-03 : f32
    %275 = vector.broadcast %cst_137 : f32 to vector<4x1xf32>
    %276 = arith.mulf %274, %275 : vector<4x1xf32>
    %277 = arith.mulf %234, %234 : vector<4x128xf32>
    %cst_138 = arith.constant dense<0.000000e+00> : vector<4xf32>
    %278 = vector.multi_reduction <add>, %277, %cst_138 [1] : vector<4x128xf32> to vector<4xf32>
    %279 = vector.shape_cast %278 : vector<4xf32> to vector<4x1xf32>
    %cst_139 = arith.constant 7.812500e-03 : f32
    %280 = vector.broadcast %cst_139 : f32 to vector<4x1xf32>
    %281 = arith.mulf %279, %280 : vector<4x1xf32>
    %282 = arith.mulf %276, %276 : vector<4x1xf32>
    %283 = arith.subf %281, %282 : vector<4x1xf32>
    %c0_140 = arith.constant 0 : index
    %c0_141 = arith.constant 0 : index
    %284 = vector.load %arg18[%c0_140, %c0_141] : memref<4x1xf32, #tpu.memory_space<vmem>>, vector<4x1xf32>
    %cst_142 = arith.constant 9.99999974E-6 : f32
    %285 = vector.broadcast %cst_142 : f32 to vector<4x1xf32>
    %286 = arith.addf %283, %285 : vector<4x1xf32>
    %287 = math.rsqrt %286 : vector<4x1xf32>
    %288 = arith.mulf %284, %287 : vector<4x1xf32>
    %289 = vector.broadcast %276 : vector<4x1xf32> to vector<4x128xf32>
    %290 = arith.subf %234, %289 : vector<4x128xf32>
    %291 = vector.broadcast %288 : vector<4x1xf32> to vector<4x128xf32>
    %292 = arith.mulf %290, %291 : vector<4x128xf32>
    %c0_143 = arith.constant 0 : index
    %c0_144 = arith.constant 0 : index
    %293 = vector.load %arg19[%c0_143, %c0_144] : memref<4x1xf32, #tpu.memory_space<vmem>>, vector<4x1xf32>
    %294 = vector.broadcast %293 : vector<4x1xf32> to vector<4x128xf32>
    %295 = arith.addf %292, %294 : vector<4x128xf32>
    %cst_145 = arith.constant 2.000000e+01 : f32
    %296 = vector.broadcast %cst_145 : f32 to vector<4x128xf32>
    %297 = arith.minimumf %295, %296 : vector<4x128xf32>
    %298 = math.exp %297 : vector<4x128xf32>
    %cst_146 = arith.constant 1.000000e+00 : f32
    %299 = vector.broadcast %cst_146 : f32 to vector<4x128xf32>
    %300 = arith.addf %299, %298 : vector<4x128xf32>
    %cst_147 = arith.constant 1.000000e+00 : f32
    %301 = vector.broadcast %cst_147 : f32 to vector<4x128xf32>
    %302 = arith.addf %301, %298 : vector<4x128xf32>
    %303 = arith.mulf %300, %302 : vector<4x128xf32>
    %cst_148 = arith.constant 1.000000e+00 : f32
    %304 = vector.broadcast %cst_148 : f32 to vector<4x128xf32>
    %305 = arith.subf %303, %304 : vector<4x128xf32>
    %306 = arith.mulf %295, %305 : vector<4x128xf32>
    %cst_149 = arith.constant 1.000000e+00 : f32
    %307 = vector.broadcast %cst_149 : f32 to vector<4x128xf32>
    %308 = arith.addf %303, %307 : vector<4x128xf32>
    %309 = tpu.reciprocal %308 {approx = true} : vector<4x128xf32> -> vector<4x128xf32>
    %310 = arith.mulf %306, %309 : vector<4x128xf32>
    %c0_150 = arith.constant 0 : index
    %c0_151 = arith.constant 0 : index
    %311 = vector.load %arg22[%c0_150, %c0_151] : memref<8x4xbf16, #tpu.memory_space<vmem>>, vector<8x4xbf16>
    %312 = arith.truncf %310 : vector<4x128xf32> to vector<4x128xbf16>
    %cst_152 = arith.constant dense<0.000000e+00> : vector<8x128xf32>
    %313 = tpu.matmul %311, %312, %cst_152 {dimension_numbers = #tpu.dot_dimension_numbers<[1], [0], [0], [1], [0, 0, 1, 1], [], []>} : vector<8x4xbf16>, vector<4x128xbf16>, vector<8x128xf32> -> vector<8x128xf32>
    %314 = vector.extract_strided_slice %313 {offsets = [0, 0], sizes = [4, 128], strides = [1, 1]} : vector<8x128xf32> to vector<4x128xf32>
    %315 = vector.extract_strided_slice %313 {offsets = [4, 0], sizes = [4, 128], strides = [1, 1]} : vector<8x128xf32> to vector<4x128xf32>
    %c0_153 = arith.constant 0 : index
    %c0_154 = arith.constant 0 : index
    %316 = vector.load %arg20[%c0_153, %c0_154] : memref<4x4xbf16, #tpu.memory_space<vmem>>, vector<4x4xbf16>
    %317 = arith.truncf %272 : vector<4x512xf32> to vector<4x512xbf16>
    %cst_155 = arith.constant dense<0.000000e+00> : vector<4x512xf32>
    %318 = tpu.matmul %316, %317, %cst_155 {dimension_numbers = #tpu.dot_dimension_numbers<[1], [0], [0], [1], [0, 0, 1, 1], [], []>} : vector<4x4xbf16>, vector<4x512xbf16>, vector<4x512xf32> -> vector<4x512xf32>
    %319 = arith.truncf %314 : vector<4x128xf32> to vector<4x128xbf16>
    %320 = vector.extract_strided_slice %319 {offsets = [0, 0], sizes = [4, 64], strides = [1, 1]} : vector<4x128xbf16> to vector<4x64xbf16>
    %c0_156 = arith.constant 0 : index
    %c0_157 = arith.constant 0 : index
    %321 = vector.load %arg3[%c0_156, %c0_157] : memref<64x256xbf16, #tpu.memory_space<vmem>>, vector<64x256xbf16>
    %cst_158 = arith.constant dense<0.000000e+00> : vector<4x256xf32>
    %322 = tpu.matmul %320, %321, %cst_158 {dimension_numbers = #tpu.dot_dimension_numbers<[1], [0], [0], [1], [0, 0, 1, 1], [], []>} : vector<4x64xbf16>, vector<64x256xbf16>, vector<4x256xf32> -> vector<4x256xf32>
    %323 = vector.extract_strided_slice %319 {offsets = [0, 64], sizes = [4, 64], strides = [1, 1]} : vector<4x128xbf16> to vector<4x64xbf16>
    %c0_159 = arith.constant 0 : index
    %c0_160 = arith.constant 0 : index
    %324 = vector.load %arg3[%c0_159, %c0_160] : memref<64x256xbf16, #tpu.memory_space<vmem>>, vector<64x256xbf16>
    %cst_161 = arith.constant dense<0.000000e+00> : vector<4x256xf32>
    %325 = tpu.matmul %323, %324, %cst_161 {dimension_numbers = #tpu.dot_dimension_numbers<[1], [0], [0], [1], [0, 0, 1, 1], [], []>} : vector<4x64xbf16>, vector<64x256xbf16>, vector<4x256xf32> -> vector<4x256xf32>
    %326 = tpu.concatenate %322, %325 in 1 : vector<4x256xf32>, vector<4x256xf32> -> vector<4x512xf32>
    %327 = arith.addf %318, %326 : vector<4x512xf32>
    %328 = arith.truncf %272 : vector<4x512xf32> to vector<4x512xbf16>
    %329 = vector.extract_strided_slice %328 {offsets = [0, 0], sizes = [4, 256], strides = [1, 1]} : vector<4x512xbf16> to vector<4x256xbf16>
    %c0_162 = arith.constant 0 : index
    %c0_163 = arith.constant 0 : index
    %330 = vector.load %arg2[%c0_162, %c0_163] : memref<256x64xbf16, #tpu.memory_space<vmem>>, vector<256x64xbf16>
    %cst_164 = arith.constant dense<0.000000e+00> : vector<4x64xf32>
    %331 = tpu.matmul %329, %330, %cst_164 {dimension_numbers = #tpu.dot_dimension_numbers<[1], [0], [0], [1], [0, 0, 1, 1], [], []>} : vector<4x256xbf16>, vector<256x64xbf16>, vector<4x64xf32> -> vector<4x64xf32>
    %332 = vector.extract_strided_slice %328 {offsets = [0, 256], sizes = [4, 256], strides = [1, 1]} : vector<4x512xbf16> to vector<4x256xbf16>
    %c0_165 = arith.constant 0 : index
    %c0_166 = arith.constant 0 : index
    %333 = vector.load %arg2[%c0_165, %c0_166] : memref<256x64xbf16, #tpu.memory_space<vmem>>, vector<256x64xbf16>
    %cst_167 = arith.constant dense<0.000000e+00> : vector<4x64xf32>
    %334 = tpu.matmul %332, %333, %cst_167 {dimension_numbers = #tpu.dot_dimension_numbers<[1], [0], [0], [1], [0, 0, 1, 1], [], []>} : vector<4x256xbf16>, vector<256x64xbf16>, vector<4x64xf32> -> vector<4x64xf32>
    %335 = tpu.concatenate %331, %334 in 1 : vector<4x64xf32>, vector<4x64xf32> -> vector<4x128xf32>
    %c0_168 = arith.constant 0 : index
    %c0_169 = arith.constant 0 : index
    %336 = vector.load %arg21[%c0_168, %c0_169] : memref<4x4xbf16, #tpu.memory_space<vmem>>, vector<4x4xbf16>
    %337 = arith.truncf %335 : vector<4x128xf32> to vector<4x128xbf16>
    %cst_170 = arith.constant dense<0.000000e+00> : vector<4x128xf32>
    %338 = tpu.matmul %336, %337, %cst_170 {dimension_numbers = #tpu.dot_dimension_numbers<[1], [0], [0], [1], [0, 0, 1, 1], [], []>} : vector<4x4xbf16>, vector<4x128xbf16>, vector<4x128xf32> -> vector<4x128xf32>
    %339 = arith.addf %338, %315 : vector<4x128xf32>
    %cst_171 = arith.constant dense<0.000000e+00> : vector<4xf32>
    %340 = vector.multi_reduction <add>, %327, %cst_171 [1] : vector<4x512xf32> to vector<4xf32>
    %341 = vector.shape_cast %340 : vector<4xf32> to vector<4x1xf32>
    %cst_172 = arith.constant 0.001953125 : f32
    %342 = vector.broadcast %cst_172 : f32 to vector<4x1xf32>
    %343 = arith.mulf %341, %342 : vector<4x1xf32>
    %344 = arith.mulf %327, %327 : vector<4x512xf32>
    %cst_173 = arith.constant dense<0.000000e+00> : vector<4xf32>
    %345 = vector.multi_reduction <add>, %344, %cst_173 [1] : vector<4x512xf32> to vector<4xf32>
    %346 = vector.shape_cast %345 : vector<4xf32> to vector<4x1xf32>
    %cst_174 = arith.constant 0.001953125 : f32
    %347 = vector.broadcast %cst_174 : f32 to vector<4x1xf32>
    %348 = arith.mulf %346, %347 : vector<4x1xf32>
    %349 = arith.mulf %343, %343 : vector<4x1xf32>
    %350 = arith.subf %348, %349 : vector<4x1xf32>
    %c0_175 = arith.constant 0 : index
    %c0_176 = arith.constant 0 : index
    %351 = vector.load %arg23[%c0_175, %c0_176] : memref<4x1xf32, #tpu.memory_space<vmem>>, vector<4x1xf32>
    %cst_177 = arith.constant 9.99999974E-6 : f32
    %352 = vector.broadcast %cst_177 : f32 to vector<4x1xf32>
    %353 = arith.addf %350, %352 : vector<4x1xf32>
    %354 = math.rsqrt %353 : vector<4x1xf32>
    %355 = arith.mulf %351, %354 : vector<4x1xf32>
    %356 = vector.broadcast %343 : vector<4x1xf32> to vector<4x512xf32>
    %357 = arith.subf %327, %356 : vector<4x512xf32>
    %358 = vector.broadcast %355 : vector<4x1xf32> to vector<4x512xf32>
    %359 = arith.mulf %357, %358 : vector<4x512xf32>
    %c0_178 = arith.constant 0 : index
    %c0_179 = arith.constant 0 : index
    %360 = vector.load %arg24[%c0_178, %c0_179] : memref<4x1xf32, #tpu.memory_space<vmem>>, vector<4x1xf32>
    %361 = vector.broadcast %360 : vector<4x1xf32> to vector<4x512xf32>
    %362 = arith.addf %359, %361 : vector<4x512xf32>
    %cst_180 = arith.constant dense<0.000000e+00> : vector<4xf32>
    %363 = vector.multi_reduction <add>, %339, %cst_180 [1] : vector<4x128xf32> to vector<4xf32>
    %364 = vector.shape_cast %363 : vector<4xf32> to vector<4x1xf32>
    %cst_181 = arith.constant 7.812500e-03 : f32
    %365 = vector.broadcast %cst_181 : f32 to vector<4x1xf32>
    %366 = arith.mulf %364, %365 : vector<4x1xf32>
    %367 = arith.mulf %339, %339 : vector<4x128xf32>
    %cst_182 = arith.constant dense<0.000000e+00> : vector<4xf32>
    %368 = vector.multi_reduction <add>, %367, %cst_182 [1] : vector<4x128xf32> to vector<4xf32>
    %369 = vector.shape_cast %368 : vector<4xf32> to vector<4x1xf32>
    %cst_183 = arith.constant 7.812500e-03 : f32
    %370 = vector.broadcast %cst_183 : f32 to vector<4x1xf32>
    %371 = arith.mulf %369, %370 : vector<4x1xf32>
    %372 = arith.mulf %366, %366 : vector<4x1xf32>
    %373 = arith.subf %371, %372 : vector<4x1xf32>
    %c0_184 = arith.constant 0 : index
    %c0_185 = arith.constant 0 : index
    %374 = vector.load %arg25[%c0_184, %c0_185] : memref<4x1xf32, #tpu.memory_space<vmem>>, vector<4x1xf32>
    %cst_186 = arith.constant 9.99999974E-6 : f32
    %375 = vector.broadcast %cst_186 : f32 to vector<4x1xf32>
    %376 = arith.addf %373, %375 : vector<4x1xf32>
    %377 = math.rsqrt %376 : vector<4x1xf32>
    %378 = arith.mulf %374, %377 : vector<4x1xf32>
    %379 = vector.broadcast %366 : vector<4x1xf32> to vector<4x128xf32>
    %380 = arith.subf %339, %379 : vector<4x128xf32>
    %381 = vector.broadcast %378 : vector<4x1xf32> to vector<4x128xf32>
    %382 = arith.mulf %380, %381 : vector<4x128xf32>
    %c0_187 = arith.constant 0 : index
    %c0_188 = arith.constant 0 : index
    %383 = vector.load %arg26[%c0_187, %c0_188] : memref<4x1xf32, #tpu.memory_space<vmem>>, vector<4x1xf32>
    %384 = vector.broadcast %383 : vector<4x1xf32> to vector<4x128xf32>
    %385 = arith.addf %382, %384 : vector<4x128xf32>
    %c0_189 = arith.constant 0 : index
    %c0_190 = arith.constant 0 : index
    %386 = vector.load %arg0[%c0_189, %c0_190] : memref<4x512xf32, #tpu.memory_space<vmem>>, vector<4x512xf32>
    %387 = arith.addf %362, %386 : vector<4x512xf32>
    %cst_191 = arith.constant 2.000000e+01 : f32
    %388 = vector.broadcast %cst_191 : f32 to vector<4x512xf32>
    %389 = arith.minimumf %387, %388 : vector<4x512xf32>
    %390 = math.exp %389 : vector<4x512xf32>
    %cst_192 = arith.constant 1.000000e+00 : f32
    %391 = vector.broadcast %cst_192 : f32 to vector<4x512xf32>
    %392 = arith.addf %391, %390 : vector<4x512xf32>
    %cst_193 = arith.constant 1.000000e+00 : f32
    %393 = vector.broadcast %cst_193 : f32 to vector<4x512xf32>
    %394 = arith.addf %393, %390 : vector<4x512xf32>
    %395 = arith.mulf %392, %394 : vector<4x512xf32>
    %cst_194 = arith.constant 1.000000e+00 : f32
    %396 = vector.broadcast %cst_194 : f32 to vector<4x512xf32>
    %397 = arith.subf %395, %396 : vector<4x512xf32>
    %398 = arith.mulf %387, %397 : vector<4x512xf32>
    %cst_195 = arith.constant 1.000000e+00 : f32
    %399 = vector.broadcast %cst_195 : f32 to vector<4x512xf32>
    %400 = arith.addf %395, %399 : vector<4x512xf32>
    %401 = tpu.reciprocal %400 {approx = true} : vector<4x512xf32> -> vector<4x512xf32>
    %402 = arith.mulf %398, %401 : vector<4x512xf32>
    %c0_196 = arith.constant 0 : index
    %c0_197 = arith.constant 0 : index
    %403 = vector.load %arg27[%c0_196, %c0_197] : memref<4x512xf32, #tpu.memory_space<vmem>>, vector<4x512xf32>
    tpu.vector_store %arg27[%c0_196, %c0_197], %402 {strides = array<i32>} : memref<4x512xf32, #tpu.memory_space<vmem>>, vector<4x512xf32>,
    %c0_198 = arith.constant 0 : index
    %c0_199 = arith.constant 0 : index
    %404 = vector.load %arg1[%c0_198, %c0_199] : memref<4x128xf32, #tpu.memory_space<vmem>>, vector<4x128xf32>
    %405 = arith.addf %385, %404 : vector<4x128xf32>
    %cst_200 = arith.constant 2.000000e+01 : f32
    %406 = vector.broadcast %cst_200 : f32 to vector<4x128xf32>
    %407 = arith.minimumf %405, %406 : vector<4x128xf32>
    %408 = math.exp %407 : vector<4x128xf32>
    %cst_201 = arith.constant 1.000000e+00 : f32
    %409 = vector.broadcast %cst_201 : f32 to vector<4x128xf32>
    %410 = arith.addf %409, %408 : vector<4x128xf32>
    %cst_202 = arith.constant 1.000000e+00 : f32
    %411 = vector.broadcast %cst_202 : f32 to vector<4x128xf32>
    %412 = arith.addf %411, %408 : vector<4x128xf32>
    %413 = arith.mulf %410, %412 : vector<4x128xf32>
    %cst_203 = arith.constant 1.000000e+00 : f32
    %414 = vector.broadcast %cst_203 : f32 to vector<4x128xf32>
    %415 = arith.subf %413, %414 : vector<4x128xf32>
    %416 = arith.mulf %405, %415 : vector<4x128xf32>
    %cst_204 = arith.constant 1.000000e+00 : f32
    %417 = vector.broadcast %cst_204 : f32 to vector<4x128xf32>
    %418 = arith.addf %413, %417 : vector<4x128xf32>
    %419 = tpu.reciprocal %418 {approx = true} : vector<4x128xf32> -> vector<4x128xf32>
    %420 = arith.mulf %416, %419 : vector<4x128xf32>
    %c0_205 = arith.constant 0 : index
    %c0_206 = arith.constant 0 : index
    %421 = vector.load %arg28[%c0_205, %c0_206] : memref<4x128xf32, #tpu.memory_space<vmem>>, vector<4x128xf32>
    tpu.vector_store %arg28[%c0_205, %c0_206], %420 {strides = array<i32>} : memref<4x128xf32, #tpu.memory_space<vmem>>, vector<4x128xf32>,
    return
  }
}

</mosaic_0001>

<bundles_post_ra>
// kernel: bottleneck_forward.1
= control target key start
LH: loop header
LB: loop body
LE: loop exit
PB: predicated region body
PF: predicated region fallthrough
CT: control target
= control target key end

     0   :  { %s5213_s0 = inlined_call_operand.hbm [shape: f32[4,512], index: 0, kind: input, shape index: {}, may-alias: {0,27}]   ;;  %s5214_s1 = inlined_call_operand.hbm [shape: f32[4,128], index: 1, kind: input, shape index: {}, may-alias: {1,28}]   ;;  %s5215_s2 = inlined_call_operand.hbm [shape: bf16[256,64], index: 2, kind: input, shape index: {}]   ;;  %s5216_s3 = inlined_call_operand.hbm [shape: bf16[64,256], index: 3, kind: input, shape index: {}]   ;;  %s5217_s4 = inlined_call_operand.hbm [shape: f32[9,512], index: 4, kind: input, shape index: {}]   ;;  %s5218_s5 = inlined_call_operand.hbm [shape: f32[9,128], index: 5, kind: input, shape index: {}]   ;;  %s5219_s6 = inlined_call_operand.hbm [shape: bf16[4,4], index: 6, kind: input, shape index: {}]   ;;  %s5220_s7 = inlined_call_operand.hbm [shape: bf16[4,4], index: 7, kind: input, shape index: {}]   ;;  %s5221_s8 = inlined_call_operand.hbm [shape: bf16[8,4], index: 8, kind: input, shape index: {}]   ;;  %s5222_s9 = inlined_call_operand.hbm [shape: f32[4,1], index: 9, kind: input, shape index: {}]   ;;  %s5223_s10 = inlined_call_operand.hbm [shape: f32[4,1], index: 10, kind: input, shape index: {}]   ;;  %s5224_s11 = inlined_call_operand.hbm [shape: f32[4,1], index: 11, kind: input, shape index: {}]   ;;  %s5225_s12 = inlined_call_operand.hbm [shape: f32[4,1], index: 12, kind: input, shape index: {}]   ;;  %s5226_s13 = inlined_call_operand.hbm [shape: bf16[4,36], index: 13, kind: input, shape index: {}]   ;;  %s5227_s14 = inlined_call_operand.hbm [shape: bf16[4,36], index: 14, kind: input, shape index: {}]   ;;  %s5228_s15 = inlined_call_operand.hbm [shape: bf16[8,36], index: 15, kind: input, shape index: {}]   ;;  %s5229_s16 = inlined_call_operand.hbm [shape: f32[4,1], index: 16, kind: input, shape index: {}]   ;;  %s5230_s17 = inlined_call_operand.hbm [shape: f32[4,1], index: 17, kind: input, shape index: {}]   ;;  %s5231_s18 = inlined_call_operand.hbm [shape: f32[4,1], index: 18, kind: input, shape index: {}]   ;;  %s5232_s19 = inlined_call_operand.hbm [shape: f32[4,1], index: 19, kind: input, shape index: {}]   ;;  %s5233_s20 = inlined_call_operand.hbm [shape: bf16[4,4], index: 20, kind: input, shape index: {}]   ;;  %s5234_s21 = inlined_call_operand.hbm [shape: bf16[4,4], index: 21, kind: input, shape index: {}]   ;;  %s5235_s22 = inlined_call_operand.hbm [shape: bf16[8,4], index: 22, kind: input, shape index: {}]   ;;  %s5236_s23 = inlined_call_operand.hbm [shape: f32[4,1], index: 23, kind: input, shape index: {}]   ;;  %s5237_s24 = inlined_call_operand.hbm [shape: f32[4,1], index: 24, kind: input, shape index: {}]   ;;  %s5238_s25 = inlined_call_operand.hbm [shape: f32[4,1], index: 25, kind: input, shape index: {}]   ;;  %s5239_s26 = inlined_call_operand.hbm [shape: f32[4,1], index: 26, kind: input, shape index: {}]   ;;  %s5240_s27 = inlined_call_operand.hbm [shape: f32[4,512], index: 27, kind: output, shape index: {0}, may-alias: {0,27}]   ;;  %s5241_s28 = inlined_call_operand.hbm [shape: f32[4,128], index: 28, kind: output, shape index: {1}, may-alias: {1,28}]  }
   0x1   :  { %5258 = sst [smem:[#allocation63_spill]] %s5213_s0 }
   0x2   :  { %5259 = sst [smem:[#allocation64_spill]] %s5214_s1 }
   0x3   :  { %5260 = sst [smem:[#allocation65_spill]] %s5215_s2 }
   0x4   :  { %5261 = sst [smem:[#allocation66_spill]] %s5216_s3 }
   0x5   :  { %5262 = sst [smem:[#allocation67_spill]] %s5217_s4 }
   0x6   :  { %5263 = sst [smem:[#allocation68_spill]] %s5218_s5 }
   0x7   :  { %5264 = sst [smem:[#allocation69_spill]] %s5219_s6 }
   0x8   :  { %5265 = sst [smem:[#allocation70_spill]] %s5220_s7 }
   0x9   :  { %5266 = sst [smem:[#allocation71_spill]] %s5221_s8 }
   0xa   :  { %5267 = sst [smem:[#allocation72_spill]] %s5222_s9 }
   0xb   :  { %5268 = sst [smem:[#allocation73_spill]] %s5223_s10 }
   0xc   :  { %5269 = sst [smem:[#allocation74_spill]] %s5224_s11 }
   0xd   :  { %5270 = sst [smem:[#allocation75_spill]] %s5225_s12 }
   0xe   :  { %5271 = sst [smem:[#allocation76_spill]] %s5239_s26 }
   0xf   :  { %5272 = sst [smem:[#allocation77_spill]] %s5240_s27 }
  0x10   :  { %5273 = sst [smem:[#allocation78_spill]] %s5241_s28 }
  0x11   :  { %34 = vsyncpa [#allocation3], 0 }
  0x12   :  { %35 = vsyncpa [#allocation6], 0 }
  0x13   :  { %36 = vsyncpa [#allocation9], 0 }
  0x14   :  { %37 = vsyncpa [#allocation12], 0 }
  0x15   :  { %38 = vsyncpa [#allocation15], 0 }
  0x16   :  { %39 = vsyncpa [#allocation18], 0 }
  0x17   :  { %40 = vsyncpa [#allocation21], 0 }
  0x18   :  { %41 = vsyncpa [#allocation24], 0 }
  0x19   :  { %42 = vsyncpa [#allocation27], 0 }
  0x1a   :  { %43 = vsyncpa [#allocation30], 0 }
  0x1b   :  { %44 = vsyncpa [#allocation33], 0 }
  0x1c   :  { %45 = vsyncpa [#allocation36], 0 }
  0x1d   :  { %46 = vsyncpa [#allocation39], 0 }
  0x1e   :  { %47 = vsyncpa [#allocation42], 0 }
  0x1f   :  { %48 = vsyncpa [#allocation4], 0 }
  0x20   :  { %49 = vsyncpa [#allocation46], 0  ;;  %s3848_s8 = smov [#allocation5]   ;;  %s3849_s9 = smov [#allocation8]  }
  0x21   :  { %s66_s5 = sshll.u32 %s3848_s8, 4  ;;  %s87_s30 = sshll.u32 %s3849_s9, 4  ;;  %s67_s5 = int_to_ptr.vmem [resolvable:$true] %s66_s5  ;;  %s4044_s30 = int_to_ptr.vmem [resolvable:$true] %s87_s30 }
  0x22   :  { %s5274_s10 = sld [smem:[#allocation64_spill]] }
  0x28   :  { %s3178_s0 = scalar_lea.hbm %s5274_s10, 64 }
  0x29   :  { %p3179_p0 = scmp.ne.s32.totalorder %s5274_s10, %s3178_s0  ;;  %p3182_p1 = scmp.lt.u32.totalorder %s3178_s0, %s5274_s10 }
  0x2b   :  { %p3184_p2 = pnand %p3182_p1, %p3179_p0 }
  0x2d   :  { %3187 = shalt.err (!%p3184_p2)
}
  0x2e   :  { %s3188_s12 = scalar_lea.vmem %s67_s5, 64  ;;  %p3193_p4 = scmp.lt.s32.totalorder %s67_s5, %s67_s5 }
  0x2f   :  { %p3189_p3 = scmp.ne.s32.totalorder %s67_s5, %s3188_s12  ;;  %p3194_p5 = scmp.lt.s32.totalorder %s3188_s12, %s3188_s12 }
  0x31   :  { %p3195_p6 = por %p3194_p5, %p3193_p4 }
  0x33   :  { %p3196_p7 = pnand %p3195_p6, %p3189_p3 }
  0x35   :  { %3199 = shalt.err (!%p3196_p7)
}
  0x36   :  { %69 = dma.hbm_to_vmem [thread:$0]  %s5274_s10, 64, %s67_s5, [#allocation6]  }
  0x37   :  { %s5275_s3 = sld [smem:[#allocation66_spill]] }
  0x3d   :  { %s3200_s6 = scalar_lea.hbm %s5275_s3, 1024 }
  0x3e   :  { %p3201_p8 = scmp.ne.s32.totalorder %s5275_s3, %s3200_s6  ;;  %p3204_p9 = scmp.lt.u32.totalorder %s3200_s6, %s5275_s3 }
  0x40   :  { %p3206_p10 = pnand %p3204_p9, %p3201_p8 }
  0x42   :  { %3209 = shalt.err (!%p3206_p10)
}
  0x43   :  { %s3210_s7 = scalar_lea.vmem %s4044_s30, 1024  ;;  %p3215_p12 = scmp.lt.s32.totalorder %s4044_s30, %s4044_s30 }
  0x44   :  { %p3211_p11 = scmp.ne.s32.totalorder %s4044_s30, %s3210_s7  ;;  %p3216_p13 = scmp.lt.s32.totalorder %s3210_s7, %s3210_s7 }
  0x46   :  { %p3217_p0 = por %p3216_p13, %p3215_p12 }
  0x48   :  { %p3218_p1 = pnand %p3217_p0, %p3211_p11 }
  0x4a   :  { %3221 = shalt.err (!%p3218_p1)
}
  0x4b   :  { %s3850_s5 = smov 128   ;;  %s3851_s10 = smov 8  }
  0x4c   :  { %93 = dma.hbm_to_vmem [thread:$0]  %s5275_s3, 1024, %s4044_s30, [#allocation9], %s3850_s5, %s3850_s5, %s3851_s10  }
  0x4d   :  { %s3852_s4 = smov [#allocation11]   ;;  %s3853_s9 = smov [#allocation14]  }
  0x4e   :  { %s111_s8 = sshll.u32 %s3852_s4, 4  ;;  %s134_s6 = sshll.u32 %s3853_s9, 4  ;;  %s112_s8 = int_to_ptr.vmem [resolvable:$true] %s111_s8  ;;  %s135_s6 = int_to_ptr.vmem [resolvable:$true] %s134_s6 }
  0x4f   :  { %s5276_s0 = sld [smem:[#allocation68_spill]] }
  0x55   :  { %s3222_s2 = scalar_lea.hbm %s5276_s0, 256 }
  0x56   :  { %p3223_p2 = scmp.ne.s32.totalorder %s5276_s0, %s3222_s2  ;;  %p3226_p3 = scmp.lt.u32.totalorder %s3222_s2, %s5276_s0 }
  0x58   :  { %p3228_p4 = pnand %p3226_p3, %p3223_p2 }
  0x5a   :  { %3231 = shalt.err (!%p3228_p4)
}
  0x5b   :  { %s3232_s30 = scalar_lea.vmem %s112_s8, 256  ;;  %p3237_p6 = scmp.lt.s32.totalorder %s112_s8, %s112_s8 }
  0x5c   :  { %p3233_p5 = scmp.ne.s32.totalorder %s112_s8, %s3232_s30  ;;  %p3238_p7 = scmp.lt.s32.totalorder %s3232_s30, %s3232_s30 }
  0x5e   :  { %p3239_p8 = por %p3238_p7, %p3237_p6 }
  0x60   :  { %p3240_p9 = pnand %p3239_p8, %p3233_p5 }
  0x62   :  { %3243 = shalt.err (!%p3240_p9)
}
  0x63   :  { %117 = dma.hbm_to_vmem [thread:$0]  %s5276_s0, 256, %s112_s8, [#allocation12], %s3850_s5, %s3850_s5, %s3851_s10  }
  0x64   :  { %s5277_s4 = sld [smem:[#allocation70_spill]] }
  0x6a   :  { %s3244_s9 = scalar_lea.hbm %s5277_s4, 32 }
  0x6b   :  { %p3245_p10 = scmp.ne.s32.totalorder %s5277_s4, %s3244_s9  ;;  %p3248_p11 = scmp.lt.u32.totalorder %s3244_s9, %s5277_s4 }
  0x6d   :  { %p3250_p12 = pnand %p3248_p11, %p3245_p10 }
  0x6f   :  { %3253 = shalt.err (!%p3250_p12)
}
  0x70   :  { %s3254_s2 = scalar_lea.vmem %s135_s6, 32  ;;  %p3259_p0 = scmp.lt.s32.totalorder %s135_s6, %s135_s6 }
  0x71   :  { %p3255_p13 = scmp.ne.s32.totalorder %s135_s6, %s3254_s2  ;;  %p3260_p1 = scmp.lt.s32.totalorder %s3254_s2, %s3254_s2 }
  0x73   :  { %p3261_p2 = por %p3260_p1, %p3259_p0 }
  0x75   :  { %p3262_p3 = pnand %p3261_p2, %p3255_p13 }
  0x77   :  { %3265 = shalt.err (!%p3262_p3)
}
  0x78   :  { %137 = dma.hbm_to_vmem [thread:$0]  %s5277_s4, 32, %s135_s6, [#allocation15]  }
  0x79   :  { %s3854_s0 = smov [#allocation17]   ;;  %s3855_s30 = smov [#allocation20]  }
  0x7a   :  { %s154_s7 = sshll.u32 %s3854_s0, 4  ;;  %s174_s3 = sshll.u32 %s3855_s30, 4  ;;  %s155_s7 = int_to_ptr.vmem [resolvable:$true] %s154_s7  ;;  %s175_s3 = int_to_ptr.vmem [resolvable:$true] %s174_s3 }
  0x7b   :  { %s5278_s1 = sld [smem:[#allocation72_spill]] }
  0x81   :  { %s3266_s9 = scalar_lea.hbm %s5278_s1, 64 }
  0x82   :  { %p3267_p4 = scmp.ne.s32.totalorder %s5278_s1, %s3266_s9  ;;  %p3270_p5 = scmp.lt.u32.totalorder %s3266_s9, %s5278_s1 }
  0x84   :  { %p3272_p6 = pnand %p3270_p5, %p3267_p4 }
  0x86   :  { %3275 = shalt.err (!%p3272_p6)
}
  0x87   :  { %s3276_s6 = scalar_lea.vmem %s155_s7, 64  ;;  %p3281_p8 = scmp.lt.s32.totalorder %s155_s7, %s155_s7 }
  0x88   :  { %p3277_p7 = scmp.ne.s32.totalorder %s155_s7, %s3276_s6  ;;  %p3282_p9 = scmp.lt.s32.totalorder %s3276_s6, %s3276_s6 }
  0x8a   :  { %p3283_p10 = por %p3282_p9, %p3281_p8 }
  0x8c   :  { %p3284_p11 = pnand %p3283_p10, %p3277_p7 }
  0x8e   :  { %3287 = shalt.err (!%p3284_p11)
}
  0x8f   :  { %157 = dma.hbm_to_vmem [thread:$0]  %s5278_s1, 64, %s155_s7, [#allocation18]  }
  0x90   :  { %s5279_s0 = sld [smem:[#allocation74_spill]] }
  0x96   :  { %s3288_s30 = scalar_lea.hbm %s5279_s0, 64 }
  0x97   :  { %p3289_p12 = scmp.ne.s32.totalorder %s5279_s0, %s3288_s30  ;;  %p3292_p13 = scmp.lt.u32.totalorder %s3288_s30, %s5279_s0 }
  0x99   :  { %p3294_p0 = pnand %p3292_p13, %p3289_p12 }
  0x9b   :  { %3297 = shalt.err (!%p3294_p0)
}
  0x9c   :  { %s3298_s27 = scalar_lea.vmem %s175_s3, 64  ;;  %p3303_p2 = scmp.lt.s32.totalorder %s175_s3, %s175_s3 }
  0x9d   :  { %p3299_p1 = scmp.ne.s32.totalorder %s175_s3, %s3298_s27  ;;  %p3304_p3 = scmp.lt.s32.totalorder %s3298_s27, %s3298_s27 }
  0x9f   :  { %p3305_p4 = por %p3304_p3, %p3303_p2 }
  0xa1   :  { %p3306_p5 = pnand %p3305_p4, %p3299_p1 }
  0xa3   :  { %3309 = shalt.err (!%p3306_p5)
}
  0xa4   :  { %177 = dma.hbm_to_vmem [thread:$0]  %s5279_s0, 64, %s175_s3, [#allocation21]  }
  0xa5   :  { %s3856_s11 = smov [#allocation23]   ;;  %s3857_s6 = smov [#allocation26]  }
  0xa6   :  { %s194_s29 = sshll.u32 %s3856_s11, 4  ;;  %s214_s4 = sshll.u32 %s3857_s6, 4  ;;  %s195_s29 = int_to_ptr.vmem [resolvable:$true] %s194_s29  ;;  %s215_s4 = int_to_ptr.vmem [resolvable:$true] %s214_s4 }
  0xa7   :  { %s3310_s8 = scalar_lea.hbm %s5226_s13, 32 }
  0xa8   :  { %p3311_p6 = scmp.ne.s32.totalorder %s5226_s13, %s3310_s8  ;;  %p3314_p7 = scmp.lt.u32.totalorder %s3310_s8, %s5226_s13 }
  0xaa   :  { %p3316_p8 = pnand %p3314_p7, %p3311_p6 }
  0xac   :  { %3319 = shalt.err (!%p3316_p8)
}
  0xad   :  { %s3320_s3 = scalar_lea.vmem %s195_s29, 32  ;;  %p3325_p10 = scmp.lt.s32.totalorder %s195_s29, %s195_s29 }
  0xae   :  { %p3321_p9 = scmp.ne.s32.totalorder %s195_s29, %s3320_s3  ;;  %p3326_p11 = scmp.lt.s32.totalorder %s3320_s3, %s3320_s3 }
  0xb0   :  { %p3327_p12 = por %p3326_p11, %p3325_p10 }
  0xb2   :  { %p3328_p13 = pnand %p3327_p12, %p3321_p9 }
  0xb4   :  { %3331 = shalt.err (!%p3328_p13)
}
  0xb5   :  { %197 = dma.hbm_to_vmem [thread:$0]  %s5226_s13, 32, %s195_s29, [#allocation24]  }
  0xb6   :  { %s3332_s1 = scalar_lea.hbm %s5228_s15, 64 }
  0xb7   :  { %p3333_p0 = scmp.ne.s32.totalorder %s5228_s15, %s3332_s1  ;;  %p3336_p1 = scmp.lt.u32.totalorder %s3332_s1, %s5228_s15 }
  0xb9   :  { %p3338_p2 = pnand %p3336_p1, %p3333_p0 }
  0xbb   :  { %3341 = shalt.err (!%p3338_p2)
}
  0xbc   :  { %s3342_s8 = scalar_lea.vmem %s215_s4, 64  ;;  %p3347_p4 = scmp.lt.s32.totalorder %s215_s4, %s215_s4 }
  0xbd   :  { %p3343_p3 = scmp.ne.s32.totalorder %s215_s4, %s3342_s8  ;;  %p3348_p5 = scmp.lt.s32.totalorder %s3342_s8, %s3342_s8 }
  0xbf   :  { %p3349_p6 = por %p3348_p5, %p3347_p4 }
  0xc1   :  { %p3350_p7 = pnand %p3349_p6, %p3343_p3 }
  0xc3   :  { %3353 = shalt.err (!%p3350_p7)
}
  0xc4   :  { %217 = dma.hbm_to_vmem [thread:$0]  %s5228_s15, 64, %s215_s4, [#allocation27]  }
  0xc5   :  { %s3858_s30 = smov [#allocation29]   ;;  %s3859_s28 = smov [#allocation32]  }
  0xc6   :  { %s234_s12 = sshll.u32 %s3858_s30, 4  ;;  %s254_s9 = sshll.u32 %s3859_s28, 4  ;;  %s235_s12 = int_to_ptr.vmem [resolvable:$true] %s234_s12  ;;  %s255_s9 = int_to_ptr.vmem [resolvable:$true] %s254_s9 }
  0xc7   :  { %s3354_s26 = scalar_lea.hbm %s5230_s17, 64 }
  0xc8   :  { %p3355_p8 = scmp.ne.s32.totalorder %s5230_s17, %s3354_s26  ;;  %p3358_p9 = scmp.lt.u32.totalorder %s3354_s26, %s5230_s17 }
  0xca   :  { %p3360_p10 = pnand %p3358_p9, %p3355_p8 }
  0xcc   :  { %3363 = shalt.err (!%p3360_p10)
}
  0xcd   :  { %s3364_s15 = scalar_lea.vmem %s235_s12, 64  ;;  %p3369_p12 = scmp.lt.s32.totalorder %s235_s12, %s235_s12 }
  0xce   :  { %p3365_p11 = scmp.ne.s32.totalorder %s235_s12, %s3364_s15  ;;  %p3370_p13 = scmp.lt.s32.totalorder %s3364_s15, %s3364_s15 }
  0xd0   :  { %p3371_p0 = por %p3370_p13, %p3369_p12 }
  0xd2   :  { %p3372_p1 = pnand %p3371_p0, %p3365_p11 }
  0xd4   :  { %3375 = shalt.err (!%p3372_p1)
}
  0xd5   :  { %237 = dma.hbm_to_vmem [thread:$0]  %s5230_s17, 64, %s235_s12, [#allocation30]  }
  0xd6   :  { %s3376_s8 = scalar_lea.hbm %s5232_s19, 64 }
  0xd7   :  { %p3377_p2 = scmp.ne.s32.totalorder %s5232_s19, %s3376_s8  ;;  %p3380_p3 = scmp.lt.u32.totalorder %s3376_s8, %s5232_s19 }
  0xd9   :  { %p3382_p4 = pnand %p3380_p3, %p3377_p2 }
  0xdb   :  { %3385 = shalt.err (!%p3382_p4)
}
  0xdc   :  { %s3386_s3 = scalar_lea.vmem %s255_s9, 64  ;;  %p3391_p6 = scmp.lt.s32.totalorder %s255_s9, %s255_s9 }
  0xdd   :  { %p3387_p5 = scmp.ne.s32.totalorder %s255_s9, %s3386_s3  ;;  %p3392_p7 = scmp.lt.s32.totalorder %s3386_s3, %s3386_s3 }
  0xdf   :  { %p3393_p8 = por %p3392_p7, %p3391_p6 }
  0xe1   :  { %p3394_p9 = pnand %p3393_p8, %p3387_p5 }
  0xe3   :  { %3397 = shalt.err (!%p3394_p9)
}
  0xe4   :  { %257 = dma.hbm_to_vmem [thread:$0]  %s5232_s19, 64, %s255_s9, [#allocation33]  }
  0xe5   :  { %s3860_s0 = smov [#allocation35]   ;;  %s3861_s27 = smov [#allocation38]  }
  0xe6   :  { %s274_s26 = sshll.u32 %s3860_s0, 4  ;;  %s294_s7 = sshll.u32 %s3861_s27, 4  ;;  %s275_s26 = int_to_ptr.vmem [resolvable:$true] %s274_s26  ;;  %s295_s7 = int_to_ptr.vmem [resolvable:$true] %s294_s7 }
  0xe7   :  { %s3398_s15 = scalar_lea.hbm %s5234_s21, 32 }
  0xe8   :  { %p3399_p10 = scmp.ne.s32.totalorder %s5234_s21, %s3398_s15  ;;  %p3402_p11 = scmp.lt.u32.totalorder %s3398_s15, %s5234_s21 }
  0xea   :  { %p3404_p12 = pnand %p3402_p11, %p3399_p10 }
  0xec   :  { %3407 = shalt.err (!%p3404_p12)
}
  0xed   :  { %s3408_s19 = scalar_lea.vmem %s275_s26, 32  ;;  %p3413_p0 = scmp.lt.s32.totalorder %s275_s26, %s275_s26 }
  0xee   :  { %p3409_p13 = scmp.ne.s32.totalorder %s275_s26, %s3408_s19  ;;  %p3414_p1 = scmp.lt.s32.totalorder %s3408_s19, %s3408_s19 }
  0xf0   :  { %p3415_p2 = por %p3414_p1, %p3413_p0 }
  0xf2   :  { %p3416_p3 = pnand %p3415_p2, %p3409_p13 }
  0xf4   :  { %3419 = shalt.err (!%p3416_p3)
}
  0xf5   :  { %277 = dma.hbm_to_vmem [thread:$0]  %s5234_s21, 32, %s275_s26, [#allocation36]  }
  0xf6   :  { %s3420_s30 = scalar_lea.hbm %s5236_s23, 64 }
  0xf7   :  { %p3421_p4 = scmp.ne.s32.totalorder %s5236_s23, %s3420_s30  ;;  %p3424_p5 = scmp.lt.u32.totalorder %s3420_s30, %s5236_s23 }
  0xf9   :  { %p3426_p6 = pnand %p3424_p5, %p3421_p4 }
  0xfb   :  { %3429 = shalt.err (!%p3426_p6)
}
  0xfc   :  { %s3430_s0 = scalar_lea.vmem %s295_s7, 64  ;;  %p3435_p8 = scmp.lt.s32.totalorder %s295_s7, %s295_s7 }
  0xfd   :  { %p3431_p7 = scmp.ne.s32.totalorder %s295_s7, %s3430_s0  ;;  %p3436_p9 = scmp.lt.s32.totalorder %s3430_s0, %s3430_s0 }
  0xff   :  { %p3437_p10 = por %p3436_p9, %p3435_p8 }
 0x101   :  { %p3438_p11 = pnand %p3437_p10, %p3431_p7 }
 0x103   :  { %3441 = shalt.err (!%p3438_p11)
}
 0x104   :  { %297 = dma.hbm_to_vmem [thread:$0]  %s5236_s23, 64, %s295_s7, [#allocation39]  }
 0x105   :  { %s3862_s27 = smov [#allocation41]   ;;  %s3863_s11 = smov [#allocation2]  }
 0x106   :  { %s314_s1 = sshll.u32 %s3862_s27, 4  ;;  %s56_s15 = sshll.u32 %s3863_s11, 4  ;;  %s315_s1 = int_to_ptr.vmem [resolvable:$true] %s314_s1  ;;  %s57_s15 = int_to_ptr.vmem [resolvable:$true] %s56_s15 }
 0x107   :  { %s3442_s2 = scalar_lea.hbm %s5238_s25, 64 }
 0x108   :  { %p3443_p12 = scmp.ne.s32.totalorder %s5238_s25, %s3442_s2  ;;  %p3446_p13 = scmp.lt.u32.totalorder %s3442_s2, %s5238_s25 }
 0x10a   :  { %p3448_p0 = pnand %p3446_p13, %p3443_p12 }
 0x10c   :  { %3451 = shalt.err (!%p3448_p0)
}
 0x10d   :  { %s3452_s23 = scalar_lea.vmem %s315_s1, 64  ;;  %p3457_p2 = scmp.lt.s32.totalorder %s315_s1, %s315_s1 }
 0x10e   :  { %p3453_p1 = scmp.ne.s32.totalorder %s315_s1, %s3452_s23  ;;  %p3458_p3 = scmp.lt.s32.totalorder %s3452_s23, %s3452_s23 }
 0x110   :  { %p3459_p4 = por %p3458_p3, %p3457_p2 }
 0x112   :  { %p3460_p5 = pnand %p3459_p4, %p3453_p1 }
 0x114   :  { %3463 = shalt.err (!%p3460_p5)
}
 0x115   :  { %317 = dma.hbm_to_vmem [thread:$0]  %s5238_s25, 64, %s315_s1, [#allocation42]  }
 0x116   :  { %s5280_s28 = sld [smem:[#allocation63_spill]] }
 0x11c   :  { %s3464_s3 = scalar_lea.hbm %s5280_s28, 256 }
 0x11d   :  { %p3465_p6 = scmp.ne.s32.totalorder %s5280_s28, %s3464_s3  ;;  %p3468_p7 = scmp.lt.u32.totalorder %s3464_s3, %s5280_s28 }
 0x11f   :  { %p3470_p8 = pnand %p3468_p7, %p3465_p6 }
 0x121   :  { %3473 = shalt.err (!%p3470_p8)
}
 0x122   :  { %s3474_s26 = scalar_lea.vmem %s57_s15, 256  ;;  %p3479_p10 = scmp.lt.s32.totalorder %s57_s15, %s57_s15 }
 0x123   :  { %p3475_p9 = scmp.ne.s32.totalorder %s57_s15, %s3474_s26  ;;  %p3480_p11 = scmp.lt.s32.totalorder %s3474_s26, %s3474_s26 }
 0x125   :  { %p3481_p12 = por %p3480_p11, %p3479_p10 }
 0x127   :  { %p3482_p13 = pnand %p3481_p12, %p3475_p9 }
 0x129   :  { %3485 = shalt.err (!%p3482_p13)
}
 0x12a   :  { %59 = dma.hbm_to_vmem [thread:$0]  %s5280_s28, 256, %s57_s15, [#allocation3]  }
 0x12b   :  { %s3864_s1 = smov [#allocation7]   ;;  %s5281_s2 = sld [smem:[#allocation65_spill]] }
 0x12c   :  { %s75_s11 = sshll.u32 %s3864_s1, 4  ;;  %s76_s11 = int_to_ptr.vmem [resolvable:$true] %s75_s11 }
 0x131   :  { %s3486_s5 = scalar_lea.hbm %s5281_s2, 2048 }
 0x132   :  { %p3487_p0 = scmp.ne.s32.totalorder %s5281_s2, %s3486_s5  ;;  %p3490_p1 = scmp.lt.u32.totalorder %s3486_s5, %s5281_s2 }
 0x134   :  { %p3492_p2 = pnand %p3490_p1, %p3487_p0 }
 0x136   :  { %3495 = shalt.err (!%p3492_p2)
}
 0x137   :  { %s3496_s7 = scalar_lea.vmem %s76_s11, 2048  ;;  %p3501_p4 = scmp.lt.s32.totalorder %s76_s11, %s76_s11 }
 0x138   :  { %p3497_p3 = scmp.ne.s32.totalorder %s76_s11, %s3496_s7  ;;  %p3502_p5 = scmp.lt.s32.totalorder %s3496_s7, %s3496_s7 }
 0x13a   :  { %p3503_p6 = por %p3502_p5, %p3501_p4 }
 0x13c   :  { %p3504_p7 = pnand %p3503_p6, %p3497_p3 }
 0x13e   :  { %3507 = shalt.err (!%p3504_p7)
}
 0x13f   :  { %s3865_s15 = smov 64   ;;  %s3866_s13 = smov 4  }
 0x140   :  { %81 = dma.hbm_to_vmem [thread:$0]  %s5281_s2, 2048, %s76_s11, [#allocation6], %s3865_s15, %s3865_s15, %s3866_s13  }
 0x141   :  { %s3867_s28 = smov [#allocation10]   ;;  %s5282_s0 = sld [smem:[#allocation67_spill]] }
 0x142   :  { %s99_s3 = sshll.u32 %s3867_s28, 4  ;;  %s100_s3 = int_to_ptr.vmem [resolvable:$true] %s99_s3 }
 0x147   :  { %s3508_s21 = scalar_lea.hbm %s5282_s0, 1024 }
 0x148   :  { %p3509_p8 = scmp.ne.s32.totalorder %s5282_s0, %s3508_s21  ;;  %p3512_p9 = scmp.lt.u32.totalorder %s3508_s21, %s5282_s0 }
 0x14a   :  { %p3514_p10 = pnand %p3512_p9, %p3509_p8 }
 0x14c   :  { %3517 = shalt.err (!%p3514_p10)
}
 0x14d   :  { %s3518_s4 = scalar_lea.vmem %s100_s3, 1024  ;;  %p3523_p12 = scmp.lt.s32.totalorder %s100_s3, %s100_s3 }
 0x14e   :  { %p3519_p11 = scmp.ne.s32.totalorder %s100_s3, %s3518_s4  ;;  %p3524_p13 = scmp.lt.s32.totalorder %s3518_s4, %s3518_s4 }
 0x150   :  { %p3525_p0 = por %p3524_p13, %p3523_p12 }
 0x152   :  { %p3526_p1 = pnand %p3525_p0, %p3519_p11 }
 0x154   :  { %3529 = shalt.err (!%p3526_p1)
}
 0x155   :  { %s3868_s11 = smov 512   ;;  %s3869_s6 = smov 32  }
 0x156   :  { %105 = dma.hbm_to_vmem [thread:$0]  %s5282_s0, 1024, %s100_s3, [#allocation9], %s3868_s11, %s3868_s11, %s3869_s6  }
 0x157   :  { %s3870_s19 = smov [#allocation13]   ;;  %s3871_s8 = smov [#allocation16]  }
 0x158   :  { %s124_s9 = sshll.u32 %s3870_s19, 4  ;;  %s144_s23 = sshll.u32 %s3871_s8, 4  ;;  %s125_s9 = int_to_ptr.vmem [resolvable:$true] %s124_s9  ;;  %s145_s23 = int_to_ptr.vmem [resolvable:$true] %s144_s23 }
 0x159   :  { %s5283_s29 = sld [smem:[#allocation69_spill]] }
 0x15f   :  { %s3530_s30 = scalar_lea.hbm %s5283_s29, 32 }
 0x160   :  { %p3531_p2 = scmp.ne.s32.totalorder %s5283_s29, %s3530_s30  ;;  %p3534_p3 = scmp.lt.u32.totalorder %s3530_s30, %s5283_s29 }
 0x162   :  { %p3536_p4 = pnand %p3534_p3, %p3531_p2 }
 0x164   :  { %3539 = shalt.err (!%p3536_p4)
}
 0x165   :  { %s3540_s3 = scalar_lea.vmem %s125_s9, 32  ;;  %p3545_p6 = scmp.lt.s32.totalorder %s125_s9, %s125_s9 }
 0x166   :  { %p3541_p5 = scmp.ne.s32.totalorder %s125_s9, %s3540_s3  ;;  %p3546_p7 = scmp.lt.s32.totalorder %s3540_s3, %s3540_s3 }
 0x168   :  { %p3547_p8 = por %p3546_p7, %p3545_p6 }
 0x16a   :  { %p3548_p9 = pnand %p3547_p8, %p3541_p5 }
 0x16c   :  { %3551 = shalt.err (!%p3548_p9)
}
 0x16d   :  { %127 = dma.hbm_to_vmem [thread:$0]  %s5283_s29, 32, %s125_s9, [#allocation12]  }
 0x16e   :  { %s5284_s1 = sld [smem:[#allocation71_spill]] }
 0x174   :  { %s3552_s4 = scalar_lea.hbm %s5284_s1, 64 }
 0x175   :  { %p3553_p10 = scmp.ne.s32.totalorder %s5284_s1, %s3552_s4  ;;  %p3556_p11 = scmp.lt.u32.totalorder %s3552_s4, %s5284_s1 }
 0x177   :  { %p3558_p12 = pnand %p3556_p11, %p3553_p10 }
 0x179   :  { %3561 = shalt.err (!%p3558_p12)
}
 0x17a   :  { %s3562_s19 = scalar_lea.vmem %s145_s23, 64  ;;  %p3567_p0 = scmp.lt.s32.totalorder %s145_s23, %s145_s23 }
 0x17b   :  { %p3563_p13 = scmp.ne.s32.totalorder %s145_s23, %s3562_s19  ;;  %p3568_p1 = scmp.lt.s32.totalorder %s3562_s19, %s3562_s19 }
 0x17d   :  { %p3569_p2 = por %p3568_p1, %p3567_p0 }
 0x17f   :  { %p3570_p3 = pnand %p3569_p2, %p3563_p13 }
 0x181   :  { %3573 = shalt.err (!%p3570_p3)
}
 0x182   :  { %147 = dma.hbm_to_vmem [thread:$0]  %s5284_s1, 64, %s145_s23, [#allocation15]  }
 0x183   :  { %s3872_s7 = smov [#allocation19]   ;;  %s3873_s29 = smov [#allocation22]  }
 0x184   :  { %s164_s13 = sshll.u32 %s3872_s7, 4  ;;  %s184_s30 = sshll.u32 %s3873_s29, 4  ;;  %s165_s13 = int_to_ptr.vmem [resolvable:$true] %s164_s13  ;;  %s185_s30 = int_to_ptr.vmem [resolvable:$true] %s184_s30 }
 0x185   :  { %s5285_s12 = sld [smem:[#allocation73_spill]] }
 0x18b   :  { %s3574_s21 = scalar_lea.hbm %s5285_s12, 64 }
 0x18c   :  { %p3575_p4 = scmp.ne.s32.totalorder %s5285_s12, %s3574_s21  ;;  %p3578_p5 = scmp.lt.u32.totalorder %s3574_s21, %s5285_s12 }
 0x18e   :  { %p3580_p6 = pnand %p3578_p5, %p3575_p4 }
 0x190   :  { %3583 = shalt.err (!%p3580_p6)
}
 0x191   :  { %s3584_s23 = scalar_lea.vmem %s165_s13, 64  ;;  %p3589_p8 = scmp.lt.s32.totalorder %s165_s13, %s165_s13 }
 0x192   :  { %p3585_p7 = scmp.ne.s32.totalorder %s165_s13, %s3584_s23  ;;  %p3590_p9 = scmp.lt.s32.totalorder %s3584_s23, %s3584_s23 }
 0x194   :  { %p3591_p10 = por %p3590_p9, %p3589_p8 }
 0x196   :  { %p3592_p11 = pnand %p3591_p10, %p3585_p7 }
 0x198   :  { %3595 = shalt.err (!%p3592_p11)
}
 0x199   :  { %167 = dma.hbm_to_vmem [thread:$0]  %s5285_s12, 64, %s165_s13, [#allocation18]  }
 0x19a   :  { %s5286_s6 = sld [smem:[#allocation75_spill]] }
 0x1a0   :  { %s3596_s2 = scalar_lea.hbm %s5286_s6, 64 }
 0x1a1   :  { %p3597_p12 = scmp.ne.s32.totalorder %s5286_s6, %s3596_s2  ;;  %p3600_p13 = scmp.lt.u32.totalorder %s3596_s2, %s5286_s6 }
 0x1a3   :  { %p3602_p0 = pnand %p3600_p13, %p3597_p12 }
 0x1a5   :  { %3605 = shalt.err (!%p3602_p0)
}
 0x1a6   :  { %s3606_s7 = scalar_lea.vmem %s185_s30, 64  ;;  %p3611_p2 = scmp.lt.s32.totalorder %s185_s30, %s185_s30 }
 0x1a7   :  { %p3607_p1 = scmp.ne.s32.totalorder %s185_s30, %s3606_s7  ;;  %p3612_p3 = scmp.lt.s32.totalorder %s3606_s7, %s3606_s7 }
 0x1a9   :  { %p3613_p4 = por %p3612_p3, %p3611_p2 }
 0x1ab   :  { %p3614_p5 = pnand %p3613_p4, %p3607_p1 }
 0x1ad   :  { %3617 = shalt.err (!%p3614_p5)
}
 0x1ae   :  { %187 = dma.hbm_to_vmem [thread:$0]  %s5286_s6, 64, %s185_s30, [#allocation21]  }
 0x1af   :  { %s3874_s28 = smov [#allocation25]   ;;  %s3875_s12 = smov [#allocation28]  }
 0x1b0   :  { %s204_s17 = sshll.u32 %s3874_s28, 4  ;;  %s224_s21 = sshll.u32 %s3875_s12, 4  ;;  %s205_s17 = int_to_ptr.vmem [resolvable:$true] %s204_s17  ;;  %s225_s21 = int_to_ptr.vmem [resolvable:$true] %s224_s21 }
 0x1b1   :  { %s3618_s26 = scalar_lea.hbm %s5227_s14, 32 }
 0x1b2   :  { %p3619_p6 = scmp.ne.s32.totalorder %s5227_s14, %s3618_s26  ;;  %p3622_p7 = scmp.lt.u32.totalorder %s3618_s26, %s5227_s14 }
 0x1b4   :  { %p3624_p8 = pnand %p3622_p7, %p3619_p6 }
 0x1b6   :  { %3627 = shalt.err (!%p3624_p8)
}
 0x1b7   :  { %s3628_s30 = scalar_lea.vmem %s205_s17, 32  ;;  %p3633_p10 = scmp.lt.s32.totalorder %s205_s17, %s205_s17 }
 0x1b8   :  { %p3629_p9 = scmp.ne.s32.totalorder %s205_s17, %s3628_s30  ;;  %p3634_p11 = scmp.lt.s32.totalorder %s3628_s30, %s3628_s30 }
 0x1ba   :  { %p3635_p12 = por %p3634_p11, %p3633_p10 }
 0x1bc   :  { %p3636_p13 = pnand %p3635_p12, %p3629_p9 }
 0x1be   :  { %3639 = shalt.err (!%p3636_p13)
}
 0x1bf   :  { %207 = dma.hbm_to_vmem [thread:$0]  %s5227_s14, 32, %s205_s17, [#allocation24]  }
 0x1c0   :  { %s3640_s5 = scalar_lea.hbm %s5229_s16, 64 }
 0x1c1   :  { %p3641_p0 = scmp.ne.s32.totalorder %s5229_s16, %s3640_s5  ;;  %p3644_p1 = scmp.lt.u32.totalorder %s3640_s5, %s5229_s16 }
 0x1c3   :  { %p3646_p2 = pnand %p3644_p1, %p3641_p0 }
 0x1c5   :  { %3649 = shalt.err (!%p3646_p2)
}
 0x1c6   :  { %s3650_s13 = scalar_lea.vmem %s225_s21, 64  ;;  %p3655_p4 = scmp.lt.s32.totalorder %s225_s21, %s225_s21 }
 0x1c7   :  { %p3651_p3 = scmp.ne.s32.totalorder %s225_s21, %s3650_s13  ;;  %p3656_p5 = scmp.lt.s32.totalorder %s3650_s13, %s3650_s13 }
 0x1c9   :  { %p3657_p6 = por %p3656_p5, %p3655_p4 }
 0x1cb   :  { %p3658_p7 = pnand %p3657_p6, %p3651_p3 }
 0x1cd   :  { %3661 = shalt.err (!%p3658_p7)
}
 0x1ce   :  { %227 = dma.hbm_to_vmem [thread:$0]  %s5229_s16, 64, %s225_s21, [#allocation27]  }
 0x1cf   :  { %s3876_s28 = smov [#allocation31]   ;;  %s3877_s12 = smov [#allocation34]  }
 0x1d0   :  { %s244_s17 = sshll.u32 %s3876_s28, 4  ;;  %s264_s3 = sshll.u32 %s3877_s12, 4  ;;  %s245_s17 = int_to_ptr.vmem [resolvable:$true] %s244_s17  ;;  %s265_s3 = int_to_ptr.vmem [resolvable:$true] %s264_s3 }
 0x1d1   :  { %s3662_s25 = scalar_lea.hbm %s5231_s18, 64 }
 0x1d2   :  { %p3663_p8 = scmp.ne.s32.totalorder %s5231_s18, %s3662_s25  ;;  %p3666_p9 = scmp.lt.u32.totalorder %s3662_s25, %s5231_s18 }
 0x1d4   :  { %p3668_p10 = pnand %p3666_p9, %p3663_p8 }
 0x1d6   :  { %3671 = shalt.err (!%p3668_p10)
}
 0x1d7   :  { %s3672_s16 = scalar_lea.vmem %s245_s17, 64  ;;  %p3677_p12 = scmp.lt.s32.totalorder %s245_s17, %s245_s17 }
 0x1d8   :  { %p3673_p11 = scmp.ne.s32.totalorder %s245_s17, %s3672_s16  ;;  %p3678_p13 = scmp.lt.s32.totalorder %s3672_s16, %s3672_s16 }
 0x1da   :  { %p3679_p0 = por %p3678_p13, %p3677_p12 }
 0x1dc   :  { %p3680_p1 = pnand %p3679_p0, %p3673_p11 }
 0x1de   :  { %3683 = shalt.err (!%p3680_p1)
}
 0x1df   :  { %247 = dma.hbm_to_vmem [thread:$0]  %s5231_s18, 64, %s245_s17, [#allocation30]  }
 0x1e0   :  { %s3684_s2 = scalar_lea.hbm %s5233_s20, 32 }
 0x1e1   :  { %p3685_p2 = scmp.ne.s32.totalorder %s5233_s20, %s3684_s2  ;;  %p3688_p3 = scmp.lt.u32.totalorder %s3684_s2, %s5233_s20 }
 0x1e3   :  { %p3690_p4 = pnand %p3688_p3, %p3685_p2 }
 0x1e5   :  { %3693 = shalt.err (!%p3690_p4)
}
 0x1e6   :  { %s3694_s7 = scalar_lea.vmem %s265_s3, 32  ;;  %p3699_p6 = scmp.lt.s32.totalorder %s265_s3, %s265_s3 }
 0x1e7   :  { %p3695_p5 = scmp.ne.s32.totalorder %s265_s3, %s3694_s7  ;;  %p3700_p7 = scmp.lt.s32.totalorder %s3694_s7, %s3694_s7 }
 0x1e9   :  { %p3701_p8 = por %p3700_p7, %p3699_p6 }
 0x1eb   :  { %p3702_p9 = pnand %p3701_p8, %p3695_p5 }
 0x1ed   :  { %3705 = shalt.err (!%p3702_p9)
}
 0x1ee   :  { %267 = dma.hbm_to_vmem [thread:$0]  %s5233_s20, 32, %s265_s3, [#allocation33]  }
 0x1ef   :  { %s3878_s14 = smov [#allocation37]   ;;  %s3879_s28 = smov [#allocation40]  }
 0x1f0   :  { %s284_s29 = sshll.u32 %s3878_s14, 4  ;;  %s304_s17 = sshll.u32 %s3879_s28, 4  ;;  %s285_s29 = int_to_ptr.vmem [resolvable:$true] %s284_s29  ;;  %s305_s17 = int_to_ptr.vmem [resolvable:$true] %s304_s17 }
 0x1f1   :  { %s3706_s26 = scalar_lea.hbm %s5235_s22, 64 }
 0x1f2   :  { %p3707_p10 = scmp.ne.s32.totalorder %s5235_s22, %s3706_s26  ;;  %p3710_p11 = scmp.lt.u32.totalorder %s3706_s26, %s5235_s22 }
 0x1f4   :  { %p3712_p12 = pnand %p3710_p11, %p3707_p10 }
 0x1f6   :  { %3715 = shalt.err (!%p3712_p12)
}
 0x1f7   :  { %s3716_s20 = scalar_lea.vmem %s285_s29, 64  ;;  %p3721_p0 = scmp.lt.s32.totalorder %s285_s29, %s285_s29 }
 0x1f8   :  { %p3717_p13 = scmp.ne.s32.totalorder %s285_s29, %s3716_s20  ;;  %p3722_p1 = scmp.lt.s32.totalorder %s3716_s20, %s3716_s20 }
 0x1fa   :  { %p3723_p2 = por %p3722_p1, %p3721_p0 }
 0x1fc   :  { %p3724_p3 = pnand %p3723_p2, %p3717_p13 }
 0x1fe   :  { %3727 = shalt.err (!%p3724_p3)
}
 0x1ff   :  { %287 = dma.hbm_to_vmem [thread:$0]  %s5235_s22, 64, %s285_s29, [#allocation36]  }
 0x200   :  { %s3728_s4 = scalar_lea.hbm %s5237_s24, 64 }
 0x201   :  { %p3729_p4 = scmp.ne.s32.totalorder %s5237_s24, %s3728_s4  ;;  %p3732_p5 = scmp.lt.u32.totalorder %s3728_s4, %s5237_s24 }
 0x203   :  { %p3734_p6 = pnand %p3732_p5, %p3729_p4 }
 0x205   :  { %3737 = shalt.err (!%p3734_p6)
}
 0x206   :  { %s3738_s19 = scalar_lea.vmem %s305_s17, 64  ;;  %p3743_p8 = scmp.lt.s32.totalorder %s305_s17, %s305_s17 }
 0x207   :  { %p3739_p7 = scmp.ne.s32.totalorder %s305_s17, %s3738_s19  ;;  %p3744_p9 = scmp.lt.s32.totalorder %s3738_s19, %s3738_s19 }
 0x209   :  { %p3745_p10 = por %p3744_p9, %p3743_p8 }
 0x20b   :  { %p3746_p11 = pnand %p3745_p10, %p3739_p7 }
 0x20d   :  { %3749 = shalt.err (!%p3746_p11)
}
 0x20e   :  { %307 = dma.hbm_to_vmem [thread:$0]  %s5237_s24, 64, %s305_s17, [#allocation39]  }
 0x20f   :  { %s3880_s8 = smov [#allocation43]   ;;  %s5287_s14 = sld [smem:[#allocation76_spill]] }
 0x210   :  { %s324_s7 = sshll.u32 %s3880_s8, 4  ;;  %s325_s7 = int_to_ptr.vmem [resolvable:$true] %s324_s7 }
 0x215   :  { %s3750_s29 = scalar_lea.hbm %s5287_s14, 64 }
 0x216   :  { %p3751_p12 = scmp.ne.s32.totalorder %s5287_s14, %s3750_s29  ;;  %p3754_p13 = scmp.lt.u32.totalorder %s3750_s29, %s5287_s14 }
 0x218   :  { %p3756_p0 = pnand %p3754_p13, %p3751_p12 }
 0x21a   :  { %3759 = shalt.err (!%p3756_p0)
}
 0x21b   :  { %s3760_s25 = scalar_lea.vmem %s325_s7, 64  ;;  %p3765_p2 = scmp.lt.s32.totalorder %s325_s7, %s325_s7 }
 0x21c   :  { %p3761_p1 = scmp.ne.s32.totalorder %s325_s7, %s3760_s25  ;;  %p3766_p3 = scmp.lt.s32.totalorder %s3760_s25, %s3760_s25 }
 0x21e   :  { %p3767_p4 = por %p3766_p3, %p3765_p2 }
 0x220   :  { %p3768_p5 = pnand %p3767_p4, %p3761_p1 }
 0x222   :  { %3771 = shalt.err (!%p3768_p5)
}
 0x223   :  { %327 = dma.hbm_to_vmem [thread:$0]  %s5287_s14, 64, %s325_s7, [#allocation42]  }
 0x224   :  { %3816 = dma.done.wait [#allocation3], 256  }
 0x225   :  { %3817 = vsyncadd [#allocation3], 4294967040 }
 0x226   :  { %3818 = dma.done.wait [#allocation6], 2112  }
 0x227   :  { %3819 = vsyncadd [#allocation6], 4294965184 }
 0x228   :  { %3820 = dma.done.wait [#allocation9], 2048  }
 0x229   :  { %3821 = vsyncadd [#allocation9], 4294965248 }
 0x22a   :  { %3822 = dma.done.wait [#allocation12], 288  }
 0x22b   :  { %3823 = vsyncadd [#allocation12], 4294967008 }
 0x22c   :  { %3824 = dma.done.wait [#allocation15], 96  }
 0x22d   :  { %3825 = vsyncadd [#allocation15], 4294967200 }
 0x22e   :  { %3826 = dma.done.wait [#allocation18], 128  }
 0x22f   :  { %3827 = vsyncadd [#allocation18], 4294967168 }
 0x230   :  { %3828 = dma.done.wait [#allocation21], 128  }
 0x231   :  { %3829 = vsyncadd [#allocation21], 4294967168 }
 0x232   :  { %3830 = dma.done.wait [#allocation24], 64  }
 0x233   :  { %3831 = vsyncadd [#allocation24], 4294967232 }
 0x234   :  { %3832 = dma.done.wait [#allocation27], 128  }
 0x235   :  { %3833 = vsyncadd [#allocation27], 4294967168 }
 0x236   :  { %3834 = dma.done.wait [#allocation30], 128  }
 0x237   :  { %3835 = vsyncadd [#allocation30], 4294967168 }
 0x238   :  { %3836 = dma.done.wait [#allocation33], 96  }
 0x239   :  { %3837 = vsyncadd [#allocation33], 4294967200 }
 0x23a   :  { %3838 = dma.done.wait [#allocation36], 96  }
 0x23b   :  { %3839 = vsyncadd [#allocation36], 4294967200 }
 0x23c   :  { %3840 = dma.done.wait [#allocation39], 128  }
 0x23d   :  { %3841 = vsyncadd [#allocation39], 4294967168 }
 0x23e   :  { %3842 = dma.done.wait [#allocation42], 128  }
 0x23f   :  { %3843 = vsyncadd [#allocation42], 4294967168  ;;  %v3881_v0 = vmov 0.0   ;;  %vm3882_vm0 = vmmov 0   ;;  %v412_v1 = vld [vmem:[#allocation5] sm:$0xf] }
 0x240   :  { %2929 = vmatprep.subr.bf16.mxu0 %v3881_v0  ;;  %2931 = vmatprep.mubr.msk.bf16.mxu0 %vm3882_vm0, %v3881_v0  ;;  %vm419_vm1 = vcmask 1041408   ;;  %v414_v2 = vpack.c.bf16 %v412_v1, %v412_v1  ;;  %v4382_v3 = vld [vmem:[#allocation8 + $0x4] ss:$8 sps:$4 sm:$0xff]   ;;  %v4384_v4 = vld [vmem:[#allocation8] ss:$8 sps:$4 sm:$0xff]   ;;  %vm415_vm2 = vcmask 31744  }
 0x241   :  { %v4386_v5 = vld [vmem:[#allocation8 + $0x14] ss:$8 sps:$4 sm:$0xff]   ;;  %527 = vmatprep.subr.bf16.mxu1 %v4382_v3  ;;  %v4391_v8 = vld [vmem:[#allocation8 + $0x10] ss:$8 sps:$4 sm:$0xff]   ;;  %v4394_v9 = vld [vmem:[#allocation8 + $0x24] ss:$8 sps:$4 sm:$0xff]  }
 0x242   :  { %v421_v6 = vsel %vm419_vm1, %v414_v2, 0  ;;  %v413_v7 = vld [vmem:[#allocation16] sm:$0xf]  ;;  %528 = vmatpush1.bf16.msra.mxu1 %v4384_v4  ;;  %v4397_v10 = vld [vmem:[#allocation8 + $0x20] ss:$8 sps:$4 sm:$0xff]   ;;  %v3883_v13 = vmov 0  }
 0x243   :  { %2930 = vmatpush3.bf16.msra.mxu0 %v421_v6  ;;  %529 = vmatprep.subr.bf16.mxu1 %v4386_v5  ;;  %v4400_v11 = vld [vmem:[#allocation8 + $0x34] ss:$8 sps:$4 sm:$0xff]   ;;  %v4412_v12 = vld [vmem:[#allocation8 + $0x30] ss:$8 sps:$4 sm:$0xff]   ;;  %vm523_vm3 = vcmask 523264   ;;  %v3064_v27 = vld [vmem:[#allocation7 + $0x40] sm:$0xff]  }
 0x244   :  { %574 = vmatprep.subr.bf16.mxu0 %v4382_v3  ;;  %559 = vmatprep.mubr.bf16.mxu1 %v3883_v13  ;;  %v410_v14 = vld [vmem:[#allocation2] sm:$0xff]  ;;  %v411_v17 = vld [vmem:[#allocation2 + $0x8] sm:$0xff]  ;;  %v3065_v29 = vld [vmem:[#allocation7] sm:$0xff]   ;;  %vm976_vm4 = vcmask 1043456   ;;  %s3884_s23 = smov 7   ;;  %s3885_s27 = smov 120  }
 0x245   :  { %3048 = vset.pattern.permute.xlu0 %v3883_v13  ;;  %3049 = vset.pattern.permute.xlu1 %v3883_v13  ;;  %v4420_v15 = vcombine.high %v410_v14, %v410_v14  ;;  %v4425_v18 = vcombine.high %v411_v17, %v411_v17  ;;  %v470_v20 = vpack.c.bf16 %v410_v14, %v410_v14  ;;  %v463_v28 = vld [vmem:[#allocation13] sm:$0x3]  ;;  %v3066_v30 = vld [vmem:[#allocation7 + $0x48] sm:$0xff]   ;;  %v3070_v34 = vld [vmem:[#allocation7 + $0x58] sm:$0xff]   ;;  %s3886_s1 = smov 1   ;;  %s3887_s20 = smov 119  }
 0x246   :  { %2932 = vmatmul.mubr.msk.bf16.vlgmr.msra.gmra.mrb[0].mxu0 %vm415_vm2, %v413_v7  ;;  %530 = vmatpush1.bf16.msra.mxu1 %v4391_v8  ;;  %v3067_v31 = vld [vmem:[#allocation7 + $0x8] sm:$0xff]   ;;  %v3068_v32 = vld [vmem:[#allocation7 + $0x50] sm:$0xff]   ;;  %v3071_v35 = vld [vmem:[#allocation7 + $0x18] sm:$0xff]   ;;  %v472_v44 = vpack.c.bf16 %v411_v17, %v411_v17  ;;  %s3888_s3 = smov 9   ;;  %s3889_s30 = smov 127   ;;  %vm1193_vm5 = vcmask 293888  }
 0x247   :  { %575 = vmatpush1.bf16.msra.mxu0 %v4384_v4  ;;  %531 = vmatprep.subr.bf16.mxu1 %v4394_v9  ;;  %v471_v16 = vpack.c.bf16 %v4420_v15, %v4420_v15  ;;  %v473_v19 = vpack.c.bf16 %v4425_v18, %v4425_v18  ;;  %v619_v24 = vsel %vm419_vm1, %v470_v20, 0  ;;  %v3069_v33 = vld [vmem:[#allocation7 + $0x10] sm:$0xff]   ;;  %v3072_v36 = vld [vmem:[#allocation7 + $0x60] sm:$0xff]   ;;  %v3074_v38 = vld [vmem:[#allocation7 + $0x68] sm:$0xff]   ;;  %s3890_s16 = smov 121   ;;  %s3891_s21 = smov 16  }
 0x248   :  { %576 = vmatprep.subr.bf16.mxu0 %v4386_v5  ;;  %606 = vmatprep.mubr.bf16.mxu0 %v3883_v13  ;;  %v3073_v37 = vld [vmem:[#allocation7 + $0x20] sm:$0xff]   ;;  %v3075_v39 = vld [vmem:[#allocation7 + $0x28] sm:$0xff]   ;;  %v3076_v40 = vld [vmem:[#allocation7 + $0x70] sm:$0xff]   ;;  %v625_v45 = vsel %vm419_vm1, %v472_v44, 0  ;;  %s3892_s4 = smov 17   ;;  %s3893_s11 = smov 15  }
 0x249   :  { %v3077_v41 = vld [vmem:[#allocation7 + $0x30] sm:$0xff]   ;;  %v3078_v42 = vld [vmem:[#allocation7 + $0x78] sm:$0xff]   ;;  %s3894_s6 = smov 112   ;;  %s3895_s2 = smov 113  }
 0x24a   :  { %532 = vmatpush1.bf16.msra.mxu1 %v4397_v10  ;;  %v3079_v43 = vld [vmem:[#allocation7 + $0x38] sm:$0xff]   ;;  %s3896_s5 = smov 111  }
 0x24b   :  { %577 = vmatpush1.bf16.msra.mxu0 %v4391_v8  ;;  %533 = vmatprep.subr.bf16.mxu1 %v4400_v11 }
 0x24c   :  { %578 = vmatprep.subr.bf16.mxu0 %v4394_v9 }
 0x24e   :  { %534 = vmatpush1.bf16.msra.mxu1 %v4412_v12 }
 0x24f   :  { %579 = vmatpush1.bf16.msra.mxu0 %v4397_v10  ;;  %2721 = vmatprep.subr.msk.bf16.mxu1 %vm419_vm1, %v471_v16 }
 0x250   :  { %580 = vmatprep.subr.bf16.mxu0 %v4400_v11 }
 0x253   :  { %581 = vmatpush1.bf16.msra.mxu0 %v4412_v12 }
 0x254   :  { %2723 = vmatprep.subr.msk.bf16.mxu0 %vm419_vm1, %v473_v19 }
 0x319   :  { %v4430_v21 = vpop.f32.mrb[0].mxu0 }
 0x31a   :  { %v2933_v22 = vpop.f32.mrb[1].mxu0  ;;  %v474_v23 = vpack.c.bf16 %v4430_v21, %v4430_v21 }
 0x31b   :  { %v460_v25 = vpop.f32.mrb[2].mxu0 }
 0x31c   :  { %569 = vrot.lane.b32.xlu0 %v474_v23, %s3865_s15  ;;  %v2934_v26 = vpop.f32.mrb[3].mxu0  ;;  %2719 = vmatmul.mubr.msk.bf16.vlgmr.msra.gmra.mrb[0].mxu1 %vm523_vm3, %v474_v23 }
 0x31d   :  { %631 = vmatpush1.bf16.msra.mxu1 %v619_v24  ;;  %662 = vmatprep.mubr.bf16.mxu1 %v3883_v13 }
 0x31e   :  { %2783 = vmatprep.subr.bf16.mxu1 %v3064_v27 }
 0x328   :  { %2722 = vmatmul.mubr.msk.bf16.vlgmr.msra.gmra.mrb[0].mxu1 %vm415_vm2, %v463_v28 }
 0x329   :  { %2784 = vmatpush3.bf16.msra.mxu1 %v3065_v29  ;;  %872 = vmatprep.mubr.bf16.mxu1 %v471_v16 }
 0x32a   :  { %2785 = vmatprep.subr.bf16.mxu1 %v3066_v30 }
 0x32d   :  { %2786 = vmatpush3.bf16.msra.mxu1 %v3067_v31 }
 0x32e   :  { %2787 = vmatprep.subr.bf16.mxu1 %v3068_v32 }
 0x331   :  { %2788 = vmatpush3.bf16.msra.mxu1 %v3069_v33 }
 0x332   :  { %2789 = vmatprep.subr.bf16.mxu1 %v3070_v34 }
 0x335   :  { %2790 = vmatpush3.bf16.msra.mxu1 %v3071_v35 }
 0x336   :  { %2791 = vmatprep.subr.bf16.mxu1 %v3072_v36 }
 0x339   :  { %2792 = vmatpush3.bf16.msra.mxu1 %v3073_v37 }
 0x33a   :  { %2793 = vmatprep.subr.bf16.mxu1 %v3074_v38 }
 0x33d   :  { %2794 = vmatpush3.bf16.msra.mxu1 %v3075_v39 }
 0x33e   :  { %2795 = vmatprep.subr.bf16.mxu1 %v3076_v40 }
 0x341   :  { %2796 = vmatpush3.bf16.msra.mxu1 %v3077_v41 }
 0x342   :  { %2797 = vmatprep.subr.bf16.mxu1 %v3078_v42 }
 0x345   :  { %2798 = vmatpush3.bf16.msra.mxu1 %v3079_v43 }
 0x346   :  { %2935 = vmatprep.subr.bf16.mxu1 %v3881_v0 }
 0x348   :  { %873 = vmatmul.mubr.bf16.vlgmr.msra.gmra.mrb[4].mxu1 %v470_v20 }
 0x349   :  { %2937 = vmatprep.mubr.msk.bf16.mxu1 %vm3882_vm0, %v3881_v0 }
 0x38e   :  { %v570_v46 = vpop.permute.xlu0 %569 }
 0x38f   :  { %2720 = vmatmul.mubr.msk.bf16.vlgmr.msra.gmra.mrb[4].mxu0 %vm523_vm3, %v570_v46  ;;  %v1092_v46 = vld [vmem:[#allocation22] sm:$0xf] }
 0x390   :  { %672 = vmatpush1.bf16.msra.mxu0 %v625_v45  ;;  %703 = vmatprep.mubr.bf16.mxu0 %v3883_v13 }
 0x391   :  { %2805 = vmatprep.subr.bf16.mxu0 %v3064_v27 }
 0x39b   :  { %2724 = vmatmul.mubr.msk.bf16.vlgmr.msra.gmra.mrb[4].mxu0 %vm415_vm2, %v463_v28 }
 0x39c   :  { %2806 = vmatpush3.bf16.msra.mxu0 %v3065_v29  ;;  %912 = vmatprep.mubr.bf16.mxu0 %v473_v19 }
 0x39d   :  { %2807 = vmatprep.subr.bf16.mxu0 %v3066_v30 }
 0x3a0   :  { %2808 = vmatpush3.bf16.msra.mxu0 %v3067_v31 }
 0x3a1   :  { %2809 = vmatprep.subr.bf16.mxu0 %v3068_v32 }
 0x3a4   :  { %2810 = vmatpush3.bf16.msra.mxu0 %v3069_v33 }
 0x3a5   :  { %2811 = vmatprep.subr.bf16.mxu0 %v3070_v34 }
 0x3a8   :  { %2812 = vmatpush3.bf16.msra.mxu0 %v3071_v35 }
 0x3a9   :  { %2813 = vmatprep.subr.bf16.mxu0 %v3072_v36  ;;  %v925_v36 = vld [vmem:[#allocation14] sm:$0x3] }
 0x3ac   :  { %2814 = vmatpush3.bf16.msra.mxu0 %v3073_v37  ;;  %v928_v37 = vrot.slane %v4430_v21, 4 }
 0x3ad   :  { %2815 = vmatprep.subr.bf16.mxu0 %v3074_v38 }
 0x3b0   :  { %2816 = vmatpush3.bf16.msra.mxu0 %v3075_v39 }
 0x3b1   :  { %2817 = vmatprep.subr.bf16.mxu0 %v3076_v40 }
 0x3b4   :  { %2818 = vmatpush3.bf16.msra.mxu0 %v3077_v41 }
 0x3b5   :  { %2819 = vmatprep.subr.bf16.mxu0 %v3078_v42 }
 0x3b8   :  { %2820 = vmatpush3.bf16.msra.mxu0 %v3079_v43 }
 0x3b9   :  { %2941 = vmatprep.subr.bf16.mxu0 %v3881_v0 }
 0x3bb   :  { %913 = vmatmul.mubr.bf16.vlgmr.msra.gmra.mrb[8].mxu0 %v472_v44 }
 0x3bc   :  { %2947 = vmatprep.mubr.msk.bf16.mxu0 %vm3882_vm0, %v3881_v0 }
 0x3fb   :  { %v4449_v47 = vpop.f32.mrb[0].mxu1 }
 0x3fc   :  { %v977_v48 = vsel %vm976_vm4, %v4449_v47, 0.0  ;;  %v987_v49 = vmul.f32 %v4449_v47, %v4449_v47  ;;  %v4455_v50 = vpop.f32.mrb[1].mxu1 }
 0x3fd   :  { %v978_v51 = vsel %vm976_vm4, %v4455_v50, 0.0  ;;  %v988_v52 = vmul.f32 %v4455_v50, %v4455_v50  ;;  %v668_v53 = vpop.f32.mrb[2].mxu1 }
 0x3fe   :  { %v991_v54 = vsel %vm976_vm4, %v987_v49, 0.0  ;;  %v979_v55 = vadd.f32 %v978_v51, %v977_v48  ;;  %v669_v56 = vpop.f32.mrb[3].mxu1 }
 0x3ff   :  { %v992_v57 = vsel %vm976_vm4, %v988_v52, 0.0 }
 0x400   :  { %v993_v58 = vadd.f32 %v992_v57, %v991_v54 }
 0x41b   :  { %v2799_v59 = vpop.f32.mrb[4].mxu1 }
 0x41c   :  { %v2800_v60 = vpop.f32.mrb[5].mxu1 }
 0x41d   :  { %v2801_v61 = vadd.f32 %v2800_v60, %v2799_v59  ;;  %v2802_v62 = vpop.f32.mrb[6].mxu1 }
 0x41e   :  { %v2803_v63 = vpop.f32.mrb[7].mxu1 }
 0x46e   :  { %v4463_v1 = vpop.f32.mrb[4].mxu0 }
 0x46f   :  { %v980_v2 = vsel %vm976_vm4, %v4463_v1, 0.0  ;;  %v989_v6 = vmul.f32 %v4463_v1, %v4463_v1  ;;  %v4469_v7 = vpop.f32.mrb[5].mxu0 }
 0x470   :  { %v990_v14 = vmul.f32 %v4469_v7, %v4469_v7  ;;  %v709_v16 = vpop.f32.mrb[6].mxu0  ;;  %v981_v17 = vadd.f32 %v980_v2, %v979_v55  ;;  %v982_v19 = vsel %vm976_vm4, %v4469_v7, 0.0  ;;  %v1081_v55 = vld [vmem:[#allocation20] sm:$0xf] }
 0x471   :  { %v710_v20 = vpop.f32.mrb[7].mxu0  ;;  %v994_v22 = vsel %vm976_vm4, %v989_v6, 0.0 }
 0x472   :  { %v995_v23 = vadd.f32 %v994_v22, %v993_v58  ;;  %v996_v24 = vsel %vm976_vm4, %v990_v14, 0.0  ;;  %v4477_v25 = vadd.f32 %v982_v19, %v981_v17 }
 0x474   :  { %v4479_v26 = vadd.f32 %v996_v24, %v995_v23  ;;  %v1020_v24 = vld [vmem:[#allocation19] sm:$0xf] }
 0x48e   :  { %v2821_v27 = vpop.f32.mrb[8].mxu0 }
 0x48f   :  { %v2822_v28 = vpop.f32.mrb[9].mxu0 }
 0x490   :  { %v2823_v29 = vadd.f32 %v2822_v28, %v2821_v27  ;;  %v2824_v30 = vpop.f32.mrb[10].mxu0 }
 0x491   :  { %v2825_v31 = vpop.f32.mrb[11].mxu0  ;;  %v4509_v30 = vld [vmem:[#allocation11 + $0x3] ss:$0 sm:$0xff] }
 0x492   :  { %921 = vrot.lane.b32.xlu0 %v2823_v29, %s3865_s15  ;;  %v4507_v29 = vld [vmem:[#allocation11 + $0x1] ss:$0 sm:$0xff] }
 0x504   :  { %v922_v32 = vpop.permute.xlu0 %921 }
 0x505   :  { %v924_v33 = vsel %vm523_vm3, %v2801_v61, %v922_v32 }
 0x506   :  { %v926_v34 = vpack.c.bf16 %v924_v33, %v924_v33 }
 0x508   :  { %v934_v35 = vsel %vm419_vm1, %v926_v34, 0  ;;  %v4513_v34 = vld [vmem:[#allocation11 + $0x2] ss:$0 sm:$0xff] }
 0x509   :  { %2936 = vmatpush3.bf16.msra.mxu1 %v934_v35  ;;  %v4515_v35 = vld [vmem:[#allocation11] ss:$0 sm:$0xff] }
 0x50a   :  { %1642 = vmatprep.subr.bf16.mxu1 %v4382_v3 }
 0x50c   :  { %2938 = vmatmul.mubr.msk.bf16.vlgmr.msra.gmra.mrb[8].mxu1 %vm415_vm2, %v925_v36 }
 0x50d   :  { %1643 = vmatpush1.bf16.msra.mxu1 %v4384_v4  ;;  %1674 = vmatprep.mubr.bf16.mxu1 %v3883_v13 }
 0x50e   :  { %1644 = vmatprep.subr.bf16.mxu1 %v4386_v5 }
 0x511   :  { %1645 = vmatpush1.bf16.msra.mxu1 %v4391_v8 }
 0x512   :  { %1646 = vmatprep.subr.bf16.mxu1 %v4394_v9 }
 0x515   :  { %1647 = vmatpush1.bf16.msra.mxu1 %v4397_v10 }
 0x516   :  { %1648 = vmatprep.subr.bf16.mxu1 %v4400_v11 }
 0x519   :  { %1649 = vmatpush1.bf16.msra.mxu1 %v4412_v12 }
 0x5df   :  { %v970_v38 = vpop.f32.mrb[8].mxu1 }
 0x5e0   :  { %v971_v39 = vadd.f32 %v970_v38, %v928_v37  ;;  %v2939_v40 = vpop.f32.mrb[9].mxu1 }
 0x5e1   :  { %v973_v41 = vpop.f32.mrb[10].mxu1  ;;  %v4519_v40 = vld [vmem:[#allocation11 + $0x7] ss:$0 sm:$0xff] }
 0x5e2   :  { %v2940_v42 = vpop.f32.mrb[11].mxu1  ;;  %v1070_v43 = vsel %vm976_vm4, %v971_v39, 0.0  ;;  %v1074_v44 = vmul.f32 %v971_v39, %v971_v39  ;;  %v4521_v41 = vld [vmem:[#allocation11 + $0x5] ss:$0 sm:$0xff] }
 0x5e3   :  { %1071 = vadd.xlane.f32.xlu1 %v1070_v43 }
 0x5e4   :  { %v1075_v45 = vsel %vm976_vm4, %v1074_v44, 0.0 }
 0x5e7   :  { %1076 = vadd.xlane.f32.xlu1 %v1075_v45 }
 0x5f8   :  { %1095 = vperm.xlu1 %3049, %v1092_v46  }
 0x670   :  { %v1072_v48 = vpop.xlane.xlu1 %1071 }
 0x671   :  { %v1073_v49 = vmul.f32 0.0078125, %v1072_v48 }
 0x673   :  { %v1079_v52 = vmul.f32 %v1073_v49, %v1073_v49  ;;  %v1085_v58 = vsub.f32 %v971_v39, %v1073_v49  ;;  %v4527_v49 = vld [vmem:[#allocation11 + $0x8] ss:$0 sm:$0xff] }
 0x674   :  { %v1077_v51 = vpop.xlane.xlu1 %1076 }
 0x675   :  { %v1078_v53 = vmul.f32 0.0078125, %v1077_v51 }
 0x677   :  { %v1080_v21 = vsub.f32 %v1078_v53, %v1079_v52  ;;  %v4529_v52 = vld [vmem:[#allocation11 + $0x6] ss:$0 sm:$0xff] }
 0x678   :  { %v1096_v60 = vpop.permute.xlu1 %1095 }
 0x679   :  { %v1082_v54 = vadd.f32 1e-05, %v1080_v21 }
 0x67b   :  { %3080 = vrsqrt.f32 %v1082_v54 }
 0x685   :  { %v3081_v56 = vpop.eup %3080 }
 0x686   :  { %v1084_v57 = vmul.f32 %v3081_v56, %v1081_v55 }
 0x688   :  { %1088 = vperm.xlu0 %3048, %v1084_v57  }
 0x707   :  { %v1089_v59 = vpop.permute.xlu0 %1088 }
 0x708   :  { %v1091_v61 = vmul.f32 %v1089_v59, %v1085_v58 }
 0x70a   :  { %v1098_v62 = vadd.f32 %v1096_v60, %v1091_v61 }
 0x70c   :  { %v1099_v63 = vmin.f32 %v1098_v62, 20.0 }
 0x70e   :  { %v1100_v2 = vmul.f32 1.442695, %v1099_v63 }
 0x710   :  { %3082 = vpow2.f32 %v1100_v2 }
 0x71a   :  { %v3083_v6 = vpop.eup %3082 }
 0x71b   :  { %v1102_v14 = vadd.f32 1.0, %v3083_v6 }
 0x71d   :  { %v1103_v16 = vmul.f32 %v1102_v14, %v1102_v14 }
 0x71f   :  { %v1106_v17 = vadd.f32 1.0, %v1103_v16  ;;  %v2746_v19 = vadd.f32 -1.0, %v1103_v16 }
 0x721   :  { %3084 = vrcp.f32 %v1106_v17  ;;  %v1105_v20 = vmul.f32 %v2746_v19, %v1098_v62  ;;  %v1192_v62 = vld [vmem:[#allocation26] sm:$0xf] }
 0x72b   :  { %v3085_v22 = vpop.eup %3084 }
 0x72c   :  { %v1108_v23 = vmul.f32 %v3085_v22, %v1105_v20 }
 0x72e   :  { %1125 = vrot.lane.b32.xlu1 %v1108_v23, %s3884_s23  ;;  %1117 = vrot.lane.b32.xlu0 %v1108_v23, %s3851_s10 }
 0x732   :  { %1157 = vrot.lane.b32.xlu1 %v1108_v23, %s3885_s27  ;;  %1133 = vrot.lane.b32.xlu0 %v1108_v23, %s3886_s1 }
 0x736   :  { %1165 = vrot.lane.b32.xlu1 %v1108_v23, %s3887_s20  ;;  %1109 = vrot.lane.b32.xlu0 %v1108_v23, %s3888_s3 }
 0x73a   :  { %1141 = vrot.lane.b32.xlu0 %v1108_v23, %s3889_s30 }
 0x73e   :  { %1149 = vrot.lane.b32.xlu0 %v1108_v23, %s3890_s16 }
 0x75a   :  { %998 = vadd.xlane.f32.xlu1 %v4479_v26 }
 0x75d   :  { %984 = vadd.xlane.f32.xlu0 %v4477_v25 }
 0x76b   :  { %1023 = vperm.xlu1 %3049, %v1020_v24  }
 0x7a0   :  { %v1118_v27 = vpop.permute.xlu0 %1117  ;;  %v1126_v28 = vpop.permute.xlu1 %1125 }
 0x7a1   :  { %v1124_v32 = vmul.f32 %v4507_v29, %v1118_v27  ;;  %v1132_v37 = vmul.f32 %v4513_v34, %v1126_v28 }
 0x7a3   :  { %v1174_v38 = vrot.slane %v1124_v32, 4 }
 0x7a4   :  { %v1134_v31 = vpop.permute.xlu0 %1133  ;;  %v1158_v36 = vpop.permute.xlu1 %1157 }
 0x7a5   :  { %v1140_v33 = vmul.f32 %v4509_v30, %v1134_v31  ;;  %v1164_v46 = vmul.f32 %v4519_v40, %v1158_v36 }
 0x7a7   :  { %v1177_v26 = vrot.slane %v1140_v33, 4  ;;  %v1183_v54 = vrot.slane %v1164_v46, 4 }
 0x7a8   :  { %v1110_v25 = vpop.permute.xlu0 %1109  ;;  %v1166_v51 = vpop.permute.xlu1 %1165 }
 0x7a9   :  { %v1116_v39 = vmul.f32 %v4515_v35, %v1110_v25  ;;  %v1186_v42 = vsel %vm976_vm4, %v1132_v37, %v1177_v26  ;;  %v1172_v55 = vmul.f32 %v4527_v49, %v1166_v51 }
 0x7ab   :  { %v1185_v43 = vsel %vm976_vm4, %v1116_v39, %v1174_v38  ;;  %v1191_v60 = vpack.c.bf16 %v1172_v55, %v1172_v55 }
 0x7ac   :  { %v1189_v44 = vpack.c.bf16 %v1186_v42, %v1185_v43  ;;  %v1142_v45 = vpop.permute.xlu0 %1141 }
 0x7ad   :  { %v1148_v48 = vmul.f32 %v4521_v41, %v1142_v45  ;;  %v1198_v61 = vsel %vm419_vm1, %v1191_v60, 0 }
 0x7ae   :  { %2942 = vmatpush3.bf16.msra.mxu0 %v1189_v44 }
 0x7af   :  { %v1180_v53 = vrot.slane %v1148_v48, 4  ;;  %2943 = vmatprep.subr.bf16.mxu0 %v3881_v0 }
 0x7b0   :  { %v1150_v21 = vpop.permute.xlu0 %1149 }
 0x7b1   :  { %v1156_v56 = vmul.f32 %v4529_v52, %v1150_v21  ;;  %v1187_v57 = vsel %vm976_vm4, %v1108_v23, %v1180_v53 }
 0x7b3   :  { %v1188_v58 = vsel %vm976_vm4, %v1156_v56, %v1183_v54 }
 0x7b4   :  { %v1190_v59 = vpack.c.bf16 %v1188_v58, %v1187_v57 }
 0x7b6   :  { %2944 = vmatpush3.bf16.msra.mxu0 %v1190_v59 }
 0x7b7   :  { %2945 = vmatprep.subr.bf16.mxu0 %v3881_v0 }
 0x7ba   :  { %2946 = vmatpush3.bf16.msra.mxu0 %v1198_v61 }
 0x7bb   :  { %1689 = vmatprep.subr.bf16.mxu0 %v4382_v3 }
 0x7bd   :  { %2948 = vmatmul.mubr.msk.bf16.vlgmr.msra.gmra.mrb[12].mxu0 %vm1193_vm5, %v1192_v62 }
 0x7be   :  { %1690 = vmatpush1.bf16.msra.mxu0 %v4384_v4  ;;  %1721 = vmatprep.mubr.bf16.mxu0 %v3883_v13 }
 0x7bf   :  { %1691 = vmatprep.subr.bf16.mxu0 %v4386_v5 }
 0x7c2   :  { %1692 = vmatpush1.bf16.msra.mxu0 %v4391_v8 }
 0x7c3   :  { %1693 = vmatprep.subr.bf16.mxu0 %v4394_v9 }
 0x7c6   :  { %1694 = vmatpush1.bf16.msra.mxu0 %v4397_v10  ;;  %v1003_v10 = vld [vmem:[#allocation17] sm:$0xf] }
 0x7c7   :  { %1695 = vmatprep.subr.bf16.mxu0 %v4400_v11 }
 0x7ca   :  { %1696 = vmatpush1.bf16.msra.mxu0 %v4412_v12 }
 0x7e7   :  { %v999_v63 = vpop.xlane.xlu1 %998 }
 0x7e8   :  { %v1000_v6 = vmul.f32 0.001953125, %v999_v63 }
 0x7ea   :  { %v985_v3 = vpop.xlane.xlu0 %984 }
 0x7eb   :  { %v986_v2 = vmul.f32 0.001953125, %v985_v3  ;;  %v1024_v24 = vpop.permute.xlu1 %1023 }
 0x7ed   :  { %v1001_v14 = vmul.f32 %v986_v2, %v986_v2  ;;  %v1007_v4 = vsub.f32 %v4449_v47, %v986_v2  ;;  %v1008_v16 = vsub.f32 %v4455_v50, %v986_v2  ;;  %v1009_v5 = vsub.f32 %v4463_v1, %v986_v2 }
 0x7ee   :  { %v1010_v8 = vsub.f32 %v4469_v7, %v986_v2 }
 0x7ef   :  { %v1002_v9 = vsub.f32 %v1000_v6, %v1001_v14 }
 0x7f1   :  { %v1004_v17 = vadd.f32 1e-05, %v1002_v9 }
 0x7f3   :  { %3086 = vrsqrt.f32 %v1004_v17 }
 0x7fd   :  { %v3087_v11 = vpop.eup %3086 }
 0x7fe   :  { %v1006_v19 = vmul.f32 %v3087_v11, %v1003_v10 }
 0x800   :  { %1013 = vperm.xlu0 %3048, %v1006_v19  }
 0x87f   :  { %v1014_v12 = vpop.permute.xlu0 %1013 }
 0x880   :  { %v1017_v20 = vmul.f32 %v1014_v12, %v1008_v16  ;;  %v1018_v22 = vmul.f32 %v1014_v12, %v1009_v5  ;;  %v1019_v23 = vmul.f32 %v1014_v12, %v1010_v8  ;;  %v1016_v26 = vmul.f32 %v1014_v12, %v1007_v4 }
 0x882   :  { %v1027_v27 = vadd.f32 %v1024_v24, %v1017_v20  ;;  %v1028_v47 = vadd.f32 %v1024_v24, %v1018_v22  ;;  %v1029_v28 = vadd.f32 %v1024_v24, %v1019_v23  ;;  %v1026_v36 = vadd.f32 %v1024_v24, %v1016_v26 }
 0x883   :  { %v1248_v23 = vlaneseq }
 0x884   :  { %v1031_v50 = vmin.f32 %v1027_v27, 20.0  ;;  %v1032_v31 = vmin.f32 %v1028_v47, 20.0  ;;  %v1033_v1 = vmin.f32 %v1029_v28, 20.0  ;;  %v1030_v25 = vmin.f32 %v1026_v36, 20.0 }
 0x886   :  { %v1036_v32 = vmul.f32 1.442695, %v1031_v50  ;;  %v1038_v7 = vmul.f32 1.442695, %v1032_v31  ;;  %v1040_v33 = vmul.f32 1.442695, %v1033_v1 }
 0x887   :  { %v1034_v46 = vmul.f32 1.442695, %v1030_v25  ;;  %v4623_v50 = vand.u32 127, %v1248_v23 }
 0x888   :  { %3088 = vpow2.f32 %v1036_v32  ;;  %v4630_v32 = vld [vmem:[#allocation10 + $0x1] ss:$8 sm:$0xf] }
 0x889   :  { %3090 = vpow2.f32 %v1038_v7  ;;  %v4632_v7 = vld [vmem:[#allocation10 + $0x3] ss:$8 sm:$0xf]  ;;  %vm1289_vm6 = vcmp.lt.s32.totalorder %v4623_v50, 16  ;;  %vm1369_vm7 = vcmp.lt.s32.totalorder %v4623_v50, 1  ;;  %vm1250_vm8 = vcmp.lt.s32.totalorder %v4623_v50, 17 }
 0x88a   :  { %3092 = vpow2.f32 %v1040_v33  ;;  %vm1329_vm9 = vcmp.lt.s32.totalorder %v4623_v50, 15  ;;  %vm1409_vm10 = vcmp.lt.s32.totalorder %v4623_v50, 127  ;;  %vm1489_vm11 = vcmp.lt.s32.totalorder %v4623_v50, 112 }
 0x88b   :  { %3094 = vpow2.f32 %v1034_v46  ;;  %vm1449_vm12 = vcmp.lt.s32.totalorder %v4623_v50, 113  ;;  %vm1529_vm13 = vcmp.lt.s32.totalorder %v4623_v50, 111 }
 0x890   :  { %v4552_v37 = vpop.f32.mrb[12].mxu0 }
 0x891   :  { %v2949_v38 = vpop.f32.mrb[13].mxu0  ;;  %v4556_v39 = vpack.c.bf16 %v4552_v37, %v4552_v37 }
 0x892   :  { %v1237_v42 = vpop.f32.mrb[14].mxu0  ;;  %v3089_v43 = vpop.eup %3088 }
 0x893   :  { %v2950_v44 = vpop.f32.mrb[15].mxu0  ;;  %2756 = vmatmul.mubr.msk.bf16.vlgmr.msra.gmra.mrb[12].mxu1 %vm523_vm3, %v4556_v39  ;;  %v3091_v45 = vpop.eup %3090  ;;  %v1043_v51 = vadd.f32 1.0, %v3089_v43 }
 0x894   :  { %1777 = vmatprep.mubr.bf16.mxu1 %v3883_v13  ;;  %v3093_v48 = vpop.eup %3092  ;;  %v1044_v53 = vadd.f32 1.0, %v3091_v45  ;;  %v4653_v44 = vld [vmem:[#allocation10 + $0x2] ss:$8 sm:$0xf] }
 0x895   :  { %v1045_v21 = vadd.f32 1.0, %v3093_v48  ;;  %v1047_v56 = vmul.f32 %v1043_v51, %v1043_v51  ;;  %v3095_v62 = vpop.eup %3094 }
 0x896   :  { %v1048_v54 = vmul.f32 %v1044_v53, %v1044_v53  ;;  %v1042_v2 = vadd.f32 1.0, %v3095_v62 }
 0x897   :  { %v1049_v55 = vmul.f32 %v1045_v21, %v1045_v21  ;;  %v1059_v59 = vadd.f32 1.0, %v1047_v56  ;;  %v2743_v5 = vadd.f32 -1.0, %v1047_v56 }
 0x898   :  { %v1060_v57 = vadd.f32 1.0, %v1048_v54  ;;  %v2744_v60 = vadd.f32 -1.0, %v1048_v54  ;;  %v1046_v8 = vmul.f32 %v1042_v2, %v1042_v2 }
 0x899   :  { %v1061_v58 = vadd.f32 1.0, %v1049_v55  ;;  %v2745_v61 = vadd.f32 -1.0, %v1049_v55  ;;  %v1055_v17 = vmul.f32 %v2743_v5, %v1027_v27 }
 0x89a   :  { %3096 = vrcp.f32 %v1060_v57  ;;  %v1056_v63 = vmul.f32 %v2744_v60, %v1028_v47  ;;  %v1058_v10 = vadd.f32 1.0, %v1046_v8  ;;  %v2742_v19 = vadd.f32 -1.0, %v1046_v8  ;;  %v4681_v8 = vld [vmem:[#allocation10 + $0x5] ss:$8 sm:$0xf] }
 0x89b   :  { %3098 = vrcp.f32 %v1061_v58  ;;  %v1057_v6 = vmul.f32 %v2745_v61, %v1029_v28  ;;  %v4621_v47 = vshrl.u32 %v1248_v23, 7 }
 0x89c   :  { %3100 = vrcp.f32 %v1059_v59  ;;  %v1054_v20 = vmul.f32 %v2742_v19, %v1026_v36  ;;  %v4640_v36 = vld [vmem:[#allocation10] ss:$8 sm:$0xf] }
 0x89d   :  { %3102 = vrcp.f32 %v1058_v10  ;;  %v4628_v1 = vsub.s32 3, %v4621_v47  ;;  %v4688_v10 = vld [vmem:[#allocation10 + $0x7] ss:$8 sm:$0xf] }
 0x89f   :  { %v1312_v25 = vrot.slane %v4630_v32, %v4628_v1  ;;  %v1392_v38 = vrot.slane %v4632_v7, %v4628_v1  ;;  %v1272_v46 = vrot.slane %v4640_v36, %v4628_v1  ;;  %v1352_v21 = vrot.slane %v4653_v44, %v4628_v1 }
 0x8a0   :  { %v1432_v23 = vrot.slane %v4681_v8, %v4628_v1 }
 0x8a4   :  { %v3097_v3 = vpop.eup %3096 }
 0x8a5   :  { %v3099_v14 = vpop.eup %3098  ;;  %v4561_v4 = vmul.f32 %v3097_v3, %v1056_v63 }
 0x8a6   :  { %v4563_v16 = vmul.f32 %v3099_v14, %v1057_v6  ;;  %v3101_v9 = vpop.eup %3100  ;;  %v4677_v6 = vsub.s32 2, %v4621_v47 }
 0x8a7   :  { %1285 = vrot.lane.b32.xlu0 %v4561_v4, %s3891_s21  ;;  %v4573_v11 = vmul.f32 %v3101_v9, %v1055_v17  ;;  %v3103_v12 = vpop.eup %3102 }
 0x8a8   :  { %1287 = vrot.lane.b32.xlu1 %v4563_v16, %s3891_s21  ;;  %v4588_v22 = vmul.f32 %v3103_v12, %v1054_v20  ;;  %v1388_v9 = vrot.slane %v4632_v7, %v4677_v6  ;;  %v1308_v17 = vrot.slane %v4630_v32, %v4677_v6 }
 0x8ab   :  { %1365 = vrot.lane.b32.xlu0 %v4561_v4, %s3886_s1 }
 0x8ac   :  { %1367 = vrot.lane.b32.xlu1 %v4563_v16, %s3886_s1 }
 0x8af   :  { %1283 = vrot.lane.b32.xlu0 %v4573_v11, %s3891_s21 }
 0x8b0   :  { %1363 = vrot.lane.b32.xlu1 %v4573_v11, %s3886_s1 }
 0x8b3   :  { %1244 = vrot.lane.b32.xlu0 %v4561_v4, %s3892_s4 }
 0x8b4   :  { %1246 = vrot.lane.b32.xlu1 %v4563_v16, %s3892_s4 }
 0x8b7   :  { %1325 = vrot.lane.b32.xlu0 %v4561_v4, %s3893_s11 }
 0x8b8   :  { %1327 = vrot.lane.b32.xlu1 %v4563_v16, %s3893_s11 }
 0x8bb   :  { %1242 = vrot.lane.b32.xlu0 %v4573_v11, %s3892_s4 }
 0x8bc   :  { %1323 = vrot.lane.b32.xlu1 %v4573_v11, %s3893_s11 }
 0x8bf   :  { %1401 = vrot.lane.b32.xlu0 %v4588_v22, %s3889_s30 }
 0x8c0   :  { %1407 = vrot.lane.b32.xlu1 %v4563_v16, %s3889_s30 }
 0x8c3   :  { %1481 = vrot.lane.b32.xlu0 %v4588_v22, %s3894_s6 }
 0x8c4   :  { %1487 = vrot.lane.b32.xlu1 %v4563_v16, %s3894_s6 }
 0x8c7   :  { %1405 = vrot.lane.b32.xlu0 %v4561_v4, %s3889_s30 }
 0x8c8   :  { %1485 = vrot.lane.b32.xlu1 %v4561_v4, %s3894_s6 }
 0x8cb   :  { %1441 = vrot.lane.b32.xlu0 %v4588_v22, %s3895_s2 }
 0x8cc   :  { %1447 = vrot.lane.b32.xlu1 %v4563_v16, %s3895_s2 }
 0x8cf   :  { %1445 = vrot.lane.b32.xlu0 %v4561_v4, %s3895_s2 }
 0x8d0   :  { %1684 = vrot.lane.b32.xlu1 %v4556_v39, %s3865_s15 }
 0x8d3   :  { %1521 = vrot.lane.b32.xlu0 %v4588_v22, %s3896_s5 }
 0x8d4   :  { %1525 = vrot.lane.b32.xlu1 %v4561_v4, %s3896_s5 }
 0x8d7   :  { %1527 = vrot.lane.b32.xlu0 %v4563_v16, %s3896_s5 }
 0x8d8   :  { %1281 = vrot.lane.b32.xlu1 %v4588_v22, %s3891_s21 }
 0x8db   :  { %1361 = vrot.lane.b32.xlu0 %v4588_v22, %s3886_s1 }
 0x8dc   :  { %1240 = vrot.lane.b32.xlu1 %v4588_v22, %s3892_s4 }
 0x8df   :  { %1321 = vrot.lane.b32.xlu0 %v4588_v22, %s3893_s11 }
 0x8e0   :  { %1403 = vrot.lane.b32.xlu1 %v4573_v11, %s3889_s30 }
 0x8e3   :  { %1483 = vrot.lane.b32.xlu0 %v4573_v11, %s3894_s6 }
 0x8e4   :  { %1443 = vrot.lane.b32.xlu1 %v4573_v11, %s3895_s2 }
 0x8e7   :  { %1523 = vrot.lane.b32.xlu0 %v4573_v11, %s3896_s5 }
 0x919   :  { %v1286_v24 = vpop.permute.xlu0 %1285 }
 0x91a   :  { %v4619_v27 = vpop.permute.xlu1 %1287 }
 0x91b   :  { %v1290_v39 = vsel %vm1289_vm6, %v1286_v24, %v4619_v27 }
 0x91c   :  { %v1320_v51 = vmul.f32 %v1312_v25, %v1290_v39  ;;  %v1268_v39 = vrot.slane %v4640_v36, %v4677_v6 }
 0x91d   :  { %v1366_v28 = vpop.permute.xlu0 %1365 }
 0x91e   :  { %v4625_v31 = vpop.permute.xlu1 %1367  ;;  %v1568_v58 = vrot.slane %v1320_v51, 4 }
 0x91f   :  { %v1370_v42 = vsel %vm1369_vm7, %v1366_v28, %v4625_v31 }
 0x920   :  { %v1400_v53 = vmul.f32 %v1392_v38, %v1370_v42  ;;  %v1348_v38 = vrot.slane %v4653_v44, %v4677_v6 }
 0x921   :  { %v4634_v33 = vpop.permute.xlu0 %1283 }
 0x922   :  { %v4638_v26 = vpop.permute.xlu1 %1363  ;;  %v1580_v59 = vrot.slane %v1400_v53, 4  ;;  %v1291_v20 = vsel %vm1289_vm6, %v4634_v33, %v1286_v24 }
 0x923   :  { %v1371_v12 = vsel %vm1369_vm7, %v4638_v26, %v1366_v28  ;;  %v1319_v51 = vmul.f32 %v1308_v17, %v1291_v20 }
 0x925   :  { %v1245_v43 = vpop.permute.xlu0 %1244 }
 0x926   :  { %v4655_v45 = vpop.permute.xlu1 %1246 }
 0x927   :  { %v1251_v48 = vsel %vm1250_vm8, %v1245_v43, %v4655_v45 }
 0x928   :  { %v1280_v55 = vmul.f32 %v1272_v46, %v1251_v48  ;;  %v1512_v46 = vrot.slane %v4688_v10, %v4628_v1  ;;  %v1399_v48 = vmul.f32 %v1388_v9, %v1371_v12  ;;  %v1567_v12 = vrot.slane %v1319_v51, 4 }
 0x929   :  { %v1326_v54 = vpop.permute.xlu0 %1325 }
 0x92a   :  { %v4665_v56 = vpop.permute.xlu1 %1327  ;;  %v1612_v63 = vsel %vm976_vm4, %v1280_v55, %v1568_v58  ;;  %v1579_v17 = vrot.slane %v1399_v48, 4 }
 0x92b   :  { %v1330_v57 = vsel %vm1329_vm9, %v1326_v54, %v4665_v56 }
 0x92c   :  { %v1360_v60 = vmul.f32 %v1352_v21, %v1330_v57  ;;  %v1428_v21 = vrot.slane %v4681_v8, %v4677_v6  ;;  %v4723_v57 = vld [vmem:[#allocation10 + $0x6] ss:$8 sm:$0xf] }
 0x92d   :  { %v4670_v61 = vpop.permute.xlu0 %1242  ;;  %v1472_v9 = vrot.slane %v4723_v57, %v4628_v1 }
 0x92e   :  { %v4672_v62 = vpop.permute.xlu1 %1323  ;;  %v1616_v3 = vsel %vm976_vm4, %v1360_v60, %v1580_v59  ;;  %v1252_v42 = vsel %vm1250_vm8, %v4670_v61, %v1245_v43 }
 0x92f   :  { %v1628_v2 = vpack.c.bf16 %v1616_v3, %v1612_v63  ;;  %v1331_v24 = vsel %vm1329_vm9, %v4672_v62, %v1326_v54  ;;  %v1279_v60 = vmul.f32 %v1268_v39, %v1252_v42  ;;  %v1508_v63 = vrot.slane %v4688_v10, %v4677_v6 }
 0x930   :  { %v1359_v59 = vmul.f32 %v1348_v38, %v1331_v24  ;;  %v1468_v39 = vrot.slane %v4723_v57, %v4677_v6 }
 0x931   :  { %1786 = vmatprep.subr.bf16.mxu0 %v1628_v2  ;;  %v4679_v14 = vpop.permute.xlu0 %1401  ;;  %v1611_v24 = vsel %vm976_vm4, %v1279_v60, %v1567_v12 }
 0x932   :  { %v1408_v5 = vpop.permute.xlu1 %1407 }
 0x933   :  { %v1413_v28 = vsel %vm1409_vm10, %v1408_v5, %v4679_v14 }
 0x934   :  { %v1440_v54 = vmul.f32 %v1432_v23, %v1413_v28  ;;  %v1615_v28 = vsel %vm976_vm4, %v1359_v59, %v1579_v17 }
 0x935   :  { %v4690_v19 = vpop.permute.xlu0 %1481 }
 0x936   :  { %v1488_v25 = vpop.permute.xlu1 %1487 }
 0x937   :  { %v1493_v53 = vsel %vm1489_vm11, %v1488_v25, %v4690_v19 }
 0x938   :  { %v1520_v3 = vmul.f32 %v1512_v46, %v1493_v53 }
 0x939   :  { %v4721_v55 = vpop.permute.xlu0 %1405 }
 0x93a   :  { %v4725_v58 = vpop.permute.xlu1 %1485  ;;  %v1410_v43 = vsel %vm1409_vm10, %v4721_v55, %v1408_v5  ;;  %v1592_v5 = vrot.slane %v1440_v54, 4  ;;  %v1604_v46 = vrot.slane %v1520_v3, 4 }
 0x93b   :  { %v1490_v2 = vsel %vm1489_vm11, %v4725_v58, %v1488_v25  ;;  %v1439_v20 = vmul.f32 %v1428_v21, %v1410_v43  ;;  %v1627_v43 = vpack.c.bf16 %v1615_v28, %v1611_v24 }
 0x93c   :  { %v1519_v25 = vmul.f32 %v1508_v63, %v1490_v2  ;;  %v1620_v59 = vsel %vm976_vm4, %v4563_v16, %v1592_v5  ;;  %v4765_v5 = vsub.s32 0, %v4621_v47 }
 0x93d   :  { %v4738_v23 = vpop.permute.xlu0 %1441  ;;  %v1591_v51 = vrot.slane %v1439_v20, 4 }
 0x93e   :  { %v1448_v38 = vpop.permute.xlu1 %1447  ;;  %v1603_v63 = vrot.slane %v1519_v25, 4 }
 0x93f   :  { %v1453_v42 = vsel %vm1449_vm12, %v1448_v38, %v4738_v23  ;;  %v1619_v17 = vsel %vm976_vm4, %v4561_v4, %v1591_v51 }
 0x940   :  { %v1480_v48 = vmul.f32 %v1472_v9, %v1453_v42  ;;  %v4756_v9 = vld [vmem:[#allocation10 + $0x20] ss:$8 sm:$0xf]  ;;  %v1300_v42 = vrot.slane %v4630_v32, %v4765_v5 }
 0x941   :  { %v4747_v53 = vpop.permute.xlu0 %1445  ;;  %v1548_v24 = vrot.slane %v4756_v9, %v4677_v6  ;;  %v1552_v25 = vrot.slane %v4756_v9, %v4628_v1  ;;  %v1260_v6 = vrot.slane %v4640_v36, %v4765_v5 }
 0x942   :  { %v1685_v21 = vpop.permute.xlu1 %1684  ;;  %v1450_v54 = vsel %vm1449_vm12, %v4747_v53, %v1448_v38  ;;  %v1624_v60 = vsel %vm976_vm4, %v1480_v48, %v1604_v46  ;;  %v4768_v38 = vsub.s32 1, %v4621_v47  ;;  %v1830_v48 = vpack.c.bf16 %v4563_v16, %v4563_v16 }
 0x943   :  { %v1479_v2 = vmul.f32 %v1468_v39, %v1450_v54  ;;  %2757 = vmatmul.mubr.msk.bf16.vlgmr.msra.gmra.mrb[16].mxu0 %vm523_vm3, %v1685_v21  ;;  %v1632_v3 = vpack.c.bf16 %v1624_v60, %v1620_v59  ;;  %v1380_v54 = vrot.slane %v4632_v7, %v4765_v5 }
 0x944   :  { %1787 = vmatpush1.bf16.msra.mxu0 %v1627_v43  ;;  %1818 = vmatprep.mubr.bf16.mxu0 %v3883_v13  ;;  %v1304_v46 = vrot.slane %v4630_v32, %v4768_v38  ;;  %v1384_v59 = vrot.slane %v4632_v7, %v4768_v38  ;;  %v1264_v60 = vrot.slane %v4640_v36, %v4768_v38 }
 0x945   :  { %v1623_v12 = vsel %vm976_vm4, %v1479_v2, %v1603_v63  ;;  %1788 = vmatprep.subr.bf16.mxu0 %v1632_v3  ;;  %v4762_v20 = vpop.permute.xlu0 %1521  ;;  %v1420_v63 = vrot.slane %v4681_v8, %v4765_v5  ;;  %v1424_v2 = vrot.slane %v4681_v8, %v4768_v38  ;;  %v1340_v3 = vrot.slane %v4653_v44, %v4765_v5 }
 0x946   :  { %v4770_v39 = vpop.permute.xlu1 %1525  ;;  %v1631_v28 = vpack.c.bf16 %v1623_v12, %v1619_v17 }
 0x948   :  { %1789 = vmatpush1.bf16.msra.mxu0 %v1631_v28 }
 0x949   :  { %v1528_v47 = vpop.permute.xlu0 %1527 }
 0x94a   :  { %v1282_v51 = vpop.permute.xlu1 %1281  ;;  %v1530_v21 = vsel %vm1529_vm13, %v4770_v39, %v1528_v47  ;;  %v1533_v1 = vsel %vm1529_vm13, %v1528_v47, %v4762_v20 }
 0x94b   :  { %v1292_v32 = vsel %vm1289_vm6, %v1282_v51, %v4634_v33  ;;  %v1559_v16 = vmul.f32 %v1548_v24, %v1530_v21  ;;  %v1560_v43 = vmul.f32 %v1552_v25, %v1533_v1  ;;  %v1344_v24 = vrot.slane %v4653_v44, %v4768_v38 }
 0x94c   :  { %v1318_v17 = vmul.f32 %v1304_v46, %v1292_v32  ;;  %v1293_v7 = vsel %vm1289_vm6, %v4619_v27, %v1282_v51  ;;  %v1460_v46 = vrot.slane %v4723_v57, %v4765_v5  ;;  %v1464_v27 = vrot.slane %v4723_v57, %v4768_v38 }
 0x94d   :  { %v1635_v12 = vpack.c.bf16 %v1559_v16, %v1559_v16  ;;  %v1636_v33 = vpack.c.bf16 %v1560_v43, %v1560_v43  ;;  %v1362_v28 = vpop.permute.xlu0 %1361  ;;  %v1500_v51 = vrot.slane %v4688_v10, %v4765_v5  ;;  %v1540_v1 = vrot.slane %v4756_v9, %v4765_v5  ;;  %v4835_v43 = vld [vmem:[#allocation23] sm:$0x3] }
 0x94e   :  { %v1241_v36 = vpop.permute.xlu1 %1240  ;;  %v1372_v25 = vsel %vm1369_vm7, %v1362_v28, %v4638_v26  ;;  %v1373_v8 = vsel %vm1369_vm7, %v4625_v31, %v1362_v28  ;;  %v1504_v31 = vrot.slane %v4688_v10, %v4768_v38  ;;  %v1317_v32 = vmul.f32 %v1300_v42, %v1293_v7  ;;  %v4843_v42 = vld [vmem:[#allocation7 + $0x40] sm:$0xff]  }
 0x94f   :  { %v1253_v44 = vsel %vm1250_vm8, %v1241_v36, %v4670_v61  ;;  %v1397_v47 = vmul.f32 %v1380_v54, %v1373_v8  ;;  %v1398_v21 = vmul.f32 %v1384_v59, %v1372_v25  ;;  %2760 = vmatprep.subr.msk.bf16.mxu0 %vm419_vm1, %v1636_v33  ;;  %v1740_v26 = vsel %vm419_vm1, %v1635_v12, 0 }
 0x950   :  { %v1566_v61 = vrot.slane %v1318_v17, 4  ;;  %v1254_v54 = vsel %vm1250_vm8, %v4655_v45, %v1241_v36  ;;  %v1278_v16 = vmul.f32 %v1264_v60, %v1253_v44  ;;  %1791 = vmatpush1.bf16.msra.mxu0 %v1740_v26  ;;  %v1565_v25 = vrot.slane %v1317_v32, 4  ;;  %v4857_v44 = vld [vmem:[#allocation7] sm:$0xff]  }
 0x951   :  { %v1322_v57 = vpop.permute.xlu0 %1321  ;;  %v1577_v59 = vrot.slane %v1397_v47, 4  ;;  %v1578_v12 = vrot.slane %v1398_v21, 4  ;;  %2855 = vmatprep.subr.bf16.mxu0 %v4843_v42  ;;  %v1277_v7 = vmul.f32 %v1260_v6, %v1254_v54 }
 0x952   :  { %v1404_v33 = vpop.permute.xlu1 %1403  ;;  %v1332_v10 = vsel %vm1329_vm9, %v1322_v57, %v4672_v62  ;;  %v1333_v5 = vsel %vm1329_vm9, %v4665_v56, %v1322_v57  ;;  %v1544_v56 = vrot.slane %v4756_v9, %v4768_v38 }
 0x953   :  { %v1411_v45 = vsel %vm1409_vm10, %v1404_v33, %v4721_v55  ;;  %v1412_v60 = vsel %vm1409_vm10, %v4679_v14, %v1404_v33  ;;  %v1357_v17 = vmul.f32 %v1340_v3, %v1333_v5  ;;  %v1358_v28 = vmul.f32 %v1344_v24, %v1332_v10  ;;  %2761 = vmatmul.mubr.msk.bf16.vlgmr.msra.gmra.mrb[16].mxu0 %vm1193_vm5, %v4835_v43  ;;  %v4868_v24 = vld [vmem:[#allocation7 + $0x48] sm:$0xff]  }
 0x954   :  { %v1437_v62 = vmul.f32 %v1420_v63, %v1412_v60  ;;  %v1438_v36 = vmul.f32 %v1424_v2, %v1411_v45  ;;  %2856 = vmatpush3.bf16.msra.mxu0 %v4857_v44  ;;  %1903 = vmatprep.mubr.bf16.mxu0 %v1830_v48  ;;  %v1610_v55 = vsel %vm976_vm4, %v1278_v16, %v1566_v61 }
 0x955   :  { %v1613_v8 = vsel %vm976_vm4, %v1357_v17, %v1577_v59  ;;  %v1484_v14 = vpop.permute.xlu0 %1483  ;;  %v1614_v6 = vsel %vm976_vm4, %v1358_v28, %v1578_v12  ;;  %2857 = vmatprep.subr.bf16.mxu0 %v4868_v24  ;;  %v4880_v59 = vld [vmem:[#allocation7 + $0x8] sm:$0xff]   ;;  %v4896_v17 = vld [vmem:[#allocation7 + $0x10] sm:$0xff]  }
 0x956   :  { %v1589_v63 = vrot.slane %v1437_v62, 4  ;;  %v1590_v2 = vrot.slane %v1438_v36, 4  ;;  %v1444_v3 = vpop.permute.xlu1 %1443  ;;  %v1491_v9 = vsel %vm1489_vm11, %v1484_v14, %v4725_v58  ;;  %v1492_v38 = vsel %vm1489_vm11, %v4690_v19, %v1484_v14  ;;  %v4911_v62 = vld [vmem:[#allocation7 + $0x20] sm:$0xff]   ;;  %v4939_v14 = vld [vmem:[#allocation7 + $0x38] sm:$0xff]  }
 0x957   :  { %v1451_v48 = vsel %vm1449_vm12, %v1444_v3, %v4747_v53  ;;  %v1452_v47 = vsel %vm1449_vm12, %v4738_v23, %v1444_v3  ;;  %v1517_v21 = vmul.f32 %v1500_v51, %v1492_v38  ;;  %v1518_v26 = vmul.f32 %v1504_v31, %v1491_v9 }
 0x958   :  { %v1609_v58 = vsel %vm976_vm4, %v1277_v7, %v1565_v25  ;;  %v1617_v32 = vsel %vm976_vm4, %v4588_v22, %v1589_v63  ;;  %v1477_v19 = vmul.f32 %v1460_v46, %v1452_v47  ;;  %v1626_v61 = vpack.c.bf16 %v1614_v6, %v1610_v55  ;;  %2858 = vmatpush3.bf16.msra.mxu0 %v4880_v59  ;;  %v4889_v46 = vld [vmem:[#allocation7 + $0x50] sm:$0xff]   ;;  %v4907_v7 = vld [vmem:[#allocation7 + $0x60] sm:$0xff]   ;;  %v4923_v25 = vld [vmem:[#allocation7 + $0x28] sm:$0xff]  }
 0x959   :  { %v1478_v54 = vmul.f32 %v1464_v27, %v1451_v48  ;;  %v1601_v16 = vrot.slane %v1517_v21, 4  ;;  %v1602_v57 = vrot.slane %v1518_v26, 4  ;;  %v1625_v53 = vpack.c.bf16 %v1613_v8, %v1609_v58  ;;  %v1524_v12 = vpop.permute.xlu0 %1523  ;;  %2859 = vmatprep.subr.bf16.mxu0 %v4889_v46  ;;  %v4926_v8 = vld [vmem:[#allocation7 + $0x70] sm:$0xff]  }
 0x95a   :  { %1745 = vmatprep.subr.bf16.mxu1 %v1626_v61  ;;  %v1531_v23 = vsel %vm1529_vm13, %v1524_v12, %v4770_v39  ;;  %v1532_v51 = vsel %vm1529_vm13, %v4762_v20, %v1524_v12  ;;  %v1618_v27 = vsel %vm976_vm4, %v4573_v11, %v1590_v2  ;;  %v4899_v20 = vld [vmem:[#allocation7 + $0x58] sm:$0xff]   ;;  %v1828_v36 = vpack.c.bf16 %v4573_v11, %v4573_v11  ;;  %v4931_v11 = vld [vmem:[#allocation7 + $0x30] sm:$0xff]  }
 0x95b   :  { %v1621_v31 = vsel %vm976_vm4, %v1477_v19, %v1601_v16  ;;  %1746 = vmatpush1.bf16.msra.mxu1 %v1625_v53  ;;  %v1557_v33 = vmul.f32 %v1540_v1, %v1532_v51  ;;  %v1558_v10 = vmul.f32 %v1544_v56, %v1531_v23  ;;  %v1622_v5 = vsel %vm976_vm4, %v1478_v54, %v1602_v57  ;;  %v4903_v1 = vld [vmem:[#allocation7 + $0x18] sm:$0xff]   ;;  %v4918_v56 = vld [vmem:[#allocation7 + $0x68] sm:$0xff]  }
 0x95c   :  { %v1630_v45 = vpack.c.bf16 %v1622_v5, %v1618_v27  ;;  %v1629_v39 = vpack.c.bf16 %v1621_v31, %v1617_v32  ;;  %2860 = vmatpush3.bf16.msra.mxu0 %v4896_v17  ;;  %v1829_v55 = vpack.c.bf16 %v4561_v4, %v4561_v4  ;;  %v1827_v4 = vpack.c.bf16 %v4588_v22, %v4588_v22 }
 0x95d   :  { %v1634_v60 = vpack.c.bf16 %v1558_v10, %v1558_v10  ;;  %v1633_v50 = vpack.c.bf16 %v1557_v33, %v1557_v33  ;;  %2861 = vmatprep.subr.bf16.mxu0 %v4899_v20 }
 0x95e   :  { %1747 = vmatprep.subr.bf16.mxu1 %v1630_v45 }
 0x95f   :  { %1748 = vmatpush1.bf16.msra.mxu1 %v1629_v39  ;;  %v1734_v28 = vsel %vm419_vm1, %v1633_v50, 0 }
 0x960   :  { %2758 = vmatprep.subr.msk.bf16.mxu1 %vm419_vm1, %v1634_v60  ;;  %2862 = vmatpush3.bf16.msra.mxu0 %v4903_v1 }
 0x961   :  { %2863 = vmatprep.subr.bf16.mxu0 %v4907_v7 }
 0x963   :  { %1750 = vmatpush1.bf16.msra.mxu1 %v1734_v28 }
 0x964   :  { %2833 = vmatprep.subr.bf16.mxu1 %v4843_v42  ;;  %2864 = vmatpush3.bf16.msra.mxu0 %v4911_v62 }
 0x965   :  { %2865 = vmatprep.subr.bf16.mxu0 %v4918_v56 }
 0x966   :  { %2759 = vmatmul.mubr.msk.bf16.vlgmr.msra.gmra.mrb[12].mxu1 %vm1193_vm5, %v4835_v43  ;;  %v4934_v43 = vld [vmem:[#allocation7 + $0x78] sm:$0xff]  }
 0x967   :  { %2834 = vmatpush3.bf16.msra.mxu1 %v4857_v44  ;;  %1863 = vmatprep.mubr.bf16.mxu1 %v1828_v36 }
 0x968   :  { %2835 = vmatprep.subr.bf16.mxu1 %v4868_v24  ;;  %2866 = vmatpush3.bf16.msra.mxu0 %v4923_v25 }
 0x969   :  { %2867 = vmatprep.subr.bf16.mxu0 %v4926_v8 }
 0x96b   :  { %2836 = vmatpush3.bf16.msra.mxu1 %v4880_v59 }
 0x96c   :  { %2837 = vmatprep.subr.bf16.mxu1 %v4889_v46  ;;  %2868 = vmatpush3.bf16.msra.mxu0 %v4931_v11 }
 0x96d   :  { %2869 = vmatprep.subr.bf16.mxu0 %v4934_v43 }
 0x96f   :  { %2838 = vmatpush3.bf16.msra.mxu1 %v4896_v17 }
 0x970   :  { %2839 = vmatprep.subr.bf16.mxu1 %v4899_v20  ;;  %2870 = vmatpush3.bf16.msra.mxu0 %v4939_v14 }
 0x971   :  { %2961 = vmatprep.subr.bf16.mxu0 %v3881_v0 }
 0x973   :  { %2840 = vmatpush3.bf16.msra.mxu1 %v4903_v1  ;;  %1904 = vmatmul.mubr.bf16.vlgmr.msra.gmra.mrb[20].mxu0 %v1829_v55 }
 0x974   :  { %2841 = vmatprep.subr.bf16.mxu1 %v4907_v7  ;;  %2963 = vmatprep.mubr.msk.bf16.mxu0 %vm3882_vm0, %v3881_v0 }
 0x977   :  { %2842 = vmatpush3.bf16.msra.mxu1 %v4911_v62 }
 0x978   :  { %2843 = vmatprep.subr.bf16.mxu1 %v4918_v56 }
 0x97b   :  { %2844 = vmatpush3.bf16.msra.mxu1 %v4923_v25 }
 0x97c   :  { %2845 = vmatprep.subr.bf16.mxu1 %v4926_v8 }
 0x97f   :  { %2846 = vmatpush3.bf16.msra.mxu1 %v4931_v11 }
 0x980   :  { %2847 = vmatprep.subr.bf16.mxu1 %v4934_v43 }
 0x983   :  { %2848 = vmatpush3.bf16.msra.mxu1 %v4939_v14 }
 0x984   :  { %2951 = vmatprep.subr.bf16.mxu1 %v3881_v0 }
 0x986   :  { %1864 = vmatmul.mubr.bf16.vlgmr.msra.gmra.mrb[16].mxu1 %v1827_v4 }
 0x987   :  { %2957 = vmatprep.mubr.msk.bf16.mxu1 %vm3882_vm0, %v3881_v0 }
 0xa26   :  { %v4961_v6 = vpop.f32.mrb[16].mxu0 }
 0xa27   :  { %v4963_v63 = vpop.f32.mrb[17].mxu0  ;;  %v2021_v47 = vmul.f32 %v4961_v6, %v4961_v6  ;;  %v2012_v54 = vsel %vm976_vm4, %v4961_v6, 0.0 }
 0xa28   :  { %v1824_v2 = vpop.f32.mrb[18].mxu0  ;;  %v2022_v16 = vmul.f32 %v4963_v63, %v4963_v63  ;;  %v2014_v51 = vsel %vm976_vm4, %v4963_v63, 0.0 }
 0xa29   :  { %v1825_v3 = vpop.f32.mrb[19].mxu0  ;;  %v2026_v23 = vsel %vm976_vm4, %v2021_v47, 0.0 }
 0xa2a   :  { %v2028_v33 = vsel %vm976_vm4, %v2022_v16, 0.0 }
 0xa39   :  { %v4965_v9 = vpop.f32.mrb[12].mxu1 }
 0xa3a   :  { %v2009_v38 = vsel %vm976_vm4, %v4965_v9, 0.0  ;;  %v2019_v22 = vmul.f32 %v4965_v9, %v4965_v9  ;;  %v4971_v48 = vpop.f32.mrb[13].mxu1 }
 0xa3b   :  { %v2010_v21 = vsel %vm976_vm4, %v4971_v48, 0.0  ;;  %v2020_v26 = vmul.f32 %v4971_v48, %v4971_v48  ;;  %v1783_v58 = vpop.f32.mrb[14].mxu1 }
 0xa3c   :  { %v2023_v32 = vsel %vm976_vm4, %v2019_v22, 0.0  ;;  %v2011_v19 = vadd.f32 %v2010_v21, %v2009_v38  ;;  %v1784_v61 = vpop.f32.mrb[15].mxu1 }
 0xa3d   :  { %v2024_v57 = vsel %vm976_vm4, %v2020_v26, 0.0 }
 0xa3e   :  { %v2025_v53 = vadd.f32 %v2024_v57, %v2023_v32  ;;  %v2013_v12 = vadd.f32 %v2012_v54, %v2011_v19 }
 0xa40   :  { %v2027_v27 = vadd.f32 %v2026_v23, %v2025_v53  ;;  %v4988_v31 = vadd.f32 %v2014_v51, %v2013_v12 }
 0xa42   :  { %v4991_v10 = vadd.f32 %v2028_v33, %v2027_v27 }
 0xa46   :  { %v2871_v5 = vpop.f32.mrb[20].mxu0 }
 0xa47   :  { %v2872_v45 = vpop.f32.mrb[21].mxu0 }
 0xa48   :  { %v2873_v39 = vadd.f32 %v2872_v45, %v2871_v5  ;;  %v2874_v60 = vpop.f32.mrb[22].mxu0 }
 0xa49   :  { %v2875_v50 = vpop.f32.mrb[23].mxu0 }
 0xa4a   :  { %1912 = vrot.lane.b32.xlu1 %v2873_v39, %s3865_s15 }
 0xa59   :  { %v2849_v28 = vpop.f32.mrb[16].mxu1 }
 0xa5a   :  { %v2850_v36 = vpop.f32.mrb[17].mxu1 }
 0xa5b   :  { %v2851_v55 = vadd.f32 %v2850_v36, %v2849_v28  ;;  %v2852_v4 = vpop.f32.mrb[18].mxu1  ;;  %v5018_v36 = vld [vmem:[#allocation8 + $0x4] ss:$8 sps:$4 sm:$0xff]  }
 0xa5c   :  { %v2853_v2 = vpop.f32.mrb[19].mxu1  ;;  %v5032_v4 = vld [vmem:[#allocation8 + $0x24] ss:$8 sps:$4 sm:$0xff]  }
 0xa5d   :  { %v5035_v2 = vld [vmem:[#allocation8 + $0x20] ss:$8 sps:$4 sm:$0xff]  }
 0xabc   :  { %v1913_v3 = vpop.permute.xlu1 %1912 }
 0xabd   :  { %v1915_v38 = vsel %vm523_vm3, %v2851_v55, %v1913_v3  ;;  %v5029_v55 = vld [vmem:[#allocation8 + $0x10] ss:$8 sps:$4 sm:$0xff]   ;;  %v5038_v3 = vld [vmem:[#allocation8 + $0x34] ss:$8 sps:$4 sm:$0xff]  }
 0xabe   :  { %1925 = vrot.lane.b32.xlu1 %v1915_v38, %s3886_s1  ;;  %1919 = vrot.lane.b32.xlu0 %v1915_v38, %s3851_s10  ;;  %s3897_s10 = smov [#allocation44]  }
 0xac2   :  { %1922 = vrot.lane.b32.xlu1 %v1915_v38, %s3884_s23  ;;  %1916 = vrot.lane.b32.xlu0 %v1915_v38, %s3888_s3 }
 0xac6   :  { %1934 = vrot.lane.b32.xlu1 %v1915_v38, %s3885_s27  ;;  %1928 = vrot.lane.b32.xlu0 %v1915_v38, %s3889_s30 }
 0xaca   :  { %1937 = vrot.lane.b32.xlu1 %v1915_v38, %s3887_s20  ;;  %1931 = vrot.lane.b32.xlu0 %v1915_v38, %s3890_s16 }
 0xb30   :  { %v1926_v22 = vpop.permute.xlu1 %1925  ;;  %v1920_v47 = vpop.permute.xlu0 %1919 }
 0xb31   :  { %v1927_v21 = vmul.f32 %v4509_v30, %v1926_v22  ;;  %v1921_v26 = vmul.f32 %v4507_v29, %v1920_v47  ;;  %v1961_v22 = vrot.slane %v4552_v37, 4 }
 0xb33   :  { %v1944_v19 = vrot.slane %v1927_v21, 4  ;;  %v1941_v61 = vrot.slane %v1921_v26, 4 }
 0xb34   :  { %v1923_v58 = vpop.permute.xlu1 %1922  ;;  %v1917_v32 = vpop.permute.xlu0 %1916 }
 0xb35   :  { %v1924_v54 = vmul.f32 %v4513_v34, %v1923_v58  ;;  %v1918_v16 = vmul.f32 %v4515_v35, %v1917_v32 }
 0xb37   :  { %v1953_v57 = vsel %vm976_vm4, %v1924_v54, %v1944_v19  ;;  %v1952_v53 = vsel %vm976_vm4, %v1918_v16, %v1941_v61  ;;  %v2124_v16 = vld [vmem:[#allocation32] sm:$0xf] }
 0xb38   :  { %v1956_v12 = vpack.c.bf16 %v1953_v57, %v1952_v53  ;;  %v1935_v23 = vpop.permute.xlu1 %1934  ;;  %v1929_v51 = vpop.permute.xlu0 %1928  ;;  %v2052_v57 = vld [vmem:[#allocation29] sm:$0xf] }
 0xb39   :  { %v1936_v27 = vmul.f32 %v4519_v40, %v1935_v23  ;;  %v1930_v30 = vmul.f32 %v4521_v41, %v1929_v51  ;;  %v1959_v41 = vld [vmem:[#allocation25] sm:$0x3] }
 0xb3a   :  { %2952 = vmatpush3.bf16.msra.mxu1 %v1956_v12 }
 0xb3b   :  { %v1947_v29 = vrot.slane %v1930_v30, 4  ;;  %2953 = vmatprep.subr.bf16.mxu1 %v3881_v0  ;;  %v1950_v34 = vrot.slane %v1936_v27, 4 }
 0xb3c   :  { %v1938_v33 = vpop.permute.xlu1 %1937  ;;  %v1932_v5 = vpop.permute.xlu0 %1931 }
 0xb3d   :  { %v1939_v35 = vmul.f32 %v4527_v49, %v1938_v33  ;;  %v1933_v45 = vmul.f32 %v4529_v52, %v1932_v5  ;;  %v1954_v39 = vsel %vm976_vm4, %v1915_v38, %v1947_v29  ;;  %v5022_v49 = vld [vmem:[#allocation8] ss:$8 sps:$4 sm:$0xff]   ;;  %v5026_v52 = vld [vmem:[#allocation8 + $0x14] ss:$8 sps:$4 sm:$0xff]   ;;  %v5041_v38 = vld [vmem:[#allocation8 + $0x30] ss:$8 sps:$4 sm:$0xff]  }
 0xb3e   :  { %v2113_v29 = vld [vmem:[#allocation31] sm:$0xf] }
 0xb3f   :  { %v1955_v60 = vsel %vm976_vm4, %v1933_v45, %v1950_v34  ;;  %v1958_v28 = vpack.c.bf16 %v1939_v35, %v1939_v35 }
 0xb40   :  { %v1957_v50 = vpack.c.bf16 %v1955_v60, %v1954_v39 }
 0xb41   :  { %v1967_v40 = vsel %vm419_vm1, %v1958_v28, 0 }
 0xb42   :  { %2954 = vmatpush3.bf16.msra.mxu1 %v1957_v50 }
 0xb43   :  { %2955 = vmatprep.subr.bf16.mxu1 %v3881_v0 }
 0xb46   :  { %2956 = vmatpush3.bf16.msra.mxu1 %v1967_v40 }
 0xb47   :  { %2198 = vmatprep.subr.bf16.mxu1 %v5018_v36 }
 0xb49   :  { %2958 = vmatmul.mubr.msk.bf16.vlgmr.msra.gmra.mrb[20].mxu1 %vm1193_vm5, %v1959_v41 }
 0xb4a   :  { %2199 = vmatpush1.bf16.msra.mxu1 %v5022_v49  ;;  %2230 = vmatprep.mubr.bf16.mxu1 %v3883_v13 }
 0xb4b   :  { %2200 = vmatprep.subr.bf16.mxu1 %v5026_v52 }
 0xb4e   :  { %2201 = vmatpush1.bf16.msra.mxu1 %v5029_v55 }
 0xb4f   :  { %2202 = vmatprep.subr.bf16.mxu1 %v5032_v4 }
 0xb52   :  { %2203 = vmatpush1.bf16.msra.mxu1 %v5035_v2 }
 0xb53   :  { %2204 = vmatprep.subr.bf16.mxu1 %v5038_v3 }
 0xb56   :  { %2205 = vmatpush1.bf16.msra.mxu1 %v5041_v38 }
 0xc1c   :  { %v2003_v47 = vpop.f32.mrb[20].mxu1 }
 0xc1d   :  { %v2004_v21 = vadd.f32 %v2003_v47, %v1961_v22  ;;  %v2959_v26 = vpop.f32.mrb[21].mxu1 }
 0xc1e   :  { %v2006_v58 = vpop.f32.mrb[22].mxu1 }
 0xc1f   :  { %v2960_v32 = vpop.f32.mrb[23].mxu1  ;;  %v2102_v19 = vsel %vm976_vm4, %v2004_v21, 0.0  ;;  %v2106_v61 = vmul.f32 %v2004_v21, %v2004_v21 }
 0xc20   :  { %2103 = vadd.xlane.f32.xlu0 %v2102_v19 }
 0xc21   :  { %v2107_v54 = vsel %vm976_vm4, %v2106_v61, 0.0 }
 0xc22   :  { %2108 = vadd.xlane.f32.xlu1 %v2107_v54 }
 0xc33   :  { %2127 = vperm.xlu1 %3049, %v2124_v16  }
 0xc57   :  { %2030 = vadd.xlane.f32.xlu1 %v4991_v10 }
 0xc68   :  { %2055 = vperm.xlu1 %3049, %v2052_v57  }
 0xcad   :  { %v2104_v53 = vpop.xlane.xlu0 %2103 }
 0xcae   :  { %v2105_v37 = vmul.f32 0.0078125, %v2104_v53 }
 0xcaf   :  { %v2109_v12 = vpop.xlane.xlu1 %2108 }
 0xcb0   :  { %v2111_v23 = vmul.f32 %v2105_v37, %v2105_v37  ;;  %v2110_v51 = vmul.f32 0.0078125, %v2109_v12  ;;  %v2117_v34 = vsub.f32 %v2004_v21, %v2105_v37  ;;  %v2141_v21 = vld [vmem:[#allocation37] sm:$0xf] }
 0xcb2   :  { %v2112_v27 = vsub.f32 %v2110_v51, %v2111_v23 }
 0xcb3   :  { %v2128_v10 = vpop.permute.xlu1 %2127 }
 0xcb4   :  { %v2114_v30 = vadd.f32 1e-05, %v2112_v27 }
 0xcb6   :  { %3104 = vrsqrt.f32 %v2114_v30 }
 0xcc0   :  { %v3105_v33 = vpop.eup %3104 }
 0xcc1   :  { %v2116_v5 = vmul.f32 %v3105_v33, %v2113_v29 }
 0xcc3   :  { %2120 = vperm.xlu0 %3048, %v2116_v5  }
 0xce2   :  { %2016 = vadd.xlane.f32.xlu0 %v4988_v31 }
 0xce4   :  { %v2031_v61 = vpop.xlane.xlu1 %2030 }
 0xce5   :  { %v2032_v57 = vmul.f32 0.001953125, %v2031_v61 }
 0xce8   :  { %v5076_v30 = vpop.permute.xlu1 %2055 }
 0xd42   :  { %v2121_v35 = vpop.permute.xlu0 %2120 }
 0xd43   :  { %v2123_v45 = vmul.f32 %v2121_v35, %v2117_v34 }
 0xd45   :  { %v2130_v39 = vadd.f32 %v2128_v10, %v2123_v45 }
 0xd47   :  { %v2131_v60 = vmin.f32 %v2130_v39, 20.0 }
 0xd49   :  { %v2132_v50 = vmul.f32 1.442695, %v2131_v60 }
 0xd4b   :  { %3106 = vpow2.f32 %v2132_v50 }
 0xd55   :  { %v3107_v28 = vpop.eup %3106 }
 0xd56   :  { %v2134_v40 = vadd.f32 1.0, %v3107_v28 }
 0xd58   :  { %v2135_v41 = vmul.f32 %v2134_v40, %v2134_v40 }
 0xd5a   :  { %v2138_v22 = vadd.f32 1.0, %v2135_v41  ;;  %v2767_v47 = vadd.f32 -1.0, %v2135_v41 }
 0xd5c   :  { %3108 = vrcp.f32 %v2138_v22  ;;  %v2137_v26 = vmul.f32 %v2767_v47, %v2130_v39 }
 0xd66   :  { %v3109_v58 = vpop.eup %3108 }
 0xd67   :  { %v2140_v32 = vmul.f32 %v3109_v58, %v2137_v26 }
 0xd69   :  { %v2142_v19 = vpack.c.bf16 %v2140_v32, %v2140_v32 }
 0xd6b   :  { %v2147_v31 = vsel %vm419_vm1, %v2142_v19, 0 }
 0xd6c   :  { %2962 = vmatpush3.bf16.msra.mxu0 %v2147_v31 }
 0xd6d   :  { %2245 = vmatprep.subr.bf16.mxu0 %v5018_v36 }
 0xd6f   :  { %2964 = vmatmul.mubr.msk.bf16.vlgmr.msra.gmra.mrb[24].mxu0 %vm415_vm2, %v2141_v21  ;;  %v2017_v54 = vpop.xlane.xlu0 %2016 }
 0xd70   :  { %v5052_v16 = vmul.f32 0.001953125, %v2017_v54  ;;  %2246 = vmatpush1.bf16.msra.mxu0 %v5022_v49  ;;  %2277 = vmatprep.mubr.bf16.mxu0 %v3883_v13 }
 0xd71   :  { %2247 = vmatprep.subr.bf16.mxu0 %v5026_v52 }
 0xd72   :  { %v2033_v53 = vmul.f32 %v5052_v16, %v5052_v16  ;;  %v2039_v37 = vsub.f32 %v4965_v9, %v5052_v16  ;;  %v2040_v36 = vsub.f32 %v4971_v48, %v5052_v16  ;;  %v2041_v12 = vsub.f32 %v4961_v6, %v5052_v16  ;;  %v2035_v9 = vld [vmem:[#allocation28] sm:$0xf] }
 0xd73   :  { %v2042_v49 = vsub.f32 %v4963_v63, %v5052_v16 }
 0xd74   :  { %v2034_v23 = vsub.f32 %v2032_v57, %v2033_v53  ;;  %2248 = vmatpush1.bf16.msra.mxu0 %v5029_v55 }
 0xd75   :  { %2249 = vmatprep.subr.bf16.mxu0 %v5032_v4 }
 0xd76   :  { %v2036_v52 = vadd.f32 1e-05, %v2034_v23 }
 0xd78   :  { %3110 = vrsqrt.f32 %v2036_v52  ;;  %2250 = vmatpush1.bf16.msra.mxu0 %v5035_v2 }
 0xd79   :  { %2251 = vmatprep.subr.bf16.mxu0 %v5038_v3 }
 0xd7c   :  { %2252 = vmatpush1.bf16.msra.mxu0 %v5041_v38 }
 0xd82   :  { %v3111_v48 = vpop.eup %3110 }
 0xd83   :  { %v2038_v51 = vmul.f32 %v3111_v48, %v2035_v9 }
 0xd85   :  { %2045 = vperm.xlu0 %3048, %v2038_v51  }
 0xe04   :  { %v5072_v27 = vpop.permute.xlu0 %2045 }
 0xe05   :  { %v2049_v63 = vmul.f32 %v5072_v27, %v2040_v36  ;;  %v2051_v55 = vmul.f32 %v5072_v27, %v2042_v49  ;;  %v2048_v4 = vmul.f32 %v5072_v27, %v2039_v37 }
 0xe07   :  { %v2059_v2 = vadd.f32 %v5076_v30, %v2049_v63  ;;  %v2061_v3 = vadd.f32 %v5076_v30, %v2051_v55  ;;  %v2058_v33 = vadd.f32 %v5076_v30, %v2048_v4 }
 0xe09   :  { %v2063_v29 = vmin.f32 %v2059_v2, 20.0  ;;  %v2065_v38 = vmin.f32 %v2061_v3, 20.0  ;;  %v2062_v35 = vmin.f32 %v2058_v33, 20.0 }
 0xe0b   :  { %v2068_v5 = vmul.f32 1.442695, %v2063_v29  ;;  %v2072_v34 = vmul.f32 1.442695, %v2065_v38  ;;  %v2066_v45 = vmul.f32 1.442695, %v2062_v35 }
 0xe0c   :  { %v2189_v38 = vld [vmem:[#allocation34] sm:$0x3] }
 0xe0d   :  { %3112 = vpow2.f32 %v2068_v5 }
 0xe0e   :  { %3114 = vpow2.f32 %v2072_v34 }
 0xe0f   :  { %3116 = vpow2.f32 %v2066_v45 }
 0xe17   :  { %v3113_v10 = vpop.eup %3112 }
 0xe18   :  { %v2075_v39 = vadd.f32 1.0, %v3113_v10  ;;  %v3115_v60 = vpop.eup %3114 }
 0xe19   :  { %v2077_v50 = vadd.f32 1.0, %v3115_v60  ;;  %v3117_v47 = vpop.eup %3116 }
 0xe1a   :  { %v2079_v28 = vmul.f32 %v2075_v39, %v2075_v39  ;;  %v2074_v58 = vadd.f32 1.0, %v3117_v47 }
 0xe1b   :  { %v2081_v40 = vmul.f32 %v2077_v50, %v2077_v50 }
 0xe1c   :  { %v2091_v41 = vadd.f32 1.0, %v2079_v28  ;;  %v2764_v26 = vadd.f32 -1.0, %v2079_v28  ;;  %v2078_v31 = vmul.f32 %v2074_v58, %v2074_v58 }
 0xe1d   :  { %v2093_v22 = vadd.f32 1.0, %v2081_v40  ;;  %v2766_v32 = vadd.f32 -1.0, %v2081_v40 }
 0xe1e   :  { %3118 = vrcp.f32 %v2091_v41  ;;  %v2087_v19 = vmul.f32 %v2764_v26, %v2059_v2  ;;  %v2090_v36 = vadd.f32 1.0, %v2078_v31  ;;  %v2763_v23 = vadd.f32 -1.0, %v2078_v31 }
 0xe1f   :  { %3120 = vrcp.f32 %v2093_v22  ;;  %v2089_v61 = vmul.f32 %v2766_v32, %v2061_v3 }
 0xe20   :  { %3122 = vrcp.f32 %v2090_v36  ;;  %v2086_v9 = vmul.f32 %v2763_v23, %v2058_v33  ;;  %v2050_v33 = vmul.f32 %v5072_v27, %v2041_v12 }
 0xe22   :  { %v2060_v5 = vadd.f32 %v5076_v30, %v2050_v33  ;;  %v2468_v33 = vld [vmem:[#allocation35] sm:$0x3] }
 0xe24   :  { %v2064_v34 = vmin.f32 %v2060_v5, 20.0 }
 0xe26   :  { %v2070_v35 = vmul.f32 1.442695, %v2064_v34 }
 0xe28   :  { %v3119_v21 = vpop.eup %3118  ;;  %3124 = vpow2.f32 %v2070_v35 }
 0xe29   :  { %v2099_v54 = vmul.f32 %v3119_v21, %v2087_v19  ;;  %v3121_v57 = vpop.eup %3120 }
 0xe2a   :  { %v2101_v37 = vmul.f32 %v3121_v57, %v2089_v61  ;;  %v3123_v52 = vpop.eup %3122 }
 0xe2b   :  { %v2191_v53 = vpack.c.bf16 %v2099_v54, %v2099_v54  ;;  %v2098_v48 = vmul.f32 %v3123_v52, %v2086_v9 }
 0xe2c   :  { %v2193_v49 = vpack.c.bf16 %v2101_v37, %v2101_v37 }
 0xe2d   :  { %2771 = vmatprep.subr.msk.bf16.mxu1 %vm419_vm1, %v2191_v53  ;;  %v2190_v51 = vpack.c.bf16 %v2098_v48, %v2098_v48 }
 0xe2e   :  { %2773 = vmatprep.subr.msk.bf16.mxu0 %vm419_vm1, %v2193_v49 }
 0xe2f   :  { %v2290_v29 = vsel %vm419_vm1, %v2190_v51, 0 }
 0xe32   :  { %v3125_v45 = vpop.eup %3124 }
 0xe33   :  { %v2076_v10 = vadd.f32 1.0, %v3125_v45 }
 0xe35   :  { %v2080_v39 = vmul.f32 %v2076_v10, %v2076_v10 }
 0xe37   :  { %v2092_v60 = vadd.f32 1.0, %v2080_v39  ;;  %v2765_v50 = vadd.f32 -1.0, %v2080_v39  ;;  %v2545_v39 = vld [vmem:[#allocation38] sm:$0xf] }
 0xe39   :  { %3126 = vrcp.f32 %v2092_v60  ;;  %v2088_v40 = vmul.f32 %v2765_v50, %v2060_v5 }
 0xe42   :  { %v5084_v63 = vpop.f32.mrb[24].mxu0 }
 0xe43   :  { %v2194_v55 = vpack.c.bf16 %v5084_v63, %v5084_v63  ;;  %v2965_v4 = vpop.f32.mrb[25].mxu0  ;;  %v3127_v28 = vpop.eup %3126 }
 0xe44   :  { %v2186_v2 = vpop.f32.mrb[26].mxu0  ;;  %v2100_v41 = vmul.f32 %v3127_v28, %v2088_v40  ;;  %v2471_v28 = vrot.slane %v5084_v63, 4 }
 0xe45   :  { %v2966_v3 = vpop.f32.mrb[27].mxu0  ;;  %2769 = vmatmul.mubr.msk.bf16.vlgmr.msra.gmra.mrb[24].mxu1 %vm523_vm3, %v2194_v55  ;;  %2240 = vrot.lane.b32.xlu0 %v2194_v55, %s3865_s15 }
 0xe46   :  { %2302 = vmatpush1.bf16.msra.mxu1 %v2290_v29  ;;  %2333 = vmatprep.mubr.bf16.mxu1 %v3883_v13 }
 0xe47   :  { %2883 = vmatprep.subr.bf16.mxu1 %v4843_v42 }
 0xe51   :  { %2772 = vmatmul.mubr.msk.bf16.vlgmr.msra.gmra.mrb[24].mxu1 %vm415_vm2, %v2189_v38 }
 0xe52   :  { %2884 = vmatpush3.bf16.msra.mxu1 %v4857_v44  ;;  %2415 = vmatprep.mubr.bf16.mxu1 %v2191_v53 }
 0xe53   :  { %2885 = vmatprep.subr.bf16.mxu1 %v4868_v24 }
 0xe56   :  { %2886 = vmatpush3.bf16.msra.mxu1 %v4880_v59 }
 0xe57   :  { %2887 = vmatprep.subr.bf16.mxu1 %v4889_v46 }
 0xe5a   :  { %2888 = vmatpush3.bf16.msra.mxu1 %v4896_v17 }
 0xe5b   :  { %2889 = vmatprep.subr.bf16.mxu1 %v4899_v20 }
 0xe5e   :  { %2890 = vmatpush3.bf16.msra.mxu1 %v4903_v1 }
 0xe5f   :  { %2891 = vmatprep.subr.bf16.mxu1 %v4907_v7 }
 0xe62   :  { %2892 = vmatpush3.bf16.msra.mxu1 %v4911_v62 }
 0xe63   :  { %2893 = vmatprep.subr.bf16.mxu1 %v4918_v56 }
 0xe66   :  { %2894 = vmatpush3.bf16.msra.mxu1 %v4923_v25 }
 0xe67   :  { %2895 = vmatprep.subr.bf16.mxu1 %v4926_v8 }
 0xe6a   :  { %2896 = vmatpush3.bf16.msra.mxu1 %v4931_v11 }
 0xe6b   :  { %2897 = vmatprep.subr.bf16.mxu1 %v4934_v43 }
 0xe6e   :  { %2898 = vmatpush3.bf16.msra.mxu1 %v4939_v14 }
 0xe6f   :  { %2967 = vmatprep.subr.bf16.mxu1 %v3881_v0 }
 0xe71   :  { %2416 = vmatmul.mubr.bf16.vlgmr.msra.gmra.mrb[28].mxu1 %v2190_v51 }
 0xe72   :  { %2969 = vmatprep.mubr.msk.bf16.mxu1 %vm3882_vm0, %v3881_v0  ;;  %v2192_v0 = vpack.c.bf16 %v2100_v41, %v2100_v41 }
 0xe74   :  { %v2296_v6 = vsel %vm419_vm1, %v2192_v0, 0 }
 0xeb7   :  { %v2241_v22 = vpop.permute.xlu0 %2240 }
 0xeb8   :  { %2770 = vmatmul.mubr.msk.bf16.vlgmr.msra.gmra.mrb[28].mxu0 %vm523_vm3, %v2241_v22 }
 0xeb9   :  { %2343 = vmatpush1.bf16.msra.mxu0 %v2296_v6  ;;  %2374 = vmatprep.mubr.bf16.mxu0 %v3883_v13 }
 0xeba   :  { %2905 = vmatprep.subr.bf16.mxu0 %v4843_v42 }
 0xec4   :  { %2774 = vmatmul.mubr.msk.bf16.vlgmr.msra.gmra.mrb[28].mxu0 %vm415_vm2, %v2189_v38 }
 0xec5   :  { %2906 = vmatpush3.bf16.msra.mxu0 %v4857_v44  ;;  %2455 = vmatprep.mubr.bf16.mxu0 %v2193_v49 }
 0xec6   :  { %2907 = vmatprep.subr.bf16.mxu0 %v4868_v24 }
 0xec9   :  { %2908 = vmatpush3.bf16.msra.mxu0 %v4880_v59 }
 0xeca   :  { %2909 = vmatprep.subr.bf16.mxu0 %v4889_v46 }
 0xecd   :  { %2910 = vmatpush3.bf16.msra.mxu0 %v4896_v17 }
 0xece   :  { %2911 = vmatprep.subr.bf16.mxu0 %v4899_v20 }
 0xed1   :  { %2912 = vmatpush3.bf16.msra.mxu0 %v4903_v1 }
 0xed2   :  { %2913 = vmatprep.subr.bf16.mxu0 %v4907_v7 }
 0xed5   :  { %2914 = vmatpush3.bf16.msra.mxu0 %v4911_v62 }
 0xed6   :  { %2915 = vmatprep.subr.bf16.mxu0 %v4918_v56 }
 0xed9   :  { %2916 = vmatpush3.bf16.msra.mxu0 %v4923_v25 }
 0xeda   :  { %2917 = vmatprep.subr.bf16.mxu0 %v4926_v8 }
 0xedd   :  { %2918 = vmatpush3.bf16.msra.mxu0 %v4931_v11 }
 0xede   :  { %2919 = vmatprep.subr.bf16.mxu0 %v4934_v43 }
 0xee1   :  { %2920 = vmatpush3.bf16.msra.mxu0 %v4939_v14 }
 0xee4   :  { %2456 = vmatmul.mubr.bf16.vlgmr.msra.gmra.mrb[32].mxu0 %v2192_v0 }
 0xf24   :  { %v5137_v13 = vpop.f32.mrb[24].mxu1 }
 0xf25   :  { %v2519_v42 = vsel %vm976_vm4, %v5137_v13, 0.0  ;;  %v2529_v44 = vmul.f32 %v5137_v13, %v5137_v13  ;;  %v5143_v24 = vpop.f32.mrb[25].mxu1 }
 0xf26   :  { %v2520_v59 = vsel %vm976_vm4, %v5143_v24, 0.0  ;;  %v2530_v46 = vmul.f32 %v5143_v24, %v5143_v24  ;;  %v2339_v17 = vpop.f32.mrb[26].mxu1 }
 0xf27   :  { %v2533_v20 = vsel %vm976_vm4, %v2529_v44, 0.0  ;;  %v2521_v1 = vadd.f32 %v2520_v59, %v2519_v42  ;;  %v2340_v7 = vpop.f32.mrb[27].mxu1 }
 0xf28   :  { %v2534_v62 = vsel %vm976_vm4, %v2530_v46, 0.0 }
 0xf29   :  { %v2535_v56 = vadd.f32 %v2534_v62, %v2533_v20 }
 0xf44   :  { %v2899_v25 = vpop.f32.mrb[28].mxu1 }
 0xf45   :  { %v2900_v8 = vpop.f32.mrb[29].mxu1 }
 0xf46   :  { %v2901_v11 = vadd.f32 %v2900_v8, %v2899_v25  ;;  %v2902_v43 = vpop.f32.mrb[30].mxu1 }
 0xf47   :  { %v2903_v14 = vpop.f32.mrb[31].mxu1 }
 0xf97   :  { %v5151_v16 = vpop.f32.mrb[28].mxu0 }
 0xf98   :  { %v2522_v12 = vsel %vm976_vm4, %v5151_v16, 0.0  ;;  %v2531_v27 = vmul.f32 %v5151_v16, %v5151_v16  ;;  %v5157_v30 = vpop.f32.mrb[29].mxu0 }
 0xf99   :  { %v2532_v47 = vmul.f32 %v5157_v30, %v5157_v30  ;;  %v2380_v26 = vpop.f32.mrb[30].mxu0  ;;  %v2523_v58 = vadd.f32 %v2522_v12, %v2521_v1  ;;  %v2524_v32 = vsel %vm976_vm4, %v5157_v30, 0.0 }
 0xf9a   :  { %v2381_v19 = vpop.f32.mrb[31].mxu0  ;;  %v2536_v31 = vsel %vm976_vm4, %v2531_v27, 0.0 }
 0xf9b   :  { %v2525_v21 = vadd.f32 %v2524_v32, %v2523_v58  ;;  %v2537_v61 = vadd.f32 %v2536_v31, %v2535_v56  ;;  %v2538_v54 = vsel %vm976_vm4, %v2532_v47, 0.0  ;;  %v3177_v58 = vld [vmem:[#allocation2 + $0x8] sm:$0xff] }
 0xf9d   :  { %2526 = vadd.xlane.f32.xlu0 %v2525_v21  ;;  %v2539_v57 = vadd.f32 %v2538_v54, %v2537_v61 }
 0xfb7   :  { %v2921_v53 = vpop.f32.mrb[32].mxu0 }
 0xfb8   :  { %v2922_v37 = vpop.f32.mrb[33].mxu0 }
 0xfb9   :  { %v2923_v36 = vadd.f32 %v2922_v37, %v2921_v53  ;;  %v2924_v49 = vpop.f32.mrb[34].mxu0 }
 0xfba   :  { %v2925_v23 = vpop.f32.mrb[35].mxu0 }
 0xfbb   :  { %2464 = vrot.lane.b32.xlu1 %v2923_v36, %s3865_s15  ;;  %s2674_s15 = sshll.u32 %s3897_s10, 4  ;;  %s2675_s15 = int_to_ptr.vmem [resolvable:$true] %s2674_s15 }
 0xfbc   :  { %s3772_s19 = scalar_lea.vmem %s2675_s15, 256  ;;  %p3777_p7 = scmp.lt.s32.totalorder %s2675_s15, %s2675_s15 }
 0xfbd   :  { %p3773_p6 = scmp.ne.s32.totalorder %s2675_s15, %s3772_s19  ;;  %p3778_p8 = scmp.lt.s32.totalorder %s3772_s19, %s3772_s19 }
 0xfbf   :  { %p3779_p9 = por %p3778_p8, %p3777_p7 }
 0xfc1   :  { %p3780_p10 = pnand %p3779_p9, %p3773_p6 }
 0xfdf   :  { %2540 = vadd.xlane.f32.xlu1 %v2539_v57  ;;  %v2583_v57 = vld [vmem:[#allocation41] sm:$0xf] }
0x102a   :  { %v2527_v52 = vpop.xlane.xlu0 %2526 }
0x102b   :  { %v2528_v9 = vmul.f32 0.001953125, %v2527_v52 }
0x102d   :  { %v2465_v48 = vpop.permute.xlu1 %2464  ;;  %v2549_v51 = vsub.f32 %v5137_v13, %v2528_v9  ;;  %v2550_v55 = vsub.f32 %v5143_v24, %v2528_v9  ;;  %v2551_v4 = vsub.f32 %v5151_v16, %v2528_v9  ;;  %v2552_v3 = vsub.f32 %v5157_v30, %v2528_v9  ;;  %v2562_v24 = vld [vmem:[#allocation40] sm:$0xf] }
0x102e   :  { %v2467_v2 = vsel %vm523_vm3, %v2901_v11, %v2465_v48  ;;  %v2543_v35 = vmul.f32 %v2528_v9, %v2528_v9  ;;  %v3176_v30 = vld [vmem:[#allocation2] sm:$0xff] }
0x102f   :  { %v2469_v29 = vpack.c.bf16 %v2467_v2, %v2467_v2 }
0x1031   :  { %v2477_v38 = vsel %vm419_vm1, %v2469_v29, 0 }
0x1032   :  { %2968 = vmatpush3.bf16.msra.mxu1 %v2477_v38 }
0x1035   :  { %2970 = vmatmul.mubr.msk.bf16.vlgmr.msra.gmra.mrb[32].mxu1 %vm415_vm2, %v2468_v33 }
0x106c   :  { %v2541_v5 = vpop.xlane.xlu1 %2540 }
0x106d   :  { %v2542_v34 = vmul.f32 0.001953125, %v2541_v5 }
0x106f   :  { %v2544_v45 = vsub.f32 %v2542_v34, %v2543_v35 }
0x1071   :  { %v2546_v10 = vadd.f32 1e-05, %v2544_v45 }
0x1073   :  { %3128 = vrsqrt.f32 %v2546_v10 }
0x107d   :  { %v3129_v60 = vpop.eup %3128 }
0x107e   :  { %v2548_v50 = vmul.f32 %v3129_v60, %v2545_v39 }
0x1080   :  { %2555 = vperm.xlu1 %3049, %v2548_v50  }
0x10ff   :  { %v2556_v1 = vpop.permute.xlu1 %2555 }
0x1100   :  { %v2558_v56 = vmul.f32 %v2556_v1, %v2549_v51  ;;  %v2559_v25 = vmul.f32 %v2556_v1, %v2550_v55  ;;  %v2560_v8 = vmul.f32 %v2556_v1, %v2551_v4  ;;  %v2561_v11 = vmul.f32 %v2556_v1, %v2552_v3 }
0x1108   :  { %v2513_v40 = vpop.f32.mrb[32].mxu1 }
0x1109   :  { %v5174_v41 = vadd.f32 %v2513_v40, %v2471_v28  ;;  %v2971_v0 = vpop.f32.mrb[33].mxu1 }
0x110a   :  { %v2516_v22 = vpop.f32.mrb[34].mxu1 }
0x110b   :  { %v2572_v6 = vsel %vm976_vm4, %v5174_v41, 0.0  ;;  %v2972_v13 = vpop.f32.mrb[35].mxu1  ;;  %v2576_v42 = vmul.f32 %v5174_v41, %v5174_v41 }
0x110c   :  { %2573 = vadd.xlane.f32.xlu0 %v2572_v6 }
0x110d   :  { %v2577_v44 = vsel %vm976_vm4, %v2576_v42, 0.0 }
0x1110   :  { %2578 = vadd.xlane.f32.xlu0 %v2577_v44 }
0x1126   :  { %2565 = vperm.xlu0 %3048, %v2562_v24  }
0x1199   :  { %v2574_v59 = vpop.xlane.xlu0 %2573 }
0x119a   :  { %v5181_v63 = vmul.f32 0.0078125, %v2574_v59 }
0x119c   :  { %v2581_v17 = vmul.f32 %v5181_v63, %v5181_v63 }
0x119d   :  { %v2579_v46 = vpop.xlane.xlu0 %2578 }
0x119e   :  { %v2580_v20 = vmul.f32 0.0078125, %v2579_v46 }
0x11a0   :  { %v2582_v7 = vsub.f32 %v2580_v20, %v2581_v17 }
0x11a2   :  { %v2584_v62 = vadd.f32 1e-05, %v2582_v7 }
0x11a4   :  { %3130 = vrsqrt.f32 %v2584_v62 }
0x11a5   :  { %v2566_v43 = vpop.permute.xlu0 %2565 }
0x11a6   :  { %v2568_v14 = vadd.f32 %v2566_v43, %v2558_v56  ;;  %v2569_v16 = vadd.f32 %v2566_v43, %v2559_v25  ;;  %v2570_v12 = vadd.f32 %v2566_v43, %v2560_v8  ;;  %v2571_v27 = vadd.f32 %v2566_v43, %v2561_v11 }
0x11a8   :  { %v2601_v47 = vadd.f32 %v3176_v30, %v2568_v14  ;;  %v2602_v26 = vadd.f32 %v2569_v16, %v4420_v15  ;;  %v2603_v32 = vadd.f32 %v3177_v58, %v2570_v12  ;;  %v2604_v19 = vadd.f32 %v2571_v27, %v4425_v18  ;;  %v2594_v15 = vld [vmem:[#allocation43] sm:$0xf] }
0x11aa   :  { %v2605_v31 = vmin.f32 %v2601_v47, 20.0  ;;  %v2606_v21 = vmin.f32 %v2602_v26, 20.0  ;;  %v2607_v61 = vmin.f32 %v2603_v32, 20.0  ;;  %v2608_v54 = vmin.f32 %v2604_v19, 20.0 }
0x11ac   :  { %v2609_v53 = vmul.f32 1.442695, %v2605_v31  ;;  %v2611_v37 = vmul.f32 1.442695, %v2606_v21  ;;  %v2613_v36 = vmul.f32 1.442695, %v2607_v61 }
0x11ad   :  { %v2615_v49 = vmul.f32 1.442695, %v2608_v54 }
0x11ae   :  { %v3131_v23 = vpop.eup %3130  ;;  %3132 = vpow2.f32 %v2609_v53 }
0x11af   :  { %3134 = vpow2.f32 %v2611_v37  ;;  %v2586_v52 = vmul.f32 %v3131_v23, %v2583_v57 }
0x11b0   :  { %3136 = vpow2.f32 %v2613_v36 }
0x11b1   :  { %3138 = vpow2.f32 %v2615_v49  ;;  %2590 = vperm.xlu1 %3049, %v2586_v52  }
0x11b5   :  { %2597 = vperm.xlu1 %3049, %v2594_v15  }
0x11b8   :  { %v3133_v9 = vpop.eup %3132 }
0x11b9   :  { %v3135_v18 = vpop.eup %3134  ;;  %v2617_v48 = vadd.f32 1.0, %v3133_v9 }
0x11ba   :  { %v3137_v51 = vpop.eup %3136  ;;  %v2618_v55 = vadd.f32 1.0, %v3135_v18 }
0x11bb   :  { %v3139_v4 = vpop.eup %3138  ;;  %v2619_v2 = vadd.f32 1.0, %v3137_v51  ;;  %v2621_v3 = vmul.f32 %v2617_v48, %v2617_v48 }
0x11bc   :  { %v2620_v29 = vadd.f32 1.0, %v3139_v4  ;;  %v2622_v38 = vmul.f32 %v2618_v55, %v2618_v55 }
0x11bd   :  { %v2623_v33 = vmul.f32 %v2619_v2, %v2619_v2  ;;  %v2633_v5 = vadd.f32 1.0, %v2621_v3  ;;  %v2776_v39 = vadd.f32 -1.0, %v2621_v3 }
0x11be   :  { %v2624_v34 = vmul.f32 %v2620_v29, %v2620_v29  ;;  %v2634_v35 = vadd.f32 1.0, %v2622_v38  ;;  %v2777_v60 = vadd.f32 -1.0, %v2622_v38 }
0x11bf   :  { %v2635_v45 = vadd.f32 1.0, %v2623_v33  ;;  %3140 = vrcp.f32 %v2633_v5  ;;  %v2778_v50 = vadd.f32 -1.0, %v2623_v33  ;;  %v2629_v40 = vmul.f32 %v2776_v39, %v2601_v47 }
0x11c0   :  { %v2636_v10 = vadd.f32 1.0, %v2624_v34  ;;  %3142 = vrcp.f32 %v2634_v35  ;;  %v2779_v28 = vadd.f32 -1.0, %v2624_v34  ;;  %v2630_v22 = vmul.f32 %v2777_v60, %v2602_v26 }
0x11c1   :  { %3144 = vrcp.f32 %v2635_v45  ;;  %v2631_v13 = vmul.f32 %v2778_v50, %v2603_v32 }
0x11c2   :  { %3146 = vrcp.f32 %v2636_v10  ;;  %v2632_v24 = vmul.f32 %v2779_v28, %v2604_v19 }
0x11c9   :  { %v3141_v0 = vpop.eup %3140 }
0x11ca   :  { %v3143_v6 = vpop.eup %3142  ;;  %v2641_v42 = vmul.f32 %v3141_v0, %v2629_v40 }
0x11cb   :  { %v3145_v44 = vpop.eup %3144  ;;  %v2642_v59 = vmul.f32 %v3143_v6, %v2630_v22 }
0x11cc   :  { %v3147_v46 = vpop.eup %3146  ;;  %v2643_v17 = vmul.f32 %v3145_v44, %v2631_v13 }
0x11cd   :  { %v2644_v20 = vmul.f32 %v3147_v46, %v2632_v24  ;;  %v2649_v1 = vcombine.low %v2641_v42, %v2642_v59 }
0x11cf   :  { %v2650_v7 = vcombine.low %v2643_v17, %v2644_v20  ;;  %2653 = vst [vmem:[#allocation44] sm:$0xff] %v2649_v1 }
0x11d1   :  { %2654 = vst [vmem:[#allocation44 + $0x8] sm:$0xff] %v2650_v7 }
0x11d2   :  { %3783 = shalt.err (!%p3780_p10)
}
0x11d3   :  { %s5288_s8 = sld [smem:[#allocation77_spill]] }
0x11d9   :  { %s3784_s7 = scalar_lea.hbm %s5288_s8, 256 }
0x11da   :  { %p3785_p11 = scmp.ne.s32.totalorder %s5288_s8, %s3784_s7  ;;  %p3788_p12 = scmp.lt.u32.totalorder %s3784_s7, %s5288_s8 }
0x11dc   :  { %p3790_p13 = pnand %p3788_p12, %p3785_p11 }
0x11de   :  { %3793 = shalt.err (!%p3790_p13)
}
0x11df   :  { %2677 = dma.vmem_to_hbm [thread:$0]  %s2675_s15, 256, %s5288_s8, [#allocation4]   ;;  %v2587_v56 = vsub.f32 %v5174_v41, %v5181_v63  ;;  %v2655_v8 = vld [vmem:[#allocation5] sm:$0xf] }
0x11e0   :  { %s3898_s0 = smov [#allocation45]  }
0x11e1   :  { %s2684_s26 = sshll.u32 %s3898_s0, 4  ;;  %s2685_s26 = int_to_ptr.vmem [resolvable:$true] %s2684_s26 }
0x11e2   :  { %s3794_s25 = scalar_lea.vmem %s2685_s26, 64  ;;  %p3799_p1 = scmp.lt.s32.totalorder %s2685_s26, %s2685_s26 }
0x11e3   :  { %p3795_p0 = scmp.ne.s32.totalorder %s2685_s26, %s3794_s25  ;;  %p3800_p2 = scmp.lt.s32.totalorder %s3794_s25, %s3794_s25 }
0x11e5   :  { %p3801_p3 = por %p3800_p2, %p3799_p1 }
0x11e7   :  { %p3802_p4 = pnand %p3801_p3, %p3795_p0 }
0x1230   :  { %v2591_v62 = vpop.permute.xlu1 %2590 }
0x1231   :  { %v2593_v25 = vmul.f32 %v2591_v62, %v2587_v56 }
0x1234   :  { %v2598_v11 = vpop.permute.xlu1 %2597 }
0x1235   :  { %v2600_v43 = vadd.f32 %v2598_v11, %v2593_v25 }
0x1237   :  { %v2656_v14 = vadd.f32 %v2655_v8, %v2600_v43 }
0x1239   :  { %v2657_v16 = vmin.f32 %v2656_v14, 20.0 }
0x123b   :  { %v2658_v12 = vmul.f32 1.442695, %v2657_v16 }
0x123d   :  { %3148 = vpow2.f32 %v2658_v12 }
0x1247   :  { %v3149_v27 = vpop.eup %3148 }
0x1248   :  { %v2660_v30 = vadd.f32 1.0, %v3149_v27 }
0x124a   :  { %v2661_v47 = vmul.f32 %v2660_v30, %v2660_v30 }
0x124c   :  { %v2664_v26 = vadd.f32 1.0, %v2661_v47  ;;  %v2780_v58 = vadd.f32 -1.0, %v2661_v47 }
0x124e   :  { %3150 = vrcp.f32 %v2664_v26  ;;  %v2663_v32 = vmul.f32 %v2780_v58, %v2656_v14 }
0x1258   :  { %v3151_v19 = vpop.eup %3150 }
0x1259   :  { %v2666_v31 = vmul.f32 %v3151_v19, %v2663_v32 }
0x125b   :  { %2667 = vst [vmem:[#allocation45] sm:$0xf] %v2666_v31 }
0x125c   :  { %3805 = shalt.err (!%p3802_p4)
}
0x125d   :  { %s5289_s23 = sld [smem:[#allocation78_spill]] }
0x1263   :  { %s3806_s27 = scalar_lea.hbm %s5289_s23, 64 }
0x1264   :  { %p3807_p5 = scmp.ne.s32.totalorder %s5289_s23, %s3806_s27  ;;  %p3810_p6 = scmp.lt.u32.totalorder %s3806_s27, %s5289_s23 }
0x1266   :  { %p3812_p7 = pnand %p3810_p6, %p3807_p5 }
0x1268   :  { %3815 = shalt.err (!%p3812_p7)
}
0x1269   :  { %2687 = dma.vmem_to_hbm [thread:$0]  %s2685_s26, 64, %s5289_s23, [#allocation46]  }
0x126a   :  { %3844 = dma.done.wait [#allocation4], 256  }
0x126b   :  { %3845 = vsyncadd [#allocation4], 4294967040 }
0x126c   :  { %3846 = dma.done.wait [#allocation46], 64  }
0x126d   :  { %3847 = vsyncadd [#allocation46], 4294967232 }
0x126e   :  { %2694 = vsyncpa [#allocation3], 1 }
0x126f   :  { %2695 = vsyncpa [#allocation6], 1 }
0x1270   :  { %2696 = vsyncpa [#allocation9], 1 }
0x1271   :  { %2697 = vsyncpa [#allocation12], 1 }
0x1272   :  { %2698 = vsyncpa [#allocation15], 1 }
0x1273   :  { %2699 = vsyncpa [#allocation18], 1 }
0x1274   :  { %2700 = vsyncpa [#allocation21], 1 }
0x1275   :  { %2701 = vsyncpa [#allocation24], 1 }
0x1276   :  { %2702 = vsyncpa [#allocation27], 1 }
0x1277   :  { %2703 = vsyncpa [#allocation30], 1 }
0x1278   :  { %2704 = vsyncpa [#allocation33], 1 }
0x1279   :  { %2705 = vsyncpa [#allocation36], 1 }
0x127a   :  { %2706 = vsyncpa [#allocation39], 1 }
0x127b   :  { %2707 = vsyncpa [#allocation42], 1 }
0x127c   :  { %2708 = vsyncpa [#allocation4], 1 }
0x127d   :  { %2709 = vsyncpa [#allocation46], 1 }

</bundles_post_ra>
